<compile_context>
chip_gen: v6e
topology: v6e:2x2x1
jax: 0.10.0
libtpu: 0.0.40
codegen_flags: <defaults>
</compile_context>

<pallas_src>
import jax
import jax.numpy as jnp
from jax.experimental import pallas as pl
from jax.experimental.pallas import tpu as pltpu

_BN_EPS = 1e-5


# ---------------------------------------------------------------------------
# Helpers
# ---------------------------------------------------------------------------
def _silu(y):
    # y is f32; exp and the approximate reciprocal both go to the EUP slot.
    return y * pl.reciprocal(1.0 + jnp.exp(-y), approx=True)


def _pick_m_tile(M):
    """Largest sublane-aligned tile (<=512) that divides M with >=2 grid steps."""
    for t in (512, 256, 128, 64, 32, 16, 8):
        if M % t == 0 and M // t >= 2:
            return t
    return M  # fall back to a single full-extent block


def _fold_bn(p):
    s = p["gamma"] / jnp.sqrt(p["var"] + _BN_EPS)
    w_f = p["w"] * s[:, None, None, None]
    b_f = p["beta"] - p["mean"] * s
    return w_f, b_f


# ---------------------------------------------------------------------------
# Pallas kernels
# ---------------------------------------------------------------------------
def _matmul_bias_silu_kernel(a_ref, w_ref, b_ref, o_ref):
    y = jnp.dot(a_ref[...], w_ref[...], preferred_element_type=jnp.float32)
    y = _silu(y + b_ref[...])
    o_ref[...] = y.astype(o_ref.dtype)


def _concat4_matmul_bias_silu_kernel(a1, a2, a3, a4, w1, w2, w3, w4, b_ref, o_ref):
    # SiLU(concat([a1..a4], axis=-1) @ concat([w1..w4], axis=0) + b)
    y = jnp.dot(a1[...], w1[...], preferred_element_type=jnp.float32)
    y += jnp.dot(a2[...], w2[...], preferred_element_type=jnp.float32)
    y += jnp.dot(a3[...], w3[...], preferred_element_type=jnp.float32)
    y += jnp.dot(a4[...], w4[...], preferred_element_type=jnp.float32)
    y = _silu(y + b_ref[...])
    o_ref[...] = y.astype(o_ref.dtype)


def _conv3x3_bias_silu_kernel(x_ref, w_ref, b_ref, o_ref):
    # x_ref: (H+2, W+2, Cin)  zero-padded image (bf16)
    # w_ref: (9, Cin, Cout)   tap-major folded weights (bf16)
    # b_ref: (1, Cout)        folded bias (f32)
    # o_ref: (H, W, Cout)
    H, W, Cout = o_ref.shape
    Cin = x_ref.shape[-1]
    xv = x_ref[...]
    acc = jnp.zeros((H * W, Cout), jnp.float32)
    for dy in range(3):
        for dx in range(3):
            a = xv[dy:dy + H, dx:dx + W, :].reshape(H * W, Cin)
            acc = acc + jnp.dot(a, w_ref[dy * 3 + dx],
                                preferred_element_type=jnp.float32)
    y = _silu(acc + b_ref[...])
    o_ref[...] = y.reshape(H, W, Cout).astype(o_ref.dtype)


# ---------------------------------------------------------------------------
# Conv + BN + SiLU wrappers (BN folded, bf16 MXU inputs)
# ---------------------------------------------------------------------------
def _fused_matmul(a, w, bias, out_dtype):
    """SiLU(a @ w + bias), full-K / full-N blocks, M tiled."""
    M, K = a.shape
    _, N = w.shape
    tm = _pick_m_tile(M)
    return pl.pallas_call(
        _matmul_bias_silu_kernel,
        out_shape=jax.ShapeDtypeStruct((M, N), out_dtype),
        grid=(M // tm,),
        in_specs=[
            pl.BlockSpec((tm, K), lambda i: (i, 0)),
            pl.BlockSpec((K, N), lambda i: (0, 0)),   # resident weights
            pl.BlockSpec((1, N), lambda i: (0, 0)),   # resident bias
        ],
        out_specs=pl.BlockSpec((tm, N), lambda i: (i, 0)),
        compiler_params=pltpu.CompilerParams(dimension_semantics=("parallel",)),
    )(a, w, bias)


def conv1x1_bn_silu(x_nhwc, p, out_dtype=jnp.bfloat16):
    N, H, W, Cin = x_nhwc.shape
    w_f, b_f = _fold_bn(p)
    Cout = w_f.shape[0]
    w2 = w_f.reshape(Cout, Cin).T.astype(jnp.bfloat16)
    bias = b_f.reshape(1, Cout).astype(jnp.float32)
    a = x_nhwc.reshape(N * H * W, Cin).astype(jnp.bfloat16)
    y = _fused_matmul(a, w2, bias, out_dtype)
    return y.reshape(N, H, W, Cout)


def conv3x3_bn_silu(x_nhwc, p, out_dtype=jnp.bfloat16):
    """3x3, stride 1, pad 1 conv + BN + SiLU without HBM im2col."""
    N, H, W, Cin = x_nhwc.shape
    w_f, b_f = _fold_bn(p)
    Cout = w_f.shape[0]
    # (Cout, Cin, 3, 3) -> (dy, dx, Cin, Cout) -> (9, Cin, Cout)
    w_taps = jnp.transpose(w_f, (2, 3, 1, 0)).reshape(9, Cin, Cout).astype(jnp.bfloat16)
    bias = b_f.reshape(1, Cout).astype(jnp.float32)
    xp = jnp.pad(x_nhwc.astype(jnp.bfloat16), ((0, 0), (1, 1), (1, 1), (0, 0)))
    return pl.pallas_call(
        _conv3x3_bias_silu_kernel,
        out_shape=jax.ShapeDtypeStruct((N, H, W, Cout), out_dtype),
        grid=(N,),
        in_specs=[
            pl.BlockSpec((None, H + 2, W + 2, Cin), lambda n: (n, 0, 0, 0)),
            pl.BlockSpec((9, Cin, Cout), lambda n: (0, 0, 0)),   # resident
            pl.BlockSpec((1, Cout), lambda n: (0, 0)),           # resident
        ],
        out_specs=pl.BlockSpec((None, H, W, Cout), lambda n: (n, 0, 0, 0)),
        compiler_params=pltpu.CompilerParams(dimension_semantics=("parallel",)),
    )(xp, w_taps, bias)


def concat4_conv1x1_bn_silu(xs, p, out_dtype):
    """SiLU(concat(xs, channel) @ W + b) without materializing the concat."""
    N, H, W, _ = xs[0].shape
    w_f, b_f = _fold_bn(p)
    Cout = w_f.shape[0]
    cins = [int(x.shape[-1]) for x in xs]
    w2 = w_f.reshape(Cout, sum(cins))
    offs = [0]
    for c in cins:
        offs.append(offs[-1] + c)
    w_slabs = [w2[:, offs[i]:offs[i + 1]].T.astype(jnp.bfloat16) for i in range(4)]
    bias = b_f.reshape(1, Cout).astype(jnp.float32)

    M = N * H * W
    a_list = [x.reshape(M, c).astype(jnp.bfloat16) for x, c in zip(xs, cins)]
    tm = _pick_m_tile(M)
    in_specs = (
        [pl.BlockSpec((tm, c), lambda i: (i, 0)) for c in cins]
        + [pl.BlockSpec((c, Cout), lambda i: (0, 0)) for c in cins]
        + [pl.BlockSpec((1, Cout), lambda i: (0, 0))]
    )
    y = pl.pallas_call(
        _concat4_matmul_bias_silu_kernel,
        out_shape=jax.ShapeDtypeStruct((M, Cout), out_dtype),
        grid=(M // tm,),
        in_specs=in_specs,
        out_specs=pl.BlockSpec((tm, Cout), lambda i: (i, 0)),
        compiler_params=pltpu.CompilerParams(dimension_semantics=("parallel",)),
    )(*a_list, *w_slabs, bias)
    return y.reshape(N, H, W, Cout)


# ---------------------------------------------------------------------------
# ELAN1 forward (NCHW in / NCHW out)
# ---------------------------------------------------------------------------
def elan1_forward(x_nchw, params):
    out_dtype = x_nchw.dtype
    x = jnp.transpose(x_nchw, (0, 2, 3, 1)).astype(jnp.bfloat16)  # NHWC, lane-dense C
    x1 = conv1x1_bn_silu(x, params["cv1"])
    x2 = conv1x1_bn_silu(x, params["cv2"])
    x3 = conv3x3_bn_silu(conv3x3_bn_silu(x2, params["cv3"]), params["cv4"])
    x4 = conv3x3_bn_silu(conv3x3_bn_silu(x3, params["cv5"]), params["cv6"])
    y = concat4_conv1x1_bn_silu((x1, x2, x3, x4), params["cv7"], out_dtype)
    return jnp.transpose(y, (0, 3, 1, 2))  # back to NCHW


# ---------------------------------------------------------------------------
# Pure-JAX f32 reference (independent path: lax conv)
# ---------------------------------------------------------------------------
def _ref_conv_bn_silu(x_nchw, p, k):
    pad = (k - 1) // 2
    y = jax.lax.conv_general_dilated(
        x_nchw, p["w"], window_strides=(1, 1),
        padding=((pad, pad), (pad, pad)),
        dimension_numbers=("NCHW", "OIHW", "NCHW"),
    )
    s = p["gamma"] / jnp.sqrt(p["var"] + _BN_EPS)
    b = p["beta"] - p["mean"] * s
    y = y * s[None, :, None, None] + b[None, :, None, None]
    return y * jax.nn.sigmoid(y)


def elan1_reference(x, params):
    x1 = _ref_conv_bn_silu(x, params["cv1"], 1)
    x2 = _ref_conv_bn_silu(x, params["cv2"], 1)
    x3 = _ref_conv_bn_silu(_ref_conv_bn_silu(x2, params["cv3"], 3), params["cv4"], 3)
    x4 = _ref_conv_bn_silu(_ref_conv_bn_silu(x3, params["cv5"], 3), params["cv6"], 3)
    xc = jnp.concatenate([x1, x2, x3, x4], axis=1)
    return _ref_conv_bn_silu(xc, params["cv7"], 1)


# ---------------------------------------------------------------------------
def _init_conv_params(key, cin, cout, k):
    kw, kg, kb, km, kv = jax.random.split(key, 5)
    return dict(
        w=0.1 * jax.random.normal(kw, (cout, cin, k, k), jnp.float32),
        gamma=1.0 + 0.1 * jax.random.normal(kg, (cout,), jnp.float32),
        beta=0.1 * jax.random.normal(kb, (cout,), jnp.float32),
        mean=0.1 * jax.random.normal(km, (cout,), jnp.float32),
        var=0.5 + 0.1 * jnp.abs(jax.random.normal(kv, (cout,), jnp.float32)),
    )


if __name__ == "__main__":
    key = jax.random.PRNGKey(0)
    keys = jax.random.split(key, 8)

    N, c1, H, W = 2, 4, 16, 16
    c2 = 8
    e1 = e2 = 0.5
    h1 = int(c1 * e1)
    h2 = int(c1 * e2)

    x = jax.random.normal(keys[0], (N, c1, H, W), dtype=jnp.float32)
    params = {
        "cv1": _init_conv_params(keys[1], c1, h1, 1),
        "cv2": _init_conv_params(keys[2], c1, h1, 1),
        "cv3": _init_conv_params(keys[3], h1, h2, 3),
        "cv4": _init_conv_params(keys[4], h1, h2, 3),
        "cv5": _init_conv_params(keys[5], h2, h2, 3),
        "cv6": _init_conv_params(keys[6], h2, h2, 3),
        "cv7": _init_conv_params(keys[7], (h1 + h2) * 2, c2, 1),
    }

    out = jax.jit(elan1_forward)(x, params)
    out = jax.block_until_ready(out)

    ref = elan1_reference(x, params)
    assert out.shape == (N, c2, H, W)
    max_err = float(jnp.max(jnp.abs(out - ref)))
    # bf16 activations/weights through 5 stacked layers -> modest tolerance.
    assert jnp.allclose(out, ref, atol=5e-2, rtol=5e-2), max_err

    print("KERNEL_OK")
</pallas_src>

<mosaic_0001>
module attributes {stable_mosaic.version = 11 : i64} {
  func.func @_concat4_matmul_bias_silu_kernel(%arg0: i32, %arg1: memref<256x2xbf16, #tpu.memory_space<vmem>>, %arg2: memref<256x2xbf16, #tpu.memory_space<vmem>>, %arg3: memref<256x2xbf16, #tpu.memory_space<vmem>>, %arg4: memref<256x2xbf16, #tpu.memory_space<vmem>>, %arg5: memref<2x8xbf16, #tpu.memory_space<vmem>>, %arg6: memref<2x8xbf16, #tpu.memory_space<vmem>>, %arg7: memref<2x8xbf16, #tpu.memory_space<vmem>>, %arg8: memref<2x8xbf16, #tpu.memory_space<vmem>>, %arg9: memref<1x8xf32, #tpu.memory_space<vmem>>, %arg10: memref<256x8xf32, #tpu.memory_space<vmem>>) attributes {dimension_semantics = [#tpu.dimension_semantics<parallel>], iteration_bounds = array<i64: 2>, scalar_prefetch = 0 : i64, scratch_operands = 0 : i64, tpu.core_type = #tpu.core_type<tc>, window_params = [{transform_indices = @transform_0, window_bounds = array<i64: 256, 2>}, {transform_indices = @transform_1, window_bounds = array<i64: 256, 2>}, {transform_indices = @transform_2, window_bounds = array<i64: 256, 2>}, {transform_indices = @transform_3, window_bounds = array<i64: 256, 2>}, {pipeline_mode = #tpu.pipeline_mode<synchronous>, transform_indices = @transform_4, window_bounds = array<i64: 2, 8>}, {pipeline_mode = #tpu.pipeline_mode<synchronous>, transform_indices = @transform_5, window_bounds = array<i64: 2, 8>}, {pipeline_mode = #tpu.pipeline_mode<synchronous>, transform_indices = @transform_6, window_bounds = array<i64: 2, 8>}, {pipeline_mode = #tpu.pipeline_mode<synchronous>, transform_indices = @transform_7, window_bounds = array<i64: 2, 8>}, {pipeline_mode = #tpu.pipeline_mode<synchronous>, transform_indices = @transform_8, window_bounds = array<i64: 1, 8>}, {transform_indices = @transform_9, window_bounds = array<i64: 256, 8>}]} {
    %c0 = arith.constant 0 : index
    %c0_0 = arith.constant 0 : index
    %0 = vector.load %arg1[%c0, %c0_0] : memref<256x2xbf16, #tpu.memory_space<vmem>>, vector<256x2xbf16>
    %c0_1 = arith.constant 0 : index
    %c0_2 = arith.constant 0 : index
    %1 = vector.load %arg5[%c0_1, %c0_2] : memref<2x8xbf16, #tpu.memory_space<vmem>>, vector<2x8xbf16>
    %cst = arith.constant dense<0.000000e+00> : vector<256x8xf32>
    %2 = tpu.matmul %0, %1, %cst {dimension_numbers = #tpu.dot_dimension_numbers<[1], [0], [0], [1], [0, 0, 1, 1], [], []>} : vector<256x2xbf16>, vector<2x8xbf16>, vector<256x8xf32> -> vector<256x8xf32>
    %c0_3 = arith.constant 0 : index
    %c0_4 = arith.constant 0 : index
    %3 = vector.load %arg2[%c0_3, %c0_4] : memref<256x2xbf16, #tpu.memory_space<vmem>>, vector<256x2xbf16>
    %c0_5 = arith.constant 0 : index
    %c0_6 = arith.constant 0 : index
    %4 = vector.load %arg6[%c0_5, %c0_6] : memref<2x8xbf16, #tpu.memory_space<vmem>>, vector<2x8xbf16>
    %cst_7 = arith.constant dense<0.000000e+00> : vector<256x8xf32>
    %5 = tpu.matmul %3, %4, %cst_7 {dimension_numbers = #tpu.dot_dimension_numbers<[1], [0], [0], [1], [0, 0, 1, 1], [], []>} : vector<256x2xbf16>, vector<2x8xbf16>, vector<256x8xf32> -> vector<256x8xf32>
    %6 = arith.addf %2, %5 : vector<256x8xf32>
    %c0_8 = arith.constant 0 : index
    %c0_9 = arith.constant 0 : index
    %7 = vector.load %arg3[%c0_8, %c0_9] : memref<256x2xbf16, #tpu.memory_space<vmem>>, vector<256x2xbf16>
    %c0_10 = arith.constant 0 : index
    %c0_11 = arith.constant 0 : index
    %8 = vector.load %arg7[%c0_10, %c0_11] : memref<2x8xbf16, #tpu.memory_space<vmem>>, vector<2x8xbf16>
    %cst_12 = arith.constant dense<0.000000e+00> : vector<256x8xf32>
    %9 = tpu.matmul %7, %8, %cst_12 {dimension_numbers = #tpu.dot_dimension_numbers<[1], [0], [0], [1], [0, 0, 1, 1], [], []>} : vector<256x2xbf16>, vector<2x8xbf16>, vector<256x8xf32> -> vector<256x8xf32>
    %10 = arith.addf %6, %9 : vector<256x8xf32>
    %c0_13 = arith.constant 0 : index
    %c0_14 = arith.constant 0 : index
    %11 = vector.load %arg4[%c0_13, %c0_14] : memref<256x2xbf16, #tpu.memory_space<vmem>>, vector<256x2xbf16>
    %c0_15 = arith.constant 0 : index
    %c0_16 = arith.constant 0 : index
    %12 = vector.load %arg8[%c0_15, %c0_16] : memref<2x8xbf16, #tpu.memory_space<vmem>>, vector<2x8xbf16>
    %cst_17 = arith.constant dense<0.000000e+00> : vector<256x8xf32>
    %13 = tpu.matmul %11, %12, %cst_17 {dimension_numbers = #tpu.dot_dimension_numbers<[1], [0], [0], [1], [0, 0, 1, 1], [], []>} : vector<256x2xbf16>, vector<2x8xbf16>, vector<256x8xf32> -> vector<256x8xf32>
    %14 = arith.addf %10, %13 : vector<256x8xf32>
    %c0_18 = arith.constant 0 : index
    %c0_19 = arith.constant 0 : index
    %15 = vector.load %arg9[%c0_18, %c0_19] : memref<1x8xf32, #tpu.memory_space<vmem>>, vector<1x8xf32>
    %16 = vector.broadcast %15 : vector<1x8xf32> to vector<256x8xf32>
    %17 = arith.addf %14, %16 : vector<256x8xf32>
    %cst_20 = arith.constant 0.000000e+00 : f32
    %18 = vector.broadcast %cst_20 : f32 to vector<256x8xf32>
    %19 = arith.subf %18, %17 : vector<256x8xf32>
    %20 = math.exp %19 : vector<256x8xf32>
    %cst_21 = arith.constant 1.000000e+00 : f32
    %21 = vector.broadcast %cst_21 : f32 to vector<256x8xf32>
    %22 = arith.addf %21, %20 : vector<256x8xf32>
    %23 = tpu.reciprocal %22 {approx = true} : vector<256x8xf32> -> vector<256x8xf32>
    %24 = arith.mulf %17, %23 : vector<256x8xf32>
    %c0_22 = arith.constant 0 : index
    %c0_23 = arith.constant 0 : index
    %25 = vector.load %arg10[%c0_22, %c0_23] : memref<256x8xf32, #tpu.memory_space<vmem>>, vector<256x8xf32>
    tpu.vector_store %arg10[%c0_22, %c0_23], %24 {strides = array<i32>} : memref<256x8xf32, #tpu.memory_space<vmem>>, vector<256x8xf32>,
    return
  }
  func.func @transform_0(%arg0: i32) -> (i32, i32) {
    %c0_i32 = arith.constant 0 : i32
    %c0_i32_0 = arith.constant 0 : i32
    return %arg0, %c0_i32 : i32, i32
  }
  func.func @transform_1(%arg0: i32) -> (i32, i32) {
    %c0_i32 = arith.constant 0 : i32
    %c0_i32_0 = arith.constant 0 : i32
    return %arg0, %c0_i32 : i32, i32
  }
  func.func @transform_2(%arg0: i32) -> (i32, i32) {
    %c0_i32 = arith.constant 0 : i32
    %c0_i32_0 = arith.constant 0 : i32
    return %arg0, %c0_i32 : i32, i32
  }
  func.func @transform_3(%arg0: i32) -> (i32, i32) {
    %c0_i32 = arith.constant 0 : i32
    %c0_i32_0 = arith.constant 0 : i32
    return %arg0, %c0_i32 : i32, i32
  }
  func.func @transform_4(%arg0: i32) -> (i32, i32) {
    %c0_i32 = arith.constant 0 : i32
    %c0_i32_0 = arith.constant 0 : i32
    %c0_i32_1 = arith.constant 0 : i32
    return %c0_i32, %c0_i32_0 : i32, i32
  }
  func.func @transform_5(%arg0: i32) -> (i32, i32) {
    %c0_i32 = arith.constant 0 : i32
    %c0_i32_0 = arith.constant 0 : i32
    %c0_i32_1 = arith.constant 0 : i32
    return %c0_i32, %c0_i32_0 : i32, i32
  }
  func.func @transform_6(%arg0: i32) -> (i32, i32) {
    %c0_i32 = arith.constant 0 : i32
    %c0_i32_0 = arith.constant 0 : i32
    %c0_i32_1 = arith.constant 0 : i32
    return %c0_i32, %c0_i32_0 : i32, i32
  }
  func.func @transform_7(%arg0: i32) -> (i32, i32) {
    %c0_i32 = arith.constant 0 : i32
    %c0_i32_0 = arith.constant 0 : i32
    %c0_i32_1 = arith.constant 0 : i32
    return %c0_i32, %c0_i32_0 : i32, i32
  }
  func.func @transform_8(%arg0: i32) -> (i32, i32) {
    %c0_i32 = arith.constant 0 : i32
    %c0_i32_0 = arith.constant 0 : i32
    %c0_i32_1 = arith.constant 0 : i32
    return %c0_i32, %c0_i32_0 : i32, i32
  }
  func.func @transform_9(%arg0: i32) -> (i32, i32) {
    %c0_i32 = arith.constant 0 : i32
    %c0_i32_0 = arith.constant 0 : i32
    return %arg0, %c0_i32 : i32, i32
  }
}

module attributes {stable_mosaic.version = 11 : i64} {
  func.func @_matmul_bias_silu_kernel(%arg0: i32, %arg1: memref<256x4xbf16, #tpu.memory_space<vmem>>, %arg2: memref<4x2xbf16, #tpu.memory_space<vmem>>, %arg3: memref<1x2xf32, #tpu.memory_space<vmem>>, %arg4: memref<256x2xbf16, #tpu.memory_space<vmem>>) attributes {dimension_semantics = [#tpu.dimension_semantics<parallel>], iteration_bounds = array<i64: 2>, scalar_prefetch = 0 : i64, scratch_operands = 0 : i64, tpu.core_type = #tpu.core_type<tc>, window_params = [{transform_indices = @transform_0, window_bounds = array<i64: 256, 4>}, {pipeline_mode = #tpu.pipeline_mode<synchronous>, transform_indices = @transform_1, window_bounds = array<i64: 4, 2>}, {pipeline_mode = #tpu.pipeline_mode<synchronous>, transform_indices = @transform_2, window_bounds = array<i64: 1, 2>}, {transform_indices = @transform_3, window_bounds = array<i64: 256, 2>}]} {
    %c0 = arith.constant 0 : index
    %c0_0 = arith.constant 0 : index
    %0 = vector.load %arg1[%c0, %c0_0] : memref<256x4xbf16, #tpu.memory_space<vmem>>, vector<256x4xbf16>
    %c0_1 = arith.constant 0 : index
    %c0_2 = arith.constant 0 : index
    %1 = vector.load %arg2[%c0_1, %c0_2] : memref<4x2xbf16, #tpu.memory_space<vmem>>, vector<4x2xbf16>
    %cst = arith.constant dense<0.000000e+00> : vector<256x2xf32>
    %2 = tpu.matmul %0, %1, %cst {dimension_numbers = #tpu.dot_dimension_numbers<[1], [0], [0], [1], [0, 0, 1, 1], [], []>} : vector<256x4xbf16>, vector<4x2xbf16>, vector<256x2xf32> -> vector<256x2xf32>
    %c0_3 = arith.constant 0 : index
    %c0_4 = arith.constant 0 : index
    %3 = vector.load %arg3[%c0_3, %c0_4] : memref<1x2xf32, #tpu.memory_space<vmem>>, vector<1x2xf32>
    %4 = vector.broadcast %3 : vector<1x2xf32> to vector<256x2xf32>
    %5 = arith.addf %2, %4 : vector<256x2xf32>
    %cst_5 = arith.constant 0.000000e+00 : f32
    %6 = vector.broadcast %cst_5 : f32 to vector<256x2xf32>
    %7 = arith.subf %6, %5 : vector<256x2xf32>
    %8 = math.exp %7 : vector<256x2xf32>
    %cst_6 = arith.constant 1.000000e+00 : f32
    %9 = vector.broadcast %cst_6 : f32 to vector<256x2xf32>
    %10 = arith.addf %9, %8 : vector<256x2xf32>
    %11 = tpu.reciprocal %10 {approx = true} : vector<256x2xf32> -> vector<256x2xf32>
    %12 = arith.mulf %5, %11 : vector<256x2xf32>
    %13 = arith.truncf %12 : vector<256x2xf32> to vector<256x2xbf16>
    %c0_7 = arith.constant 0 : index
    %c0_8 = arith.constant 0 : index
    %14 = vector.load %arg4[%c0_7, %c0_8] : memref<256x2xbf16, #tpu.memory_space<vmem>>, vector<256x2xbf16>
    tpu.vector_store %arg4[%c0_7, %c0_8], %13 {strides = array<i32>} : memref<256x2xbf16, #tpu.memory_space<vmem>>, vector<256x2xbf16>,
    return
  }
  func.func @transform_0(%arg0: i32) -> (i32, i32) {
    %c0_i32 = arith.constant 0 : i32
    %c0_i32_0 = arith.constant 0 : i32
    return %arg0, %c0_i32 : i32, i32
  }
  func.func @transform_1(%arg0: i32) -> (i32, i32) {
    %c0_i32 = arith.constant 0 : i32
    %c0_i32_0 = arith.constant 0 : i32
    %c0_i32_1 = arith.constant 0 : i32
    return %c0_i32, %c0_i32_0 : i32, i32
  }
  func.func @transform_2(%arg0: i32) -> (i32, i32) {
    %c0_i32 = arith.constant 0 : i32
    %c0_i32_0 = arith.constant 0 : i32
    %c0_i32_1 = arith.constant 0 : i32
    return %c0_i32, %c0_i32_0 : i32, i32
  }
  func.func @transform_3(%arg0: i32) -> (i32, i32) {
    %c0_i32 = arith.constant 0 : i32
    %c0_i32_0 = arith.constant 0 : i32
    return %arg0, %c0_i32 : i32, i32
  }
}

module attributes {stable_mosaic.version = 11 : i64} {
  func.func @_conv3x3_bias_silu_kernel(%arg0: i32, %arg1: memref<1x18x18x2xbf16, #tpu.memory_space<vmem>>, %arg2: memref<9x2x2xbf16, #tpu.memory_space<vmem>>, %arg3: memref<1x2xf32, #tpu.memory_space<vmem>>, %arg4: memref<1x16x16x2xbf16, #tpu.memory_space<vmem>>) attributes {dimension_semantics = [#tpu.dimension_semantics<parallel>], iteration_bounds = array<i64: 2>, scalar_prefetch = 0 : i64, scratch_operands = 0 : i64, tpu.core_type = #tpu.core_type<tc>, window_params = [{transform_indices = @transform_0, window_bounds = array<i64: 1, 18, 18, 2>}, {pipeline_mode = #tpu.pipeline_mode<synchronous>, transform_indices = @transform_1, window_bounds = array<i64: 9, 2, 2>}, {pipeline_mode = #tpu.pipeline_mode<synchronous>, transform_indices = @transform_2, window_bounds = array<i64: 1, 2>}, {transform_indices = @transform_3, window_bounds = array<i64: 1, 16, 16, 2>}]} {
    %c0 = arith.constant 0 : index
    %c0_0 = arith.constant 0 : index
    %c0_1 = arith.constant 0 : index
    %c0_2 = arith.constant 0 : index
    %0 = vector.load %arg1[%c0, %c0_0, %c0_1, %c0_2] : memref<1x18x18x2xbf16, #tpu.memory_space<vmem>>, vector<1x18x18x2xbf16>
    %1 = vector.shape_cast %0 : vector<1x18x18x2xbf16> to vector<18x18x2xbf16>
    %cst = arith.constant 0.000000e+00 : f32
    %2 = vector.broadcast %cst : f32 to vector<256x2xf32>
    %3 = vector.extract_strided_slice %1 {offsets = [0, 0, 0], sizes = [16, 16, 2], strides = [1, 1, 1]} : vector<18x18x2xbf16> to vector<16x16x2xbf16>
    %4 = vector.shape_cast %3 : vector<16x16x2xbf16> to vector<256x2xbf16>
    %c0_3 = arith.constant 0 : index
    %c0_4 = arith.constant 0 : index
    %c0_5 = arith.constant 0 : index
    %5 = vector.load %arg2[%c0_3, %c0_4, %c0_5] : memref<9x2x2xbf16, #tpu.memory_space<vmem>>, vector<1x2x2xbf16>
    %6 = vector.shape_cast %5 : vector<1x2x2xbf16> to vector<2x2xbf16>
    %cst_6 = arith.constant dense<0.000000e+00> : vector<256x2xf32>
    %7 = tpu.matmul %4, %6, %cst_6 {dimension_numbers = #tpu.dot_dimension_numbers<[1], [0], [0], [1], [0, 0, 1, 1], [], []>} : vector<256x2xbf16>, vector<2x2xbf16>, vector<256x2xf32> -> vector<256x2xf32>
    %8 = arith.addf %2, %7 : vector<256x2xf32>
    %9 = vector.extract_strided_slice %1 {offsets = [0, 1, 0], sizes = [16, 16, 2], strides = [1, 1, 1]} : vector<18x18x2xbf16> to vector<16x16x2xbf16>
    %10 = vector.shape_cast %9 : vector<16x16x2xbf16> to vector<256x2xbf16>
    %c1 = arith.constant 1 : index
    %c0_7 = arith.constant 0 : index
    %c0_8 = arith.constant 0 : index
    %11 = vector.load %arg2[%c1, %c0_7, %c0_8] : memref<9x2x2xbf16, #tpu.memory_space<vmem>>, vector<1x2x2xbf16>
    %12 = vector.shape_cast %11 : vector<1x2x2xbf16> to vector<2x2xbf16>
    %cst_9 = arith.constant dense<0.000000e+00> : vector<256x2xf32>
    %13 = tpu.matmul %10, %12, %cst_9 {dimension_numbers = #tpu.dot_dimension_numbers<[1], [0], [0], [1], [0, 0, 1, 1], [], []>} : vector<256x2xbf16>, vector<2x2xbf16>, vector<256x2xf32> -> vector<256x2xf32>
    %14 = arith.addf %8, %13 : vector<256x2xf32>
    %15 = vector.extract_strided_slice %1 {offsets = [0, 2, 0], sizes = [16, 16, 2], strides = [1, 1, 1]} : vector<18x18x2xbf16> to vector<16x16x2xbf16>
    %16 = vector.shape_cast %15 : vector<16x16x2xbf16> to vector<256x2xbf16>
    %c2 = arith.constant 2 : index
    %c0_10 = arith.constant 0 : index
    %c0_11 = arith.constant 0 : index
    %17 = vector.load %arg2[%c2, %c0_10, %c0_11] : memref<9x2x2xbf16, #tpu.memory_space<vmem>>, vector<1x2x2xbf16>
    %18 = vector.shape_cast %17 : vector<1x2x2xbf16> to vector<2x2xbf16>
    %cst_12 = arith.constant dense<0.000000e+00> : vector<256x2xf32>
    %19 = tpu.matmul %16, %18, %cst_12 {dimension_numbers = #tpu.dot_dimension_numbers<[1], [0], [0], [1], [0, 0, 1, 1], [], []>} : vector<256x2xbf16>, vector<2x2xbf16>, vector<256x2xf32> -> vector<256x2xf32>
    %20 = arith.addf %14, %19 : vector<256x2xf32>
    %21 = vector.extract_strided_slice %1 {offsets = [1, 0, 0], sizes = [16, 16, 2], strides = [1, 1, 1]} : vector<18x18x2xbf16> to vector<16x16x2xbf16>
    %22 = vector.shape_cast %21 : vector<16x16x2xbf16> to vector<256x2xbf16>
    %c3 = arith.constant 3 : index
    %c0_13 = arith.constant 0 : index
    %c0_14 = arith.constant 0 : index
    %23 = vector.load %arg2[%c3, %c0_13, %c0_14] : memref<9x2x2xbf16, #tpu.memory_space<vmem>>, vector<1x2x2xbf16>
    %24 = vector.shape_cast %23 : vector<1x2x2xbf16> to vector<2x2xbf16>
    %cst_15 = arith.constant dense<0.000000e+00> : vector<256x2xf32>
    %25 = tpu.matmul %22, %24, %cst_15 {dimension_numbers = #tpu.dot_dimension_numbers<[1], [0], [0], [1], [0, 0, 1, 1], [], []>} : vector<256x2xbf16>, vector<2x2xbf16>, vector<256x2xf32> -> vector<256x2xf32>
    %26 = arith.addf %20, %25 : vector<256x2xf32>
    %27 = vector.extract_strided_slice %1 {offsets = [1, 1, 0], sizes = [16, 16, 2], strides = [1, 1, 1]} : vector<18x18x2xbf16> to vector<16x16x2xbf16>
    %28 = vector.shape_cast %27 : vector<16x16x2xbf16> to vector<256x2xbf16>
    %c4 = arith.constant 4 : index
    %c0_16 = arith.constant 0 : index
    %c0_17 = arith.constant 0 : index
    %29 = vector.load %arg2[%c4, %c0_16, %c0_17] : memref<9x2x2xbf16, #tpu.memory_space<vmem>>, vector<1x2x2xbf16>
    %30 = vector.shape_cast %29 : vector<1x2x2xbf16> to vector<2x2xbf16>
    %cst_18 = arith.constant dense<0.000000e+00> : vector<256x2xf32>
    %31 = tpu.matmul %28, %30, %cst_18 {dimension_numbers = #tpu.dot_dimension_numbers<[1], [0], [0], [1], [0, 0, 1, 1], [], []>} : vector<256x2xbf16>, vector<2x2xbf16>, vector<256x2xf32> -> vector<256x2xf32>
    %32 = arith.addf %26, %31 : vector<256x2xf32>
    %33 = vector.extract_strided_slice %1 {offsets = [1, 2, 0], sizes = [16, 16, 2], strides = [1, 1, 1]} : vector<18x18x2xbf16> to vector<16x16x2xbf16>
    %34 = vector.shape_cast %33 : vector<16x16x2xbf16> to vector<256x2xbf16>
    %c5 = arith.constant 5 : index
    %c0_19 = arith.constant 0 : index
    %c0_20 = arith.constant 0 : index
    %35 = vector.load %arg2[%c5, %c0_19, %c0_20] : memref<9x2x2xbf16, #tpu.memory_space<vmem>>, vector<1x2x2xbf16>
    %36 = vector.shape_cast %35 : vector<1x2x2xbf16> to vector<2x2xbf16>
    %cst_21 = arith.constant dense<0.000000e+00> : vector<256x2xf32>
    %37 = tpu.matmul %34, %36, %cst_21 {dimension_numbers = #tpu.dot_dimension_numbers<[1], [0], [0], [1], [0, 0, 1, 1], [], []>} : vector<256x2xbf16>, vector<2x2xbf16>, vector<256x2xf32> -> vector<256x2xf32>
    %38 = arith.addf %32, %37 : vector<256x2xf32>
    %39 = vector.extract_strided_slice %1 {offsets = [2, 0, 0], sizes = [16, 16, 2], strides = [1, 1, 1]} : vector<18x18x2xbf16> to vector<16x16x2xbf16>
    %40 = vector.shape_cast %39 : vector<16x16x2xbf16> to vector<256x2xbf16>
    %c6 = arith.constant 6 : index
    %c0_22 = arith.constant 0 : index
    %c0_23 = arith.constant 0 : index
    %41 = vector.load %arg2[%c6, %c0_22, %c0_23] : memref<9x2x2xbf16, #tpu.memory_space<vmem>>, vector<1x2x2xbf16>
    %42 = vector.shape_cast %41 : vector<1x2x2xbf16> to vector<2x2xbf16>
    %cst_24 = arith.constant dense<0.000000e+00> : vector<256x2xf32>
    %43 = tpu.matmul %40, %42, %cst_24 {dimension_numbers = #tpu.dot_dimension_numbers<[1], [0], [0], [1], [0, 0, 1, 1], [], []>} : vector<256x2xbf16>, vector<2x2xbf16>, vector<256x2xf32> -> vector<256x2xf32>
    %44 = arith.addf %38, %43 : vector<256x2xf32>
    %45 = vector.extract_strided_slice %1 {offsets = [2, 1, 0], sizes = [16, 16, 2], strides = [1, 1, 1]} : vector<18x18x2xbf16> to vector<16x16x2xbf16>
    %46 = vector.shape_cast %45 : vector<16x16x2xbf16> to vector<256x2xbf16>
    %c7 = arith.constant 7 : index
    %c0_25 = arith.constant 0 : index
    %c0_26 = arith.constant 0 : index
    %47 = vector.load %arg2[%c7, %c0_25, %c0_26] : memref<9x2x2xbf16, #tpu.memory_space<vmem>>, vector<1x2x2xbf16>
    %48 = vector.shape_cast %47 : vector<1x2x2xbf16> to vector<2x2xbf16>
    %cst_27 = arith.constant dense<0.000000e+00> : vector<256x2xf32>
    %49 = tpu.matmul %46, %48, %cst_27 {dimension_numbers = #tpu.dot_dimension_numbers<[1], [0], [0], [1], [0, 0, 1, 1], [], []>} : vector<256x2xbf16>, vector<2x2xbf16>, vector<256x2xf32> -> vector<256x2xf32>
    %50 = arith.addf %44, %49 : vector<256x2xf32>
    %51 = vector.extract_strided_slice %1 {offsets = [2, 2, 0], sizes = [16, 16, 2], strides = [1, 1, 1]} : vector<18x18x2xbf16> to vector<16x16x2xbf16>
    %52 = vector.shape_cast %51 : vector<16x16x2xbf16> to vector<256x2xbf16>
    %c8 = arith.constant 8 : index
    %c0_28 = arith.constant 0 : index
    %c0_29 = arith.constant 0 : index
    %53 = vector.load %arg2[%c8, %c0_28, %c0_29] : memref<9x2x2xbf16, #tpu.memory_space<vmem>>, vector<1x2x2xbf16>
    %54 = vector.shape_cast %53 : vector<1x2x2xbf16> to vector<2x2xbf16>
    %cst_30 = arith.constant dense<0.000000e+00> : vector<256x2xf32>
    %55 = tpu.matmul %52, %54, %cst_30 {dimension_numbers = #tpu.dot_dimension_numbers<[1], [0], [0], [1], [0, 0, 1, 1], [], []>} : vector<256x2xbf16>, vector<2x2xbf16>, vector<256x2xf32> -> vector<256x2xf32>
    %56 = arith.addf %50, %55 : vector<256x2xf32>
    %c0_31 = arith.constant 0 : index
    %c0_32 = arith.constant 0 : index
    %57 = vector.load %arg3[%c0_31, %c0_32] : memref<1x2xf32, #tpu.memory_space<vmem>>, vector<1x2xf32>
    %58 = vector.broadcast %57 : vector<1x2xf32> to vector<256x2xf32>
    %59 = arith.addf %56, %58 : vector<256x2xf32>
    %cst_33 = arith.constant 0.000000e+00 : f32
    %60 = vector.broadcast %cst_33 : f32 to vector<256x2xf32>
    %61 = arith.subf %60, %59 : vector<256x2xf32>
    %62 = math.exp %61 : vector<256x2xf32>
    %cst_34 = arith.constant 1.000000e+00 : f32
    %63 = vector.broadcast %cst_34 : f32 to vector<256x2xf32>
    %64 = arith.addf %63, %62 : vector<256x2xf32>
    %65 = tpu.reciprocal %64 {approx = true} : vector<256x2xf32> -> vector<256x2xf32>
    %66 = arith.mulf %59, %65 : vector<256x2xf32>
    %67 = vector.shape_cast %66 : vector<256x2xf32> to vector<16x16x2xf32>
    %68 = arith.truncf %67 : vector<16x16x2xf32> to vector<16x16x2xbf16>
    %c0_35 = arith.constant 0 : index
    %c0_36 = arith.constant 0 : index
    %c0_37 = arith.constant 0 : index
    %c0_38 = arith.constant 0 : index
    %69 = vector.load %arg4[%c0_35, %c0_36, %c0_37, %c0_38] : memref<1x16x16x2xbf16, #tpu.memory_space<vmem>>, vector<1x16x16x2xbf16>
    %70 = vector.shape_cast %69 : vector<1x16x16x2xbf16> to vector<16x16x2xbf16>
    %71 = vector.shape_cast %68 : vector<16x16x2xbf16> to vector<1x16x16x2xbf16>
    tpu.vector_store %arg4[%c0_35, %c0_36, %c0_37, %c0_38], %71 {strides = array<i32>} : memref<1x16x16x2xbf16, #tpu.memory_space<vmem>>, vector<1x16x16x2xbf16>,
    return
  }
  func.func @transform_0(%arg0: i32) -> (i32, i32, i32, i32) {
    %c0_i32 = arith.constant 0 : i32
    %c0_i32_0 = arith.constant 0 : i32
    %c0_i32_1 = arith.constant 0 : i32
    %c0_i32_2 = arith.constant 0 : i32
    return %arg0, %c0_i32, %c0_i32_0, %c0_i32_1 : i32, i32, i32, i32
  }
  func.func @transform_1(%arg0: i32) -> (i32, i32, i32) {
    %c0_i32 = arith.constant 0 : i32
    %c0_i32_0 = arith.constant 0 : i32
    %c0_i32_1 = arith.constant 0 : i32
    %c0_i32_2 = arith.constant 0 : i32
    return %c0_i32, %c0_i32_0, %c0_i32_1 : i32, i32, i32
  }
  func.func @transform_2(%arg0: i32) -> (i32, i32) {
    %c0_i32 = arith.constant 0 : i32
    %c0_i32_0 = arith.constant 0 : i32
    %c0_i32_1 = arith.constant 0 : i32
    return %c0_i32, %c0_i32_0 : i32, i32
  }
  func.func @transform_3(%arg0: i32) -> (i32, i32, i32, i32) {
    %c0_i32 = arith.constant 0 : i32
    %c0_i32_0 = arith.constant 0 : i32
    %c0_i32_1 = arith.constant 0 : i32
    %c0_i32_2 = arith.constant 0 : i32
    return %arg0, %c0_i32, %c0_i32_0, %c0_i32_1 : i32, i32, i32, i32
  }
}

</mosaic_0001>

<bundles_post_ra>
// kernel: elan1_forward.8
= control target key start
LH: loop header
LB: loop body
LE: loop exit
PB: predicated region body
PF: predicated region fallthrough
CT: control target
= control target key end

     0   :  { %s1261_s12 = smov 0   ;;  %s1574_s0 = inlined_call_operand.vmem [shape: bf16[512,4], index: 0, kind: input, shape index: {}]   ;;  %s1575_s1 = inlined_call_operand.vmem [shape: bf16[4,2], index: 1, kind: input, shape index: {}]   ;;  %s1576_s2 = inlined_call_operand.vmem [shape: f32[1,2], index: 2, kind: input, shape index: {}]   ;;  %s1577_s3 = inlined_call_operand.vmem [shape: bf16[512,2], index: 3, kind: output, shape index: {}]  }
   0x1 LB: > { %s918_s13 = sadd.s32 4294967295, %s1239_s12   ;;  %p922_p0 = scmp.ge.s32.totalorder %s1239_s12, 1  ;;  %s1239_s12 = sphi %s1261_s12, %s13_s12  }
   0x2   : > { %p138_p1 = scmp.lt.s32.totalorder %s1239_s12, 3 }
   0x4   : > { %p139_p2 = pnand %p922_p0, %p138_p1 }
   0x5   : > { %s923_s16 = sshll.u32 (!%p139_p2), %s918_s13, 5 }
   0x6   : > { %142 = sbr.rel (%p139_p2) target bundleno = 297 (0x129), region = 32  ;;  %p163_p3 = scmp.lt.s32.totalorder (!%p139_p2), %s923_s16, 63 }
   0xb   : > { %v207_v0 = vld [vmem:[%s1575_s1] sm:$0x3]  ;;  %vm344_vm0 = vcmask 1041408   ;;  %s1579_s16 = smov (!%p163_p3, %s923_s16), 63  ;;  %vm295_vm1 = vcmask 31744   ;;  %vm829_vm2 = vcmask 11264  }
   0xc   : > { %1079 = vmatprep.subr.msk.bf16.mxu0 %vm344_vm0, %v207_v0  ;;  %1080 = vmatprep.subr.msk.bf16.mxu1 %vm344_vm0, %v207_v0  ;;  %v346_v1 = vsel %vm344_vm0, %v207_v0, 0  ;;  %s924_s17 = sshll.u32 %s1579_s16, 2  ;;  %v1317_v18 = vld [vmem:[%s1576_s2] ss:$0 sm:$0xff] }
   0xd   : > { %1044 = vmatpush3.bf16.msra.mxu0 %v346_v1  ;;  %1078 = vmatpush3.bf16.msra.mxu1 %v346_v1  ;;  %s1280_s20 = scalar_lea.vmem %s1574_s0, %s924_s17  ;;  %s1447_s25 = scalar_lea.vmem %s1577_s3, %s924_s17 }
   0xe   : > { %v1089_v2 = vld [vmem:[%s1280_s20] sm:$0xff]   ;;  %v1091_v4 = vld [vmem:[%s1280_s20 + $0x8] sm:$0xff]   ;;  %v1093_v6 = vld [vmem:[%s1280_s20 + $0x10] sm:$0xff]  }
   0xf   : > { %v1090_v3 = vld [vmem:[%s1280_s20 + $0x40] sm:$0xff]   ;;  %1045 = vmatprep.mubr.msk.bf16.mxu0 %vm295_vm1, %v1089_v2  ;;  %v1092_v5 = vld [vmem:[%s1280_s20 + $0x48] sm:$0xff]   ;;  %v1094_v7 = vld [vmem:[%s1280_s20 + $0x50] sm:$0xff]  }
  0x10   : > { %1061 = vmatprep.mubr.msk.bf16.mxu1 %vm295_vm1, %v1090_v3  ;;  %1046 = vmatmul.mubr.msk.bf16.vlgmr.msra.gmra.mxu0 %vm295_vm1, %v1091_v4  ;;  %v1095_v8 = vld [vmem:[%s1280_s20 + $0x18] sm:$0xff]   ;;  %v1097_v10 = vld [vmem:[%s1280_s20 + $0x20] sm:$0xff]   ;;  %v1099_v12 = vld [vmem:[%s1280_s20 + $0x28] sm:$0xff]  }
  0x11   : > { %1062 = vmatmul.mubr.msk.bf16.vlgmr.msra.gmra.mxu1 %vm295_vm1, %v1092_v5  ;;  %1049 = vmatprep.mubr.msk.bf16.mxu0 %vm295_vm1, %v1093_v6  ;;  %v1096_v9 = vld [vmem:[%s1280_s20 + $0x58] sm:$0xff]   ;;  %v1098_v11 = vld [vmem:[%s1280_s20 + $0x60] sm:$0xff]   ;;  %v1100_v13 = vld [vmem:[%s1280_s20 + $0x68] sm:$0xff]  }
  0x12   : > { %1065 = vmatprep.mubr.msk.bf16.mxu1 %vm295_vm1, %v1094_v7  ;;  %v1101_v14 = vld [vmem:[%s1280_s20 + $0x30] sm:$0xff]   ;;  %v1103_v16 = vld [vmem:[%s1280_s20 + $0x38] sm:$0xff]  }
  0x13   : > { %v1102_v15 = vld [vmem:[%s1280_s20 + $0x70] sm:$0xff]   ;;  %v1104_v17 = vld [vmem:[%s1280_s20 + $0x78] sm:$0xff]  }
  0x18   : > { %1050 = vmatmul.mubr.msk.bf16.gmra.mxu0 %vm295_vm1, %v1095_v8 }
  0x19   : > { %1066 = vmatmul.mubr.msk.bf16.gmra.mxu1 %vm295_vm1, %v1096_v9  ;;  %1053 = vmatprep.mubr.msk.bf16.mxu0 %vm295_vm1, %v1097_v10 }
  0x1a   : > { %1069 = vmatprep.mubr.msk.bf16.mxu1 %vm295_vm1, %v1098_v11 }
  0x20   : > { %1054 = vmatmul.mubr.msk.bf16.gmra.mxu0 %vm295_vm1, %v1099_v12 }
  0x21   : > { %1070 = vmatmul.mubr.msk.bf16.gmra.mxu1 %vm295_vm1, %v1100_v13  ;;  %1057 = vmatprep.mubr.msk.bf16.mxu0 %vm295_vm1, %v1101_v14 }
  0x22   : > { %1073 = vmatprep.mubr.msk.bf16.mxu1 %vm295_vm1, %v1102_v15 }
  0x28   : > { %1058 = vmatmul.mubr.msk.bf16.gmra.mxu0 %vm295_vm1, %v1103_v16 }
  0x29   : > { %1074 = vmatmul.mubr.msk.bf16.gmra.mxu1 %vm295_vm1, %v1104_v17 }
  0xd0   : > { %v1047_v19 = vpop.f32.mrf.mxu0 }
  0xd1   : > { %v1320_v20 = vadd.f32 %v1047_v19, %v1317_v18  ;;  %v1063_v21 = vpop.f32.mrf.mxu1 }
  0xd2   : > { %v1323_v22 = vadd.f32 %v1063_v21, %v1317_v18  ;;  %v382_v23 = vpop.f32.mrf.mxu0 }
  0xd3   : > { %v511_v24 = vsub.f32 0.0, %v1320_v20  ;;  %v1327_v25 = vadd.f32 %v1317_v18, %v382_v23  ;;  %v446_v26 = vpop.f32.mrf.mxu1 }
  0xd4   : > { %v527_v27 = vsub.f32 0.0, %v1323_v22  ;;  %v1331_v28 = vadd.f32 %v1317_v18, %v446_v26  ;;  %v1048_v29 = vpop.f32.mrf.mxu0 }
  0xd5   : > { %v545_v30 = vmul.f32 1.442695, %v511_v24  ;;  %v509_v31 = vsub.f32 0.0, %v1327_v25  ;;  %v1335_v32 = vadd.f32 %v1048_v29, %v1317_v18  ;;  %v1064_v33 = vpop.f32.mrf.mxu1 }
  0xd6   : > { %v577_v34 = vmul.f32 1.442695, %v527_v27  ;;  %v525_v35 = vsub.f32 0.0, %v1331_v28  ;;  %v1339_v36 = vadd.f32 %v1064_v33, %v1317_v18  ;;  %v385_v37 = vpop.f32.mrf.mxu0 }
  0xd7   : > { %1105 = vpow2.f32 %v545_v30  ;;  %v541_v38 = vmul.f32 1.442695, %v509_v31  ;;  %v512_v39 = vsub.f32 0.0, %v1335_v32  ;;  %v1343_v40 = vadd.f32 %v1317_v18, %v385_v37  ;;  %v449_v41 = vpop.f32.mrf.mxu1 }
  0xd8   : > { %1107 = vpow2.f32 %v577_v34  ;;  %v573_v42 = vmul.f32 1.442695, %v525_v35  ;;  %v528_v43 = vsub.f32 0.0, %v1339_v36  ;;  %v1347_v44 = vadd.f32 %v1317_v18, %v449_v41  ;;  %v1051_v45 = vpop.f32.mrf.mxu0 }
  0xd9   : > { %1109 = vpow2.f32 %v541_v38  ;;  %v547_v46 = vmul.f32 1.442695, %v512_v39  ;;  %v510_v47 = vsub.f32 0.0, %v1343_v40  ;;  %v1351_v48 = vadd.f32 %v1051_v45, %v1317_v18  ;;  %v1067_v49 = vpop.f32.mrf.mxu1 }
  0xda   : > { %1111 = vpow2.f32 %v573_v42  ;;  %v579_v50 = vmul.f32 1.442695, %v528_v43  ;;  %v526_v51 = vsub.f32 0.0, %v1347_v44  ;;  %v1355_v52 = vadd.f32 %v1067_v49, %v1317_v18  ;;  %v398_v53 = vpop.f32.mrf.mxu0 }
  0xdb   : > { %1113 = vpow2.f32 %v547_v46  ;;  %v543_v54 = vmul.f32 1.442695, %v510_v47  ;;  %v515_v55 = vsub.f32 0.0, %v1351_v48  ;;  %v1359_v56 = vadd.f32 %v1317_v18, %v398_v53  ;;  %v462_v57 = vpop.f32.mrf.mxu1 }
  0xdc   : > { %1115 = vpow2.f32 %v579_v50  ;;  %v575_v58 = vmul.f32 1.442695, %v526_v51  ;;  %v531_v59 = vsub.f32 0.0, %v1355_v52  ;;  %v1363_v60 = vadd.f32 %v1317_v18, %v462_v57  ;;  %v1052_v61 = vpop.f32.mrf.mxu0 }
  0xdd   : > { %1117 = vpow2.f32 %v543_v54  ;;  %v553_v62 = vmul.f32 1.442695, %v515_v55  ;;  %v513_v63 = vsub.f32 0.0, %v1359_v56  ;;  %v1367_v0 = vadd.f32 %v1052_v61, %v1317_v18  ;;  %v1068_v1 = vpop.f32.mrf.mxu1 }
  0xde   : > { %1119 = vpow2.f32 %v575_v58  ;;  %v585_v2 = vmul.f32 1.442695, %v531_v59  ;;  %v529_v3 = vsub.f32 0.0, %v1363_v60  ;;  %v1371_v4 = vadd.f32 %v1068_v1, %v1317_v18  ;;  %v401_v5 = vpop.f32.mrf.mxu0 }
  0xdf   : > { %1121 = vpow2.f32 %v553_v62  ;;  %v549_v6 = vmul.f32 1.442695, %v513_v63  ;;  %v516_v7 = vsub.f32 0.0, %v1367_v0  ;;  %v1375_v8 = vadd.f32 %v1317_v18, %v401_v5  ;;  %v465_v9 = vpop.f32.mrf.mxu1 }
  0xe0   : > { %1123 = vpow2.f32 %v585_v2  ;;  %v581_v10 = vmul.f32 1.442695, %v529_v3  ;;  %v532_v11 = vsub.f32 0.0, %v1371_v4  ;;  %v1379_v12 = vadd.f32 %v1317_v18, %v465_v9  ;;  %v1055_v13 = vpop.f32.mrf.mxu0 }
  0xe1   : > { %1125 = vpow2.f32 %v549_v6  ;;  %v555_v14 = vmul.f32 1.442695, %v516_v7  ;;  %v514_v15 = vsub.f32 0.0, %v1375_v8  ;;  %v1383_v16 = vadd.f32 %v1055_v13, %v1317_v18  ;;  %v1071_v17 = vpop.f32.mrf.mxu1 }
  0xe2   : > { %1127 = vpow2.f32 %v581_v10  ;;  %v587_v19 = vmul.f32 1.442695, %v532_v11  ;;  %v530_v21 = vsub.f32 0.0, %v1379_v12  ;;  %v1387_v23 = vadd.f32 %v1071_v17, %v1317_v18  ;;  %v414_v24 = vpop.f32.mrf.mxu0 }
  0xe3   : > { %1129 = vpow2.f32 %v555_v14  ;;  %v551_v26 = vmul.f32 1.442695, %v514_v15  ;;  %v1390_v27 = vadd.f32 %v1317_v18, %v414_v24  ;;  %v478_v29 = vpop.f32.mrf.mxu1  ;;  %v519_v38 = vsub.f32 0.0, %v1383_v16 }
  0xe4   : > { %v1106_v30 = vpop.eup %1105  ;;  %1131 = vpow2.f32 %v587_v19  ;;  %v583_v31 = vmul.f32 1.442695, %v530_v21  ;;  %v1393_v33 = vadd.f32 %v1317_v18, %v478_v29  ;;  %v1056_v34 = vpop.f32.mrf.mxu0  ;;  %v535_v43 = vsub.f32 0.0, %v1387_v23 }
  0xe5   : > { %v1108_v35 = vpop.eup %1107  ;;  %v607_v37 = vadd.f32 1.0, %v1106_v30  ;;  %1133 = vpow2.f32 %v551_v26  ;;  %v1072_v39 = vpop.f32.mrf.mxu1  ;;  %v517_v49 = vsub.f32 0.0, %v1390_v27  ;;  %v1399_v59 = vmul.f32 1.442695, %v519_v38 }
  0xe6   : > { %v1110_v41 = vpop.eup %1109  ;;  %v623_v42 = vadd.f32 1.0, %v1108_v35  ;;  %1135 = vpow2.f32 %v583_v31  ;;  %v417_v45 = vpop.f32.mrf.mxu0  ;;  %v533_v54 = vsub.f32 0.0, %v1393_v33  ;;  %v1402_v61 = vadd.f32 %v1056_v34, %v1317_v18 }
  0xe7   : > { %v1112_v46 = vpop.eup %1111  ;;  %1137 = vrcp.f32 %v607_v37  ;;  %v605_v47 = vadd.f32 1.0, %v1110_v41  ;;  %v481_v50 = vpop.f32.mrf.mxu1  ;;  %v1404_v2 = vmul.f32 1.442695, %v535_v43  ;;  %v1407_v3 = vadd.f32 %v1072_v39, %v1317_v18 }
  0xe8   : > { %v1114_v51 = vpop.eup %1113  ;;  %1139 = vrcp.f32 %v623_v42  ;;  %v621_v53 = vadd.f32 1.0, %v1112_v46  ;;  %v1059_v55 = vpop.f32.mrf.mxu0  ;;  %v1409_v7 = vmul.f32 1.442695, %v517_v49  ;;  %v1412_v9 = vadd.f32 %v1317_v18, %v417_v45 }
  0xe9   : > { %v1116_v57 = vpop.eup %1115  ;;  %1141 = vrcp.f32 %v605_v47  ;;  %v608_v58 = vadd.f32 1.0, %v1114_v51  ;;  %v1075_v62 = vpop.f32.mrf.mxu1  ;;  %v1414_v13 = vmul.f32 1.442695, %v533_v54  ;;  %v1417_v14 = vadd.f32 %v1317_v18, %v481_v50 }
  0xea   : > { %v1118_v63 = vpop.eup %1117  ;;  %1143 = vrcp.f32 %v621_v53  ;;  %v624_v1 = vadd.f32 1.0, %v1116_v57  ;;  %v430_v15 = vpop.f32.mrf.mxu0  ;;  %v520_v21 = vsub.f32 0.0, %v1402_v61  ;;  %v1421_v24 = vadd.f32 %v1059_v55, %v1317_v18 }
  0xeb   : > { %v1120_v5 = vpop.eup %1119  ;;  %1145 = vrcp.f32 %v608_v58  ;;  %v606_v6 = vadd.f32 1.0, %v1118_v63  ;;  %v494_v26 = vpop.f32.mrf.mxu1  ;;  %v536_v31 = vsub.f32 0.0, %v1407_v3  ;;  %v1425_v34 = vadd.f32 %v1075_v62, %v1317_v18 }
  0xec   : > { %v1122_v10 = vpop.eup %1121  ;;  %1147 = vrcp.f32 %v624_v1  ;;  %v622_v11 = vadd.f32 1.0, %v1120_v5  ;;  %v518_v38 = vsub.f32 0.0, %v1412_v9  ;;  %v1429_v39 = vadd.f32 %v1317_v18, %v430_v15  ;;  %v1060_v57 = vpop.f32.mrf.mxu0 }
  0xed   : > { %v1124_v17 = vpop.eup %1123  ;;  %1149 = vrcp.f32 %v606_v6  ;;  %v611_v19 = vadd.f32 1.0, %v1122_v10  ;;  %v534_v43 = vsub.f32 0.0, %v1417_v14  ;;  %v1433_v45 = vadd.f32 %v1317_v18, %v494_v26  ;;  %v1076_v5 = vpop.f32.mrf.mxu1 }
  0xee   : > { %v1126_v29 = vpop.eup %1125  ;;  %1151 = vrcp.f32 %v622_v11  ;;  %v627_v30 = vadd.f32 1.0, %v1124_v17  ;;  %v523_v49 = vsub.f32 0.0, %v1421_v24  ;;  %v539_v50 = vsub.f32 0.0, %v1425_v34 }
  0xef   : > { %v1128_v35 = vpop.eup %1127  ;;  %1153 = vrcp.f32 %v611_v19  ;;  %v609_v37 = vadd.f32 1.0, %v1126_v29  ;;  %v563_v54 = vmul.f32 1.442695, %v520_v21  ;;  %v521_v55 = vsub.f32 0.0, %v1429_v39 }
  0xf0   : > { %v1130_v41 = vpop.eup %1129  ;;  %1155 = vrcp.f32 %v627_v30  ;;  %v625_v42 = vadd.f32 1.0, %v1128_v35  ;;  %v595_v63 = vmul.f32 1.442695, %v536_v31  ;;  %v537_v1 = vsub.f32 0.0, %v1433_v45 }
  0xf1   : > { %v1132_v46 = vpop.eup %1131  ;;  %1157 = vrcp.f32 %v609_v37  ;;  %v612_v47 = vadd.f32 1.0, %v1130_v41  ;;  %v559_v11 = vmul.f32 1.442695, %v518_v38  ;;  %v591_v15 = vmul.f32 1.442695, %v534_v43  ;;  %v497_v43 = vpop.f32.mrf.mxu1 }
  0xf2   : > { %v1134_v51 = vpop.eup %1133  ;;  %1159 = vrcp.f32 %v625_v42  ;;  %v628_v53 = vadd.f32 1.0, %v1132_v46  ;;  %v569_v21 = vmul.f32 1.442695, %v523_v49  ;;  %v1440_v26 = vmul.f32 1.442695, %v539_v50 }
  0xf3   : > { %v1136_v58 = vpop.eup %1135  ;;  %1161 = vrcp.f32 %v612_v47  ;;  %v610_v62 = vadd.f32 1.0, %v1134_v51  ;;  %v1450_v31 = vmul.f32 1.442695, %v521_v55  ;;  %v1453_v35 = vadd.f32 %v1060_v57, %v1317_v18 }
  0xf4   : > { %v1138_v6 = vpop.eup %1137  ;;  %1163 = vrcp.f32 %v628_v53  ;;  %v626_v10 = vadd.f32 1.0, %v1136_v58  ;;  %v1457_v42 = vmul.f32 1.442695, %v537_v1  ;;  %v1462_v49 = vadd.f32 %v1076_v5, %v1317_v18 }
  0xf5   : > { %v1140_v17 = vpop.eup %1139  ;;  %v671_v19 = vmul.f32 %v1138_v6, %v1320_v20  ;;  %1165 = vrcp.f32 %v610_v62  ;;  %v433_v20 = vpop.f32.mrf.mxu0  ;;  %v1476_v55 = vadd.f32 %v1317_v18, %v497_v43  ;;  %v524_v58 = vsub.f32 0.0, %v1453_v35 }
  0xf6   : > { %v1142_v29 = vpop.eup %1141  ;;  %v687_v30 = vmul.f32 %v1140_v17, %v1323_v22  ;;  %1167 = vrcp.f32 %v626_v10 }
  0xf7   : > { %v1144_v37 = vpop.eup %1143  ;;  %v996_v38 = vpack.c.bf16 %v671_v19, %v671_v19  ;;  %v669_v41 = vmul.f32 %v1142_v29, %v1327_v25  ;;  %1169 = vpow2.f32 %v1399_v59  ;;  %v1469_v59 = vadd.f32 %v1317_v18, %v433_v20 }
  0xf8   : > { %v1146_v46 = vpop.eup %1145  ;;  %v1012_v22 = vpack.c.bf16 %v687_v30, %v687_v30  ;;  %v685_v47 = vmul.f32 %v1144_v37, %v1331_v28  ;;  %1171 = vpow2.f32 %v1404_v2  ;;  %v540_v18 = vsub.f32 0.0, %v1462_v49 }
  0xf9   : > { %v1148_v50 = vpop.eup %1147  ;;  %832 = vst.msk [vmem:[%s1447_s25 + $0x8] sm:$0xf] %vm829_vm2, %v996_v38  ;;  %v994_v25 = vpack.c.bf16 %v669_v41, %v669_v41  ;;  %v672_v51 = vmul.f32 %v1146_v46, %v1335_v32  ;;  %1173 = vpow2.f32 %v1409_v7 }
  0xfa   : > { %v1150_v53 = vpop.eup %1149  ;;  %848 = vst.msk [vmem:[%s1447_s25 + $0x48] sm:$0xf] %vm829_vm2, %v1012_v22  ;;  %v1010_v28 = vpack.c.bf16 %v685_v47, %v685_v47  ;;  %v688_v2 = vmul.f32 %v1148_v50, %v1339_v36  ;;  %1175 = vpow2.f32 %v1414_v13 }
  0xfb   : > { %v1152_v57 = vpop.eup %1151  ;;  %830 = vst.msk [vmem:[%s1447_s25] sm:$0xf] %vm829_vm2, %v994_v25  ;;  %v997_v32 = vpack.c.bf16 %v672_v51, %v672_v51  ;;  %v670_v7 = vmul.f32 %v1150_v53, %v1343_v40  ;;  %1177 = vpow2.f32 %v563_v54  ;;  %v522_v54 = vsub.f32 0.0, %v1469_v59 }
  0xfc   : > { %v1154_v62 = vpop.eup %1153  ;;  %846 = vst.msk [vmem:[%s1447_s25 + $0x40] sm:$0xf] %vm829_vm2, %v1010_v28  ;;  %v1013_v36 = vpack.c.bf16 %v688_v2, %v688_v2  ;;  %v686_v1 = vmul.f32 %v1152_v57, %v1347_v44  ;;  %1179 = vpow2.f32 %v595_v63  ;;  %v538_v63 = vsub.f32 0.0, %v1476_v55 }
  0xfd   : > { %v1156_v13 = vpop.eup %1155  ;;  %833 = vst.msk [vmem:[%s1447_s25 + $0xc] sm:$0xf] %vm829_vm2, %v997_v32  ;;  %v995_v5 = vpack.c.bf16 %v670_v7, %v670_v7  ;;  %v675_v40 = vmul.f32 %v1154_v62, %v1351_v48  ;;  %1181 = vpow2.f32 %v559_v11  ;;  %v571_v11 = vmul.f32 1.442695, %v524_v58 }
  0xfe   : > { %v1158_v6 = vpop.eup %1157  ;;  %849 = vst.msk [vmem:[%s1447_s25 + $0x4c] sm:$0xf] %vm829_vm2, %v1013_v36  ;;  %v1011_v10 = vpack.c.bf16 %v686_v1, %v686_v1  ;;  %v691_v44 = vmul.f32 %v1156_v13, %v1355_v52  ;;  %1183 = vpow2.f32 %v591_v15  ;;  %v603_v52 = vmul.f32 1.442695, %v540_v18 }
  0xff   : > { %v1160_v17 = vpop.eup %1159  ;;  %831 = vst.msk [vmem:[%s1447_s25 + $0x4] sm:$0xf] %vm829_vm2, %v995_v5  ;;  %v1000_v19 = vpack.c.bf16 %v675_v40, %v675_v40  ;;  %v673_v48 = vmul.f32 %v1158_v6, %v1359_v56  ;;  %1185 = vpow2.f32 %v569_v21  ;;  %v567_v21 = vmul.f32 1.442695, %v522_v54 }
 0x100   : > { %v1162_v29 = vpop.eup %1161  ;;  %847 = vst.msk [vmem:[%s1447_s25 + $0x44] sm:$0xf] %vm829_vm2, %v1011_v10  ;;  %v1016_v30 = vpack.c.bf16 %v691_v44, %v691_v44  ;;  %v689_v20 = vmul.f32 %v1160_v17, %v1363_v60  ;;  %1187 = vpow2.f32 %v1440_v26  ;;  %v599_v26 = vmul.f32 1.442695, %v538_v63 }
 0x101   : > { %v1164_v15 = vpop.eup %1163  ;;  %836 = vst.msk [vmem:[%s1447_s25 + $0x18] sm:$0xf] %vm829_vm2, %v1000_v19  ;;  %v998_v37 = vpack.c.bf16 %v673_v48, %v673_v48  ;;  %v676_v56 = vmul.f32 %v1162_v29, %v1367_v0  ;;  %1189 = vpow2.f32 %v1450_v31 }
 0x102   : > { %v1166_v38 = vpop.eup %1165  ;;  %852 = vst.msk [vmem:[%s1447_s25 + $0x58] sm:$0xf] %vm829_vm2, %v1016_v30  ;;  %v1014_v41 = vpack.c.bf16 %v689_v20, %v689_v20  ;;  %v692_v60 = vmul.f32 %v1164_v15, %v1371_v4  ;;  %1191 = vpow2.f32 %v1457_v42 }
 0x103   : > { %v1168_v43 = vpop.eup %1167  ;;  %834 = vst.msk [vmem:[%s1447_s25 + $0x10] sm:$0xf] %vm829_vm2, %v998_v37  ;;  %v1001_v46 = vpack.c.bf16 %v676_v56, %v676_v56  ;;  %v674_v0 = vmul.f32 %v1166_v38, %v1375_v8  ;;  %1193 = vpow2.f32 %v571_v11 }
 0x104   : > { %v1170_v31 = vpop.eup %1169  ;;  %850 = vst.msk [vmem:[%s1447_s25 + $0x50] sm:$0xf] %vm829_vm2, %v1014_v41  ;;  %v1017_v22 = vpack.c.bf16 %v692_v60, %v692_v60  ;;  %v690_v47 = vmul.f32 %v1168_v43, %v1379_v12  ;;  %1195 = vpow2.f32 %v603_v52 }
 0x105   : > { %v1172_v4 = vpop.eup %1171  ;;  %837 = vst.msk [vmem:[%s1447_s25 + $0x1c] sm:$0xf] %vm829_vm2, %v1001_v46  ;;  %v999_v42 = vpack.c.bf16 %v674_v0, %v674_v0  ;;  %v615_v50 = vadd.f32 1.0, %v1170_v31  ;;  %1197 = vpow2.f32 %v567_v21 }
 0x106   : > { %v1174_v25 = vpop.eup %1173  ;;  %853 = vst.msk [vmem:[%s1447_s25 + $0x5c] sm:$0xf] %vm829_vm2, %v1017_v22  ;;  %v1015_v8 = vpack.c.bf16 %v690_v47, %v690_v47  ;;  %v631_v51 = vadd.f32 1.0, %v1172_v4  ;;  %1199 = vpow2.f32 %v599_v26 }
 0x107   : > { %v1176_v53 = vpop.eup %1175  ;;  %835 = vst.msk [vmem:[%s1447_s25 + $0x14] sm:$0xf] %vm829_vm2, %v999_v42  ;;  %1201 = vrcp.f32 %v615_v50  ;;  %v613_v28 = vadd.f32 1.0, %v1174_v25 }
 0x108   : > { %v1178_v12 = vpop.eup %1177  ;;  %851 = vst.msk [vmem:[%s1447_s25 + $0x54] sm:$0xf] %vm829_vm2, %v1015_v8  ;;  %1203 = vrcp.f32 %v631_v51  ;;  %v629_v2 = vadd.f32 1.0, %v1176_v53 }
 0x109   : > { %v1180_v57 = vpop.eup %1179  ;;  %1205 = vrcp.f32 %v613_v28  ;;  %v616_v32 = vadd.f32 1.0, %v1178_v12 }
 0x10a   : > { %v1182_v7 = vpop.eup %1181  ;;  %1207 = vrcp.f32 %v629_v2  ;;  %v632_v58 = vadd.f32 1.0, %v1180_v57 }
 0x10b   : > { %v1184_v62 = vpop.eup %1183  ;;  %1209 = vrcp.f32 %v616_v32  ;;  %v614_v36 = vadd.f32 1.0, %v1182_v7 }
 0x10c   : > { %v1186_v1 = vpop.eup %1185  ;;  %1211 = vrcp.f32 %v632_v58  ;;  %v630_v18 = vadd.f32 1.0, %v1184_v62 }
 0x10d   : > { %v1188_v13 = vpop.eup %1187  ;;  %1213 = vrcp.f32 %v614_v36  ;;  %v619_v5 = vadd.f32 1.0, %v1186_v1 }
 0x10e   : > { %v1190_v40 = vpop.eup %1189  ;;  %1215 = vrcp.f32 %v630_v18  ;;  %v635_v54 = vadd.f32 1.0, %v1188_v13 }
 0x10f   : > { %v1192_v6 = vpop.eup %1191  ;;  %1217 = vrcp.f32 %v619_v5  ;;  %v617_v10 = vadd.f32 1.0, %v1190_v40 }
 0x110   : > { %v1194_v44 = vpop.eup %1193  ;;  %1219 = vrcp.f32 %v635_v54  ;;  %v633_v63 = vadd.f32 1.0, %v1192_v6 }
 0x111   : > { %v1196_v17 = vpop.eup %1195  ;;  %1221 = vrcp.f32 %v617_v10  ;;  %v620_v19 = vadd.f32 1.0, %v1194_v44 }
 0x112   : > { %v1198_v48 = vpop.eup %1197  ;;  %1223 = vrcp.f32 %v633_v63  ;;  %v636_v11 = vadd.f32 1.0, %v1196_v17 }
 0x113   : > { %v1200_v29 = vpop.eup %1199  ;;  %1225 = vrcp.f32 %v620_v19  ;;  %v618_v30 = vadd.f32 1.0, %v1198_v48 }
 0x114   : > { %v1202_v20 = vpop.eup %1201  ;;  %1227 = vrcp.f32 %v636_v11  ;;  %v634_v52 = vadd.f32 1.0, %v1200_v29 }
 0x115   : > { %v1204_v15 = vpop.eup %1203  ;;  %v679_v37 = vmul.f32 %v1202_v20, %v1383_v16  ;;  %1229 = vrcp.f32 %v618_v30 }
 0x116   : > { %v1206_v56 = vpop.eup %1205  ;;  %v695_v21 = vmul.f32 %v1204_v15, %v1387_v23  ;;  %1231 = vrcp.f32 %v634_v52 }
 0x117   : > { %v1208_v38 = vpop.eup %1207  ;;  %v1004_v41 = vpack.c.bf16 %v679_v37, %v679_v37  ;;  %v677_v60 = vmul.f32 %v1206_v56, %v1390_v27 }
 0x118   : > { %v1210_v26 = vpop.eup %1209  ;;  %v1020_v43 = vpack.c.bf16 %v695_v21, %v695_v21  ;;  %v693_v46 = vmul.f32 %v1208_v38, %v1393_v33 }
 0x119   : > { %v1212_v0 = vpop.eup %1211  ;;  %840 = vst.msk [vmem:[%s1447_s25 + $0x28] sm:$0xf] %vm829_vm2, %v1004_v41  ;;  %v1002_v16 = vpack.c.bf16 %v677_v60, %v677_v60  ;;  %v680_v31 = vmul.f32 %v1210_v26, %v1402_v61 }
 0x11a   : > { %v1214_v22 = vpop.eup %1213  ;;  %856 = vst.msk [vmem:[%s1447_s25 + $0x68] sm:$0xf] %vm829_vm2, %v1020_v43  ;;  %v1018_v23 = vpack.c.bf16 %v693_v46, %v693_v46  ;;  %v696_v47 = vmul.f32 %v1212_v0, %v1407_v3 }
 0x11b   : > { %v1216_v27 = vpop.eup %1215  ;;  %838 = vst.msk [vmem:[%s1447_s25 + $0x20] sm:$0xf] %vm829_vm2, %v1002_v16  ;;  %v1005_v4 = vpack.c.bf16 %v680_v31, %v680_v31  ;;  %v678_v33 = vmul.f32 %v1214_v22, %v1412_v9 }
 0x11c   : > { %v1218_v42 = vpop.eup %1217  ;;  %854 = vst.msk [vmem:[%s1447_s25 + $0x60] sm:$0xf] %vm829_vm2, %v1018_v23  ;;  %v1021_v50 = vpack.c.bf16 %v696_v47, %v696_v47  ;;  %v694_v61 = vmul.f32 %v1216_v27, %v1417_v14 }
 0x11d   : > { %v1220_v25 = vpop.eup %1219  ;;  %841 = vst.msk [vmem:[%s1447_s25 + $0x2c] sm:$0xf] %vm829_vm2, %v1005_v4  ;;  %v1003_v8 = vpack.c.bf16 %v678_v33, %v678_v33  ;;  %v683_v3 = vmul.f32 %v1218_v42, %v1421_v24 }
 0x11e   : > { %v1222_v51 = vpop.eup %1221  ;;  %857 = vst.msk [vmem:[%s1447_s25 + $0x6c] sm:$0xf] %vm829_vm2, %v1021_v50  ;;  %v1019_v53 = vpack.c.bf16 %v694_v61, %v694_v61  ;;  %v699_v9 = vmul.f32 %v1220_v25, %v1425_v34 }
 0x11f   : > { %v1224_v28 = vpop.eup %1223  ;;  %839 = vst.msk [vmem:[%s1447_s25 + $0x24] sm:$0xf] %vm829_vm2, %v1003_v8  ;;  %v1008_v12 = vpack.c.bf16 %v683_v3, %v683_v3  ;;  %v681_v14 = vmul.f32 %v1222_v51, %v1429_v39 }
 0x120   : > { %v1226_v2 = vpop.eup %1225  ;;  %855 = vst.msk [vmem:[%s1447_s25 + $0x64] sm:$0xf] %vm829_vm2, %v1019_v53  ;;  %v1024_v57 = vpack.c.bf16 %v699_v9, %v699_v9  ;;  %v697_v24 = vmul.f32 %v1224_v28, %v1433_v45 }
 0x121   : > { %v1228_v32 = vpop.eup %1227  ;;  %844 = vst.msk [vmem:[%s1447_s25 + $0x38] sm:$0xf] %vm829_vm2, %v1008_v12  ;;  %v1006_v34 = vpack.c.bf16 %v681_v14, %v681_v14  ;;  %v684_v7 = vmul.f32 %v1226_v2, %v1453_v35 }
 0x122   : > { %v1230_v58 = vpop.eup %1229  ;;  %860 = vst.msk [vmem:[%s1447_s25 + $0x78] sm:$0xf] %vm829_vm2, %v1024_v57  ;;  %v1022_v39 = vpack.c.bf16 %v697_v24, %v697_v24  ;;  %v700_v62 = vmul.f32 %v1228_v32, %v1462_v49 }
 0x123   : > { %v1232_v36 = vpop.eup %1231  ;;  %842 = vst.msk [vmem:[%s1447_s25 + $0x30] sm:$0xf] %vm829_vm2, %v1006_v34  ;;  %v1009_v45 = vpack.c.bf16 %v684_v7, %v684_v7  ;;  %v682_v1 = vmul.f32 %v1230_v58, %v1469_v59 }
 0x124   : > { %858 = vst.msk [vmem:[%s1447_s25 + $0x70] sm:$0xf] %vm829_vm2, %v1022_v39  ;;  %v1025_v18 = vpack.c.bf16 %v700_v62, %v700_v62  ;;  %v698_v13 = vmul.f32 %v1232_v36, %v1476_v55 }
 0x125   : > { %845 = vst.msk [vmem:[%s1447_s25 + $0x3c] sm:$0xf] %vm829_vm2, %v1009_v45  ;;  %v1007_v35 = vpack.c.bf16 %v682_v1, %v682_v1 }
 0x126   : > { %861 = vst.msk [vmem:[%s1447_s25 + $0x7c] sm:$0xf] %vm829_vm2, %v1025_v18  ;;  %v1023_v5 = vpack.c.bf16 %v698_v13, %v698_v13 }
 0x127   : > { %843 = vst.msk [vmem:[%s1447_s25 + $0x34] sm:$0xf] %vm829_vm2, %v1007_v35 }
 0x128   : > { %859 = vst.msk [vmem:[%s1447_s25 + $0x74] sm:$0xf] %vm829_vm2, %v1023_v5 }
 0x129 PF: > { %s13_s12 = sadd.s32 1, %s1239_s12  }
 0x12a   : > { %p10_p4 = scmp.ge.s32.totalorder %s13_s12, 4  }
 0x12c   :  { %12 = sbr.rel (!%p10_p4) target bundleno = 1 (0x1), region = 62 }

// kernel: elan1_forward.13
= control target key start
LH: loop header
LB: loop body
LE: loop exit
PB: predicated region body
PF: predicated region fallthrough
CT: control target
= control target key end

     0   :  { %s2737_s30 = smov 0   ;;  %s3331_s0 = inlined_call_operand.vmem [shape: bf16[512,2], index: 0, kind: input, shape index: {}]   ;;  %s3332_s1 = inlined_call_operand.vmem [shape: bf16[512,2], index: 1, kind: input, shape index: {}]   ;;  %s3333_s2 = inlined_call_operand.vmem [shape: bf16[512,2], index: 2, kind: input, shape index: {}]   ;;  %s3334_s3 = inlined_call_operand.vmem [shape: bf16[512,2], index: 3, kind: input, shape index: {}]   ;;  %s3335_s4 = inlined_call_operand.vmem [shape: bf16[2,8], index: 4, kind: input, shape index: {}]   ;;  %s3336_s5 = inlined_call_operand.vmem [shape: bf16[2,8], index: 5, kind: input, shape index: {}]   ;;  %s3337_s6 = inlined_call_operand.vmem [shape: bf16[2,8], index: 6, kind: input, shape index: {}]   ;;  %s3338_s7 = inlined_call_operand.vmem [shape: bf16[2,8], index: 7, kind: input, shape index: {}]   ;;  %s3339_s8 = inlined_call_operand.vmem [shape: f32[1,8], index: 8, kind: input, shape index: {}]   ;;  %s3340_s9 = inlined_call_operand.vmem [shape: f32[512,8], index: 9, kind: output, shape index: {}]  }
   0x1 LB: > { %s2125_s10 = sadd.s32 4294967295, %s2685_s30   ;;  %p2129_p0 = scmp.ge.s32.totalorder %s2685_s30, 1  ;;  %s2685_s30 = sphi %s2737_s30, %s19_s30  }
   0x2   : > { %p321_p1 = scmp.lt.s32.totalorder %s2685_s30, 3 }
   0x4   : > { %p322_p2 = pnand %p2129_p0, %p321_p1 }
   0x6   : > { %325 = sbr.rel (%p322_p2) target bundleno = 387 (0x183), region = 56 }
   0xb   : > { %v468_v0 = vld [vmem:[%s3336_s5] sm:$0x1]  ;;  %vm598_vm0 = vcmask 1040384   ;;  %s2130_s15 = sshll.u32 %s2125_s10, 5  ;;  %vm549_vm1 = vcmask 15360   ;;  %vm2000_vm2 = vcmask 64512  }
   0xc   : > { %v435_v1 = vld [vmem:[%s3335_s4] sm:$0x1]  ;;  %2475 = vmatprep.subr.msk.bf16.mxu0 %vm598_vm0, %v468_v0  ;;  %v600_v2 = vsel %vm598_vm0, %v468_v0, 0  ;;  %p373_p3 = scmp.lt.s32.totalorder %s2130_s15, 63 }
   0xd   : > { %2476 = vmatprep.subr.msk.bf16.mxu1 %vm598_vm0, %v435_v1  ;;  %v892_v3 = vsel %vm598_vm0, %v435_v1, 0  ;;  %v1087_v4 = vld [vmem:[%s3337_s6] sm:$0x1]  ;;  %2340 = vmatpush3.bf16.msra.mxu0 %v600_v2 }
   0xe   : > { %2374 = vmatpush3.bf16.msra.mxu1 %v892_v3  ;;  %v1444_v5 = vld [vmem:[%s3338_s7] sm:$0x1]  ;;  %s3348_s15 = smov (!%p373_p3, %s2130_s15), 63  ;;  %2477 = vmatprep.subr.msk.bf16.mxu0 %vm598_vm0, %v1087_v4  ;;  %v1217_v9 = vsel %vm598_vm0, %v1087_v4, 0 }
   0xf   : > { %2478 = vmatprep.subr.msk.bf16.mxu1 %vm598_vm0, %v1444_v5  ;;  %s2766_s20 = sshll.u32 %s3348_s15, 2  ;;  %v1574_v11 = vsel %vm598_vm0, %v1444_v5, 0  ;;  %s2139_s16 = sshll.u32 %s3348_s15, 3 }
  0x10   : > { %s2772_s23 = scalar_lea.vmem %s3332_s1, %s2766_s20  ;;  %s2778_s26 = scalar_lea.vmem %s3331_s0, %s2766_s20 }
  0x11   : > { %v2487_v6 = vld [vmem:[%s2772_s23] sm:$0xff]   ;;  %v2489_v8 = vld [vmem:[%s2772_s23 + $0x8] sm:$0xff]   ;;  %v2491_v12 = vld [vmem:[%s2772_s23 + $0x10] sm:$0xff]   ;;  %s2823_s29 = scalar_lea.vmem %s3333_s2, %s2766_s20  ;;  %s2830_s12 = scalar_lea.vmem %s3334_s3, %s2766_s20 }
  0x12   : > { %v2488_v7 = vld [vmem:[%s2778_s26] sm:$0xff]   ;;  %2341 = vmatprep.mubr.msk.bf16.mxu0 %vm549_vm1, %v2487_v6  ;;  %v2490_v10 = vld [vmem:[%s2778_s26 + $0x8] sm:$0xff]   ;;  %v2492_v13 = vld [vmem:[%s2778_s26 + $0x10] sm:$0xff]   ;;  %s3159_s18 = scalar_lea.vmem %s3340_s9, %s2139_s16 }
  0x13   : > { %2375 = vmatprep.mubr.msk.bf16.mxu1 %vm549_vm1, %v2488_v7  ;;  %2342 = vmatmul.mubr.msk.bf16.vlgmr.msra.gmra.mxu0 %vm549_vm1, %v2489_v8  ;;  %v2493_v14 = vld [vmem:[%s2772_s23 + $0x18] sm:$0xff]   ;;  %v2495_v16 = vld [vmem:[%s2772_s23 + $0x20] sm:$0xff]   ;;  %v2497_v18 = vld [vmem:[%s2772_s23 + $0x28] sm:$0xff]  }
  0x14   : > { %2376 = vmatmul.mubr.msk.bf16.vlgmr.msra.gmra.mxu1 %vm549_vm1, %v2490_v10  ;;  %2408 = vmatpush3.bf16.msra.mxu0 %v1217_v9  ;;  %v2494_v15 = vld [vmem:[%s2778_s26 + $0x18] sm:$0xff]   ;;  %v2496_v17 = vld [vmem:[%s2778_s26 + $0x20] sm:$0xff]   ;;  %v2498_v19 = vld [vmem:[%s2778_s26 + $0x28] sm:$0xff]  }
  0x15   : > { %2442 = vmatpush3.bf16.msra.mxu1 %v1574_v11  ;;  %2345 = vmatprep.mubr.msk.bf16.mxu0 %vm549_vm1, %v2491_v12  ;;  %v2499_v20 = vld [vmem:[%s2772_s23 + $0x30] sm:$0xff]   ;;  %v2501_v22 = vld [vmem:[%s2772_s23 + $0x38] sm:$0xff]   ;;  %v2503_v24 = vld [vmem:[%s2772_s23 + $0x40] sm:$0xff]  }
  0x16   : > { %2379 = vmatprep.mubr.msk.bf16.mxu1 %vm549_vm1, %v2492_v13  ;;  %v2500_v21 = vld [vmem:[%s2778_s26 + $0x30] sm:$0xff]   ;;  %v2502_v23 = vld [vmem:[%s2778_s26 + $0x38] sm:$0xff]   ;;  %v2504_v25 = vld [vmem:[%s2778_s26 + $0x40] sm:$0xff]  }
  0x17   : > { %v2505_v26 = vld [vmem:[%s2772_s23 + $0x48] sm:$0xff]   ;;  %v2507_v28 = vld [vmem:[%s2772_s23 + $0x50] sm:$0xff]   ;;  %v2509_v30 = vld [vmem:[%s2772_s23 + $0x58] sm:$0xff]  }
  0x18   : > { %v2506_v27 = vld [vmem:[%s2778_s26 + $0x48] sm:$0xff]   ;;  %v2508_v29 = vld [vmem:[%s2778_s26 + $0x50] sm:$0xff]   ;;  %v2510_v31 = vld [vmem:[%s2778_s26 + $0x58] sm:$0xff]  }
  0x19   : > { %v2511_v32 = vld [vmem:[%s2772_s23 + $0x60] sm:$0xff]   ;;  %v2513_v34 = vld [vmem:[%s2772_s23 + $0x68] sm:$0xff]   ;;  %v2515_v36 = vld [vmem:[%s2772_s23 + $0x70] sm:$0xff]  }
  0x1a   : > { %v2512_v33 = vld [vmem:[%s2778_s26 + $0x60] sm:$0xff]   ;;  %v2514_v35 = vld [vmem:[%s2778_s26 + $0x68] sm:$0xff]   ;;  %v2516_v37 = vld [vmem:[%s2778_s26 + $0x70] sm:$0xff]  }
  0x1b   : > { %2346 = vmatmul.mubr.msk.bf16.gmra.mxu0 %vm549_vm1, %v2493_v14  ;;  %v2517_v38 = vld [vmem:[%s2772_s23 + $0x78] sm:$0xff]   ;;  %v2519_v40 = vld [vmem:[%s2823_s29] sm:$0xff]   ;;  %v2521_v42 = vld [vmem:[%s2823_s29 + $0x8] sm:$0xff]  }
  0x1c   : > { %2380 = vmatmul.mubr.msk.bf16.gmra.mxu1 %vm549_vm1, %v2494_v15  ;;  %2349 = vmatprep.mubr.msk.bf16.mxu0 %vm549_vm1, %v2495_v16  ;;  %v2518_v39 = vld [vmem:[%s2778_s26 + $0x78] sm:$0xff]   ;;  %v2520_v41 = vld [vmem:[%s2830_s12] sm:$0xff]   ;;  %v2522_v43 = vld [vmem:[%s2830_s12 + $0x8] sm:$0xff]  }
  0x1d   : > { %2383 = vmatprep.mubr.msk.bf16.mxu1 %vm549_vm1, %v2496_v17  ;;  %v2523_v44 = vld [vmem:[%s2823_s29 + $0x10] sm:$0xff]   ;;  %v2525_v46 = vld [vmem:[%s2823_s29 + $0x18] sm:$0xff]   ;;  %v2527_v48 = vld [vmem:[%s2823_s29 + $0x20] sm:$0xff]  }
  0x1e   : > { %v2524_v45 = vld [vmem:[%s2830_s12 + $0x10] sm:$0xff]   ;;  %v2526_v47 = vld [vmem:[%s2830_s12 + $0x18] sm:$0xff]   ;;  %v2528_v49 = vld [vmem:[%s2830_s12 + $0x20] sm:$0xff]  }
  0x1f   : > { %v2529_v50 = vld [vmem:[%s2823_s29 + $0x28] sm:$0xff]   ;;  %v2531_v52 = vld [vmem:[%s2823_s29 + $0x30] sm:$0xff]   ;;  %v2533_v54 = vld [vmem:[%s2823_s29 + $0x38] sm:$0xff]  }
  0x20   : > { %v2530_v51 = vld [vmem:[%s2830_s12 + $0x28] sm:$0xff]   ;;  %v2532_v53 = vld [vmem:[%s2830_s12 + $0x30] sm:$0xff]   ;;  %v2534_v55 = vld [vmem:[%s2830_s12 + $0x38] sm:$0xff]  }
  0x21   : > { %v2535_v56 = vld [vmem:[%s2823_s29 + $0x40] sm:$0xff]   ;;  %v2537_v58 = vld [vmem:[%s2823_s29 + $0x48] sm:$0xff]   ;;  %v2539_v60 = vld [vmem:[%s2823_s29 + $0x50] sm:$0xff]  }
  0x22   : > { %v2536_v57 = vld [vmem:[%s2830_s12 + $0x40] sm:$0xff]   ;;  %v2538_v59 = vld [vmem:[%s2830_s12 + $0x48] sm:$0xff]   ;;  %v2540_v61 = vld [vmem:[%s2830_s12 + $0x50] sm:$0xff]  }
  0x23   : > { %2350 = vmatmul.mubr.msk.bf16.gmra.mxu0 %vm549_vm1, %v2497_v18  ;;  %v2541_v62 = vld [vmem:[%s2823_s29 + $0x58] sm:$0xff]   ;;  %v2543_v0 = vld [vmem:[%s2823_s29 + $0x60] sm:$0xff]   ;;  %v2545_v2 = vld [vmem:[%s2823_s29 + $0x68] sm:$0xff]  }
  0x24   : > { %2384 = vmatmul.mubr.msk.bf16.gmra.mxu1 %vm549_vm1, %v2498_v19  ;;  %2353 = vmatprep.mubr.msk.bf16.mxu0 %vm549_vm1, %v2499_v20  ;;  %v2542_v63 = vld [vmem:[%s2830_s12 + $0x58] sm:$0xff]   ;;  %v2544_v1 = vld [vmem:[%s2830_s12 + $0x60] sm:$0xff]   ;;  %v2546_v3 = vld [vmem:[%s2830_s12 + $0x68] sm:$0xff]  }
  0x25   : > { %2387 = vmatprep.mubr.msk.bf16.mxu1 %vm549_vm1, %v2500_v21  ;;  %v2547_v4 = vld [vmem:[%s2823_s29 + $0x70] sm:$0xff]   ;;  %v2549_v6 = vld [vmem:[%s2823_s29 + $0x78] sm:$0xff]  }
  0x26   : > { %v2548_v5 = vld [vmem:[%s2830_s12 + $0x70] sm:$0xff]   ;;  %v2550_v7 = vld [vmem:[%s2830_s12 + $0x78] sm:$0xff]  }
  0x2b   : > { %2354 = vmatmul.mubr.msk.bf16.gmra.mxu0 %vm549_vm1, %v2501_v22 }
  0x2c   : > { %2388 = vmatmul.mubr.msk.bf16.gmra.mxu1 %vm549_vm1, %v2502_v23  ;;  %2357 = vmatprep.mubr.msk.bf16.mxu0 %vm549_vm1, %v2503_v24 }
  0x2d   : > { %2391 = vmatprep.mubr.msk.bf16.mxu1 %vm549_vm1, %v2504_v25 }
  0x33   : > { %2358 = vmatmul.mubr.msk.bf16.gmra.mxu0 %vm549_vm1, %v2505_v26 }
  0x34   : > { %2392 = vmatmul.mubr.msk.bf16.gmra.mxu1 %vm549_vm1, %v2506_v27  ;;  %2361 = vmatprep.mubr.msk.bf16.mxu0 %vm549_vm1, %v2507_v28 }
  0x35   : > { %2395 = vmatprep.mubr.msk.bf16.mxu1 %vm549_vm1, %v2508_v29 }
  0x3b   : > { %2362 = vmatmul.mubr.msk.bf16.gmra.mxu0 %vm549_vm1, %v2509_v30 }
  0x3c   : > { %2396 = vmatmul.mubr.msk.bf16.gmra.mxu1 %vm549_vm1, %v2510_v31  ;;  %2365 = vmatprep.mubr.msk.bf16.mxu0 %vm549_vm1, %v2511_v32 }
  0x3d   : > { %2399 = vmatprep.mubr.msk.bf16.mxu1 %vm549_vm1, %v2512_v33 }
  0x43   : > { %2366 = vmatmul.mubr.msk.bf16.gmra.mxu0 %vm549_vm1, %v2513_v34 }
  0x44   : > { %2400 = vmatmul.mubr.msk.bf16.gmra.mxu1 %vm549_vm1, %v2514_v35  ;;  %2369 = vmatprep.mubr.msk.bf16.mxu0 %vm549_vm1, %v2515_v36 }
  0x45   : > { %2403 = vmatprep.mubr.msk.bf16.mxu1 %vm549_vm1, %v2516_v37 }
  0x4b   : > { %2370 = vmatmul.mubr.msk.bf16.gmra.mxu0 %vm549_vm1, %v2517_v38 }
  0x4c   : > { %2404 = vmatmul.mubr.msk.bf16.gmra.mxu1 %vm549_vm1, %v2518_v39  ;;  %2409 = vmatprep.mubr.msk.bf16.mxu0 %vm549_vm1, %v2519_v40 }
  0x4d   : > { %2443 = vmatprep.mubr.msk.bf16.mxu1 %vm549_vm1, %v2520_v41 }
  0x53   : > { %2410 = vmatmul.mubr.msk.bf16.vlgmr.msra.gmra.mxu0 %vm549_vm1, %v2521_v42 }
  0x54   : > { %2444 = vmatmul.mubr.msk.bf16.vlgmr.msra.gmra.mxu1 %vm549_vm1, %v2522_v43  ;;  %2413 = vmatprep.mubr.msk.bf16.mxu0 %vm549_vm1, %v2523_v44 }
  0x55   : > { %2447 = vmatprep.mubr.msk.bf16.mxu1 %vm549_vm1, %v2524_v45 }
  0x5b   : > { %2414 = vmatmul.mubr.msk.bf16.gmra.mxu0 %vm549_vm1, %v2525_v46 }
  0x5c   : > { %2448 = vmatmul.mubr.msk.bf16.gmra.mxu1 %vm549_vm1, %v2526_v47  ;;  %2417 = vmatprep.mubr.msk.bf16.mxu0 %vm549_vm1, %v2527_v48 }
  0x5d   : > { %2451 = vmatprep.mubr.msk.bf16.mxu1 %vm549_vm1, %v2528_v49 }
  0x63   : > { %2418 = vmatmul.mubr.msk.bf16.gmra.mxu0 %vm549_vm1, %v2529_v50 }
  0x64   : > { %2452 = vmatmul.mubr.msk.bf16.gmra.mxu1 %vm549_vm1, %v2530_v51  ;;  %2421 = vmatprep.mubr.msk.bf16.mxu0 %vm549_vm1, %v2531_v52 }
  0x65   : > { %2455 = vmatprep.mubr.msk.bf16.mxu1 %vm549_vm1, %v2532_v53 }
  0x6b   : > { %2422 = vmatmul.mubr.msk.bf16.gmra.mxu0 %vm549_vm1, %v2533_v54 }
  0x6c   : > { %2456 = vmatmul.mubr.msk.bf16.gmra.mxu1 %vm549_vm1, %v2534_v55  ;;  %2425 = vmatprep.mubr.msk.bf16.mxu0 %vm549_vm1, %v2535_v56 }
  0x6d   : > { %2459 = vmatprep.mubr.msk.bf16.mxu1 %vm549_vm1, %v2536_v57 }
  0x73   : > { %2426 = vmatmul.mubr.msk.bf16.gmra.mxu0 %vm549_vm1, %v2537_v58 }
  0x74   : > { %2460 = vmatmul.mubr.msk.bf16.gmra.mxu1 %vm549_vm1, %v2538_v59  ;;  %2429 = vmatprep.mubr.msk.bf16.mxu0 %vm549_vm1, %v2539_v60 }
  0x75   : > { %2463 = vmatprep.mubr.msk.bf16.mxu1 %vm549_vm1, %v2540_v61 }
  0x7b   : > { %2430 = vmatmul.mubr.msk.bf16.gmra.mxu0 %vm549_vm1, %v2541_v62 }
  0x7c   : > { %2464 = vmatmul.mubr.msk.bf16.gmra.mxu1 %vm549_vm1, %v2542_v63  ;;  %2433 = vmatprep.mubr.msk.bf16.mxu0 %vm549_vm1, %v2543_v0 }
  0x7d   : > { %2467 = vmatprep.mubr.msk.bf16.mxu1 %vm549_vm1, %v2544_v1 }
  0x83   : > { %2434 = vmatmul.mubr.msk.bf16.gmra.mxu0 %vm549_vm1, %v2545_v2 }
  0x84   : > { %2468 = vmatmul.mubr.msk.bf16.gmra.mxu1 %vm549_vm1, %v2546_v3  ;;  %2437 = vmatprep.mubr.msk.bf16.mxu0 %vm549_vm1, %v2547_v4 }
  0x85   : > { %2471 = vmatprep.mubr.msk.bf16.mxu1 %vm549_vm1, %v2548_v5 }
  0x8b   : > { %2438 = vmatmul.mubr.msk.bf16.gmra.mxu0 %vm549_vm1, %v2549_v6 }
  0x8c   : > { %2472 = vmatmul.mubr.msk.bf16.gmra.mxu1 %vm549_vm1, %v2550_v7 }
  0xd3   : > { %v2922_v8 = vpop.f32.mrf.mxu0 }
  0xd4   : > { %v2924_v9 = vpop.f32.mrf.mxu1 }
  0xd5   : > { %v2926_v10 = vpop.f32.mrf.mxu0 }
  0xd6   : > { %v2928_v11 = vpop.f32.mrf.mxu1 }
  0xd7   : > { %v2930_v12 = vpop.f32.mrf.mxu0 }
  0xd8   : > { %v2932_v13 = vpop.f32.mrf.mxu1 }
  0xd9   : > { %v2934_v14 = vpop.f32.mrf.mxu0 }
  0xda   : > { %v2936_v15 = vpop.f32.mrf.mxu1 }
  0xdb   : > { %v2938_v16 = vpop.f32.mrf.mxu0 }
  0xdc   : > { %v2940_v17 = vpop.f32.mrf.mxu1 }
  0xdd   : > { %v2942_v18 = vpop.f32.mrf.mxu0 }
  0xde   : > { %v2944_v19 = vpop.f32.mrf.mxu1 }
  0xdf   : > { %v2946_v20 = vpop.f32.mrf.mxu0 }
  0xe0   : > { %v2948_v21 = vpop.f32.mrf.mxu1 }
  0xe1   : > { %v2950_v22 = vpop.f32.mrf.mxu0 }
  0xe2   : > { %v2952_v23 = vpop.f32.mrf.mxu1 }
  0xe3   : > { %v2954_v24 = vpop.f32.mrf.mxu0 }
  0xe4   : > { %v2956_v25 = vpop.f32.mrf.mxu1 }
  0xe5   : > { %v2958_v26 = vpop.f32.mrf.mxu0 }
  0xe6   : > { %v2960_v27 = vpop.f32.mrf.mxu1 }
  0xe7   : > { %v2962_v28 = vpop.f32.mrf.mxu0 }
  0xe8   : > { %v2964_v29 = vpop.f32.mrf.mxu1 }
  0xe9   : > { %v2966_v30 = vpop.f32.mrf.mxu0 }
  0xea   : > { %v2968_v31 = vpop.f32.mrf.mxu1 }
  0xeb   : > { %v2970_v32 = vpop.f32.mrf.mxu0 }
  0xec   : > { %v2972_v33 = vpop.f32.mrf.mxu1 }
  0xed   : > { %v2974_v34 = vpop.f32.mrf.mxu0 }
  0xee   : > { %v2976_v35 = vpop.f32.mrf.mxu1 }
  0xef   : > { %v2978_v36 = vpop.f32.mrf.mxu0 }
  0xf0   : > { %v2980_v37 = vpop.f32.mrf.mxu1 }
  0xf1   : > { %v2982_v38 = vpop.f32.mrf.mxu0 }
  0xf2   : > { %v2984_v39 = vpop.f32.mrf.mxu1 }
  0xf3   : > { %v2986_v40 = vpop.f32.mrf.mxu0 }
  0xf4   : > { %v2988_v41 = vpop.f32.mrf.mxu1 }
  0xf5   : > { %v2990_v42 = vpop.f32.mrf.mxu0 }
  0xf6   : > { %v2992_v43 = vpop.f32.mrf.mxu1 }
  0xf7   : > { %v2994_v44 = vpop.f32.mrf.mxu0 }
  0xf8   : > { %v2996_v45 = vpop.f32.mrf.mxu1 }
  0xf9   : > { %v2998_v46 = vpop.f32.mrf.mxu0 }
  0xfa   : > { %v3000_v47 = vpop.f32.mrf.mxu1 }
  0xfb   : > { %v3002_v48 = vpop.f32.mrf.mxu0 }
  0xfc   : > { %v3004_v49 = vpop.f32.mrf.mxu1 }
  0xfd   : > { %v716_v50 = vpop.f32.mrf.mxu0 }
  0xfe   : > { %v1008_v51 = vpop.f32.mrf.mxu1 }
  0xff   : > { %v3006_v52 = vadd.f32 %v1008_v51, %v716_v50  ;;  %v2364_v53 = vpop.f32.mrf.mxu0 }
 0x100   : > { %v2398_v54 = vpop.f32.mrf.mxu1 }
 0x101   : > { %v3008_v55 = vadd.f32 %v2398_v54, %v2364_v53  ;;  %v719_v56 = vpop.f32.mrf.mxu0 }
 0x102   : > { %v1011_v57 = vpop.f32.mrf.mxu1 }
 0x103   : > { %v3010_v58 = vadd.f32 %v1011_v57, %v719_v56  ;;  %v2367_v59 = vpop.f32.mrf.mxu0 }
 0x104   : > { %v2401_v60 = vpop.f32.mrf.mxu1 }
 0x105   : > { %v3012_v61 = vadd.f32 %v2401_v60, %v2367_v59  ;;  %v732_v62 = vpop.f32.mrf.mxu0 }
 0x106   : > { %v1024_v63 = vpop.f32.mrf.mxu1 }
 0x107   : > { %v3014_v0 = vadd.f32 %v1024_v63, %v732_v62  ;;  %v2368_v1 = vpop.f32.mrf.mxu0  ;;  %v937_v63 = vadd.f32 %v2924_v9, %v2922_v8 }
 0x108   : > { %v2402_v2 = vpop.f32.mrf.mxu1 }
 0x109   : > { %v3016_v3 = vadd.f32 %v2402_v2, %v2368_v1  ;;  %v735_v4 = vpop.f32.mrf.mxu0 }
 0x10a   : > { %v1027_v5 = vpop.f32.mrf.mxu1 }
 0x10b   : > { %v3018_v6 = vadd.f32 %v1027_v5, %v735_v4  ;;  %v2371_v7 = vpop.f32.mrf.mxu0  ;;  %v929_v5 = vadd.f32 %v2928_v11, %v2926_v10 }
 0x10c   : > { %v2405_v50 = vpop.f32.mrf.mxu1 }
 0x10d   : > { %v3020_v51 = vadd.f32 %v2405_v50, %v2371_v7  ;;  %v748_v53 = vpop.f32.mrf.mxu0 }
 0x10e   : > { %v1040_v54 = vpop.f32.mrf.mxu1 }
 0x10f   : > { %v3022_v56 = vadd.f32 %v1040_v54, %v748_v53  ;;  %v2372_v57 = vpop.f32.mrf.mxu0  ;;  %v3035_v53 = vld [vmem:[%s3339_s8] ss:$0 sm:$0xff] }
 0x110   : > { %v2406_v59 = vpop.f32.mrf.mxu1 }
 0x111   : > { %3341 = vst [vmem:[#allocation2_spill] sm:$0xff] %v3022_v56  ;;  %v3024_v60 = vadd.f32 %v2406_v59, %v2372_v57  ;;  %v751_v62 = vpop.f32.mrf.mxu0  ;;  %v940_v57 = vadd.f32 %v2932_v13, %v2930_v12 }
 0x112   : > { %v1043_v1 = vpop.f32.mrf.mxu1 }
 0x113   : > { %3342 = vst [vmem:[#allocation3_spill] sm:$0xff] %v3024_v60  ;;  %v3028_v2 = vadd.f32 %v1043_v1, %v751_v62  ;;  %v2411_v4 = vpop.f32.mrf.mxu0  ;;  %v932_v1 = vadd.f32 %v2936_v15, %v2934_v14 }
 0x114   : > { %v1382_v7 = vadd.f32 %v2411_v4, %v937_v63  ;;  %v2445_v50 = vpop.f32.mrf.mxu1 }
 0x115   : > { %3343 = vst [vmem:[#allocation4_spill] sm:$0xff] %v3028_v2  ;;  %v1253_v54 = vpop.f32.mrf.mxu0 }
 0x116   : > { %v1739_v59 = vadd.f32 %v2445_v50, %v1382_v7  ;;  %v1380_v8 = vadd.f32 %v1253_v54, %v929_v5  ;;  %v1610_v9 = vpop.f32.mrf.mxu1  ;;  %v953_v7 = vadd.f32 %v2940_v17, %v2938_v16 }
 0x117   : > { %v2412_v62 = vpop.f32.mrf.mxu0 }
 0x118   : > { %v3042_v10 = vadd.f32 %v3035_v53, %v1739_v59  ;;  %v1737_v11 = vadd.f32 %v1610_v9, %v1380_v8  ;;  %v1383_v63 = vadd.f32 %v2412_v62, %v940_v57  ;;  %v2446_v4 = vpop.f32.mrf.mxu1  ;;  %v945_v8 = vadd.f32 %v2944_v19, %v2942_v18 }
 0x119   : > { %v1256_v2 = vpop.f32.mrf.mxu0  ;;  %v956_v9 = vadd.f32 %v2948_v21, %v2946_v20 }
 0x11a   : > { %v1810_v60 = vsub.f32 0.0, %v3042_v10  ;;  %v3046_v56 = vadd.f32 %v3035_v53, %v1737_v11  ;;  %v1740_v12 = vadd.f32 %v2446_v4, %v1383_v63  ;;  %v1381_v13 = vadd.f32 %v1256_v2, %v932_v1  ;;  %v1613_v5 = vpop.f32.mrf.mxu1 }
 0x11b   : > { %v2415_v50 = vpop.f32.mrf.mxu0  ;;  %v948_v11 = vadd.f32 %v2952_v23, %v2950_v22 }
 0x11c   : > { %v1844_v14 = vmul.f32 1.442695, %v1810_v60  ;;  %v1808_v15 = vsub.f32 0.0, %v3046_v56  ;;  %v3052_v54 = vadd.f32 %v3035_v53, %v1740_v12  ;;  %v1738_v57 = vadd.f32 %v1613_v5, %v1381_v13  ;;  %v2449_v59 = vpop.f32.mrf.mxu1 }
 0x11d   : > { %v1386_v2 = vadd.f32 %v2415_v50, %v953_v7  ;;  %v1269_v62 = vpop.f32.mrf.mxu0  ;;  %v969_v13 = vadd.f32 %v2956_v25, %v2954_v24 }
 0x11e   : > { %2551 = vpow2.f32 %v1844_v14  ;;  %v1840_v1 = vmul.f32 1.442695, %v1808_v15  ;;  %v1811_v16 = vsub.f32 0.0, %v3052_v54  ;;  %v3060_v17 = vadd.f32 %v3035_v53, %v1738_v57  ;;  %v1626_v60 = vpop.f32.mrf.mxu1 }
 0x11f   : > { %v1743_v63 = vadd.f32 %v2449_v59, %v1386_v2  ;;  %v1384_v4 = vadd.f32 %v1269_v62, %v945_v8  ;;  %v2416_v12 = vpop.f32.mrf.mxu0  ;;  %v961_v57 = vadd.f32 %v2960_v27, %v2958_v26  ;;  %v972_v59 = vadd.f32 %v2964_v29, %v2962_v28 }
 0x120   : > { %2553 = vpow2.f32 %v1840_v1  ;;  %v1846_v18 = vmul.f32 1.442695, %v1811_v16  ;;  %v1809_v19 = vsub.f32 0.0, %v3060_v17  ;;  %v1387_v20 = vadd.f32 %v2416_v12, %v956_v9  ;;  %v2450_v21 = vpop.f32.mrf.mxu1 }
 0x121   : > { %v3068_v5 = vadd.f32 %v3035_v53, %v1743_v63  ;;  %v1741_v7 = vadd.f32 %v1626_v60, %v1384_v4  ;;  %v1272_v50 = vpop.f32.mrf.mxu0  ;;  %v964_v16 = vadd.f32 %v2968_v31, %v2966_v30  ;;  %v985_v26 = vadd.f32 %v2972_v33, %v2970_v32 }
 0x122   : > { %2555 = vpow2.f32 %v1846_v18  ;;  %v1842_v14 = vmul.f32 1.442695, %v1809_v19  ;;  %v1744_v22 = vadd.f32 %v2450_v21, %v1387_v20  ;;  %v1385_v23 = vadd.f32 %v1272_v50, %v948_v11  ;;  %v1629_v15 = vpop.f32.mrf.mxu1 }
 0x123   : > { %v1814_v8 = vsub.f32 0.0, %v3068_v5  ;;  %v3076_v24 = vadd.f32 %v3035_v53, %v1741_v7  ;;  %v2419_v25 = vpop.f32.mrf.mxu0  ;;  %v977_v18 = vadd.f32 %v2976_v35, %v2974_v34  ;;  %v988_v30 = vadd.f32 %v2980_v37, %v2978_v36 }
 0x124   : > { %2557 = vpow2.f32 %v1842_v14  ;;  %v3079_v9 = vadd.f32 %v3035_v53, %v1744_v22  ;;  %v1742_v2 = vadd.f32 %v1629_v15, %v1385_v23  ;;  %v1390_v62 = vadd.f32 %v2419_v25, %v969_v13  ;;  %v2453_v1 = vpop.f32.mrf.mxu1 }
 0x125   : > { %v1852_v27 = vmul.f32 1.442695, %v1814_v8  ;;  %v1812_v28 = vsub.f32 0.0, %v3076_v24  ;;  %v1285_v29 = vpop.f32.mrf.mxu0  ;;  %v980_v7 = vadd.f32 %v2984_v39, %v2982_v38  ;;  %v3102_v34 = vadd.f32 %v2988_v41, %v2986_v40 }
 0x126   : > { %v1815_v60 = vsub.f32 0.0, %v3079_v9  ;;  %v3088_v11 = vadd.f32 %v3035_v53, %v1742_v2  ;;  %v1747_v63 = vadd.f32 %v2453_v1, %v1390_v62  ;;  %v1388_v4 = vadd.f32 %v1285_v29, %v961_v57  ;;  %v1642_v12 = vpop.f32.mrf.mxu1 }
 0x127   : > { %2559 = vpow2.f32 %v1852_v27  ;;  %v1848_v31 = vmul.f32 1.442695, %v1812_v28  ;;  %v2420_v32 = vpop.f32.mrf.mxu0  ;;  %v3110_v15 = vadd.f32 %v2992_v43, %v2990_v42  ;;  %v3114_v38 = vadd.f32 %v2996_v45, %v2994_v44 }
 0x128   : > { %v1854_v33 = vmul.f32 1.442695, %v1815_v60  ;;  %v1813_v19 = vsub.f32 0.0, %v3088_v11  ;;  %v3096_v20 = vadd.f32 %v3035_v53, %v1747_v63  ;;  %v1745_v21 = vadd.f32 %v1642_v12, %v1388_v4  ;;  %v2454_v13 = vpop.f32.mrf.mxu1 }
 0x129   : > { %2561 = vpow2.f32 %v1848_v31  ;;  %v1391_v35 = vadd.f32 %v2420_v32, %v972_v59  ;;  %v1288_v36 = vpop.f32.mrf.mxu0  ;;  %v3119_v62 = vadd.f32 %v3000_v47, %v2998_v46 }
 0x12a   : > { %2563 = vpow2.f32 %v1854_v33  ;;  %v1850_v37 = vmul.f32 1.442695, %v1813_v19  ;;  %v1818_v50 = vsub.f32 0.0, %v3096_v20  ;;  %v3106_v14 = vadd.f32 %v3035_v53, %v1745_v21  ;;  %v1645_v22 = vpop.f32.mrf.mxu1 }
 0x12b   : > { %v2552_v23 = vpop.eup %2551  ;;  %v1748_v39 = vadd.f32 %v2454_v13, %v1391_v35  ;;  %v1389_v40 = vadd.f32 %v1288_v36, %v964_v16  ;;  %v2423_v41 = vpop.f32.mrf.mxu0 }
 0x12c   : > { %v1906_v57 = vadd.f32 1.0, %v2552_v23  ;;  %2565 = vpow2.f32 %v1850_v37  ;;  %v1860_v59 = vmul.f32 1.442695, %v1818_v50  ;;  %v1816_v8 = vsub.f32 0.0, %v3106_v14  ;;  %v2457_v25 = vpop.f32.mrf.mxu1 }
 0x12d   : > { %v2554_v2 = vpop.eup %2553  ;;  %v3122_v42 = vadd.f32 %v3035_v53, %v1748_v39  ;;  %v1746_v43 = vadd.f32 %v1645_v22, %v1389_v40  ;;  %v1394_v44 = vadd.f32 %v2423_v41, %v985_v26  ;;  %v1301_v45 = vpop.f32.mrf.mxu0 }
 0x12e   : > { %2567 = vrcp.f32 %v1906_v57  ;;  %v1904_v1 = vadd.f32 1.0, %v2554_v2  ;;  %v1856_v16 = vmul.f32 1.442695, %v1816_v8  ;;  %v1392_v27 = vadd.f32 %v1301_v45, %v977_v18  ;;  %v1658_v28 = vpop.f32.mrf.mxu1 }
 0x12f   : > { %v2556_v29 = vpop.eup %2555  ;;  %2569 = vpow2.f32 %v1860_v59  ;;  %v1819_v60 = vsub.f32 0.0, %v3122_v42  ;;  %v3126_v63 = vadd.f32 %v3035_v53, %v1746_v43  ;;  %v1751_v46 = vadd.f32 %v2457_v25, %v1394_v44  ;;  %v2424_v47 = vpop.f32.mrf.mxu0 }
 0x130   : > { %2571 = vrcp.f32 %v1904_v1  ;;  %v1907_v4 = vadd.f32 1.0, %v2556_v29  ;;  %v1749_v12 = vadd.f32 %v1658_v28, %v1392_v27  ;;  %v1395_v31 = vadd.f32 %v2424_v47, %v988_v30  ;;  %v2458_v26 = vpop.f32.mrf.mxu1 }
 0x131   : > { %v2558_v32 = vpop.eup %2557  ;;  %2573 = vpow2.f32 %v1856_v16  ;;  %v1862_v33 = vmul.f32 1.442695, %v1819_v60  ;;  %v1817_v18 = vsub.f32 0.0, %v3126_v63  ;;  %v3130_v19 = vadd.f32 %v3035_v53, %v1751_v46  ;;  %v1304_v21 = vpop.f32.mrf.mxu0 }
 0x132   : > { %2575 = vrcp.f32 %v1907_v4  ;;  %v1905_v13 = vadd.f32 1.0, %v2558_v32  ;;  %v3133_v35 = vadd.f32 %v3035_v53, %v1749_v12  ;;  %v1752_v36 = vadd.f32 %v2458_v26, %v1395_v31  ;;  %v1661_v37 = vpop.f32.mrf.mxu1 }
 0x133   : > { %2577 = vpow2.f32 %v1862_v33  ;;  %v1858_v30 = vmul.f32 1.442695, %v1817_v18  ;;  %v1822_v50 = vsub.f32 0.0, %v3130_v19  ;;  %v1393_v22 = vadd.f32 %v1304_v21, %v980_v7  ;;  %v2427_v23 = vpop.f32.mrf.mxu0 }
 0x134   : > { %v2560_v39 = vpop.eup %2559  ;;  %2579 = vrcp.f32 %v1905_v13  ;;  %v1820_v40 = vsub.f32 0.0, %v3133_v35  ;;  %v3138_v41 = vadd.f32 %v3035_v53, %v1752_v36  ;;  %v1398_v57 = vadd.f32 %v2427_v23, %v3102_v34  ;;  %v2461_v59 = vpop.f32.mrf.mxu1 }
 0x135   : > { %v1910_v8 = vadd.f32 1.0, %v2560_v39  ;;  %2581 = vpow2.f32 %v1858_v30  ;;  %v1868_v25 = vmul.f32 1.442695, %v1822_v50  ;;  %v1750_v2 = vadd.f32 %v1661_v37, %v1393_v22  ;;  %v1317_v43 = vpop.f32.mrf.mxu0 }
 0x136   : > { %v2562_v44 = vpop.eup %2561  ;;  %v1017_v7 = vadd.f32 %v3004_v49, %v3002_v48  ;;  %v1823_v45 = vsub.f32 0.0, %v3138_v41  ;;  %v1755_v1 = vadd.f32 %v2461_v59, %v1398_v57  ;;  %v1396_v16 = vadd.f32 %v1317_v43, %v3110_v15  ;;  %v1674_v27 = vpop.f32.mrf.mxu1 }
 0x137   : > { %v2564_v28 = vpop.eup %2563  ;;  %2583 = vrcp.f32 %v1910_v8  ;;  %v1908_v34 = vadd.f32 1.0, %v2562_v44  ;;  %v1864_v29 = vmul.f32 1.442695, %v1820_v40  ;;  %v3146_v60 = vadd.f32 %v3035_v53, %v1750_v2  ;;  %v2428_v46 = vpop.f32.mrf.mxu0 }
 0x138   : > { %v1911_v47 = vadd.f32 1.0, %v2564_v28  ;;  %2585 = vpow2.f32 %v1868_v25  ;;  %v1870_v4 = vmul.f32 1.442695, %v1823_v45  ;;  %v3150_v48 = vadd.f32 %v3035_v53, %v1755_v1  ;;  %v2462_v49 = vpop.f32.mrf.mxu1 }
 0x139   : > { %v2566_v12 = vpop.eup %2565  ;;  %2587 = vrcp.f32 %v1908_v34  ;;  %v1821_v15 = vsub.f32 0.0, %v3146_v60  ;;  %v1753_v31 = vadd.f32 %v1674_v27, %v1396_v16  ;;  %v1399_v26 = vadd.f32 %v2428_v46, %v3114_v38  ;;  %v1320_v32 = vpop.f32.mrf.mxu0 }
 0x13a   : > { %2589 = vrcp.f32 %v1911_v47  ;;  %v1909_v33 = vadd.f32 1.0, %v2566_v12  ;;  %v1826_v18 = vsub.f32 0.0, %v3150_v48  ;;  %v1397_v21 = vadd.f32 %v1320_v32, %v3119_v62  ;;  %v1677_v13 = vpop.f32.mrf.mxu1 }
 0x13b   : > { %v2568_v36 = vpop.eup %2567  ;;  %2591 = vpow2.f32 %v1864_v29  ;;  %v1866_v37 = vmul.f32 1.442695, %v1821_v15  ;;  %v3162_v30 = vadd.f32 %v3035_v53, %v1753_v31  ;;  %v1756_v38 = vadd.f32 %v2462_v49, %v1399_v26  ;;  %v2431_v50 = vpop.f32.mrf.mxu0 }
 0x13c   : > { %v2570_v22 = vpop.eup %2569  ;;  %v1970_v23 = vmul.f32 %v2568_v36, %v3042_v10  ;;  %2593 = vrcp.f32 %v1909_v33  ;;  %v1876_v62 = vmul.f32 1.442695, %v1826_v18  ;;  %v1754_v39 = vadd.f32 %v1677_v13, %v1397_v21  ;;  %v2465_v40 = vpop.f32.mrf.mxu1 }
 0x13d   : > { %v2572_v57 = vpop.eup %2571  ;;  %v1914_v59 = vadd.f32 1.0, %v2570_v22  ;;  %2595 = vpow2.f32 %v1870_v4  ;;  %v1824_v8 = vsub.f32 0.0, %v3162_v30  ;;  %v3167_v25 = vadd.f32 %v3035_v53, %v1756_v38  ;;  %v1333_v2 = vpop.f32.mrf.mxu0 }
 0x13e   : > { %v2574_v43 = vpop.eup %2573  ;;  %2003 = vst.msk [vmem:[%s3159_s18 + $0x10] sm:$0xff] %vm2000_vm2, %v1970_v23  ;;  %v1968_v44 = vmul.f32 %v2572_v57, %v3046_v56  ;;  %2597 = vpow2.f32 %v1866_v37  ;;  %v3173_v10 = vadd.f32 %v3035_v53, %v1754_v39  ;;  %v1402_v45 = vadd.f32 %v2431_v50, %v1017_v7  ;;  %v1690_v1 = vpop.f32.mrf.mxu1 }
 0x13f   : > { %v2576_v16 = vpop.eup %2575  ;;  %2599 = vrcp.f32 %v1914_v59  ;;  %v1912_v27 = vadd.f32 1.0, %v2574_v43  ;;  %v1872_v28 = vmul.f32 1.442695, %v1824_v8  ;;  %v1827_v34 = vsub.f32 0.0, %v3167_v25  ;;  %v2432_v29 = vpop.f32.mrf.mxu0 }
 0x140   : > { %v2578_v46 = vpop.eup %2577  ;;  %2001 = vst.msk [vmem:[%s3159_s18] sm:$0xff] %vm2000_vm2, %v1968_v44  ;;  %v1971_v47 = vmul.f32 %v2576_v16, %v3052_v54  ;;  %2601 = vpow2.f32 %v1876_v62  ;;  %v1825_v56 = vsub.f32 0.0, %v3173_v10  ;;  %v1759_v4 = vadd.f32 %v2465_v40, %v1402_v45  ;;  %v2466_v49 = vpop.f32.mrf.mxu1 }
 0x141   : > { %v2580_v7 = vpop.eup %2579  ;;  %2603 = vrcp.f32 %v1912_v27  ;;  %v1915_v12 = vadd.f32 1.0, %v2578_v46  ;;  %v1878_v15 = vmul.f32 1.442695, %v1827_v34  ;;  %v1400_v31 = vadd.f32 %v1333_v2, %v3006_v52  ;;  %v1336_v26 = vpop.f32.mrf.mxu0 }
 0x142   : > { %v2582_v32 = vpop.eup %2581  ;;  %2004 = vst.msk [vmem:[%s3159_s18 + $0x18] sm:$0xff] %vm2000_vm2, %v1971_v47  ;;  %v1969_v33 = vmul.f32 %v2580_v7, %v3060_v17  ;;  %2605 = vpow2.f32 %v1872_v28  ;;  %v1874_v54 = vmul.f32 1.442695, %v1825_v56  ;;  %v3185_v18 = vadd.f32 %v3035_v53, %v1759_v4  ;;  %v1693_v21 = vpop.f32.mrf.mxu1 }
 0x143   : > { %2607 = vrcp.f32 %v1915_v12  ;;  %v1913_v13 = vadd.f32 1.0, %v2582_v32  ;;  %v1757_v36 = vadd.f32 %v1690_v1, %v1400_v31  ;;  %v1403_v37 = vadd.f32 %v2432_v29, %v3008_v55  ;;  %v2435_v38 = vpop.f32.mrf.mxu0 }
 0x144   : > { %v2584_v50 = vpop.eup %2583  ;;  %2002 = vst.msk [vmem:[%s3159_s18 + $0x8] sm:$0xff] %vm2000_vm2, %v1969_v33  ;;  %2609 = vpow2.f32 %v1878_v15  ;;  %v1830_v52 = vsub.f32 0.0, %v3185_v18  ;;  %v1401_v17 = vadd.f32 %v1336_v26, %v3010_v58  ;;  %v1406_v22 = vadd.f32 %v2435_v38, %v3012_v61  ;;  %v2469_v23 = vpop.f32.mrf.mxu1 }
 0x145   : > { %v2586_v62 = vpop.eup %2585  ;;  %v1974_v39 = vmul.f32 %v2584_v50, %v3068_v5  ;;  %2611 = vrcp.f32 %v1913_v13  ;;  %v3195_v40 = vadd.f32 %v3035_v53, %v1757_v36  ;;  %v1760_v55 = vadd.f32 %v2466_v49, %v1403_v37  ;;  %v1349_v57 = vpop.f32.mrf.mxu0 }
 0x146   : > { %v2588_v59 = vpop.eup %2587  ;;  %v1918_v8 = vadd.f32 1.0, %v2586_v62  ;;  %2613 = vpow2.f32 %v1874_v54  ;;  %v1884_v2 = vmul.f32 1.442695, %v1830_v52  ;;  %v1758_v43 = vadd.f32 %v1693_v21, %v1401_v17  ;;  %v1706_v58 = vpop.f32.mrf.mxu1 }
 0x147   : > { %v2590_v44 = vpop.eup %2589  ;;  %2007 = vst.msk [vmem:[%s3159_s18 + $0x30] sm:$0xff] %vm2000_vm2, %v1974_v39  ;;  %v1972_v61 = vmul.f32 %v2588_v59, %v3076_v24  ;;  %v1828_v5 = vsub.f32 0.0, %v3195_v40  ;;  %v3202_v45 = vadd.f32 %v3035_v53, %v1760_v55  ;;  %v1763_v1 = vadd.f32 %v2469_v23, %v1406_v22  ;;  %v2436_v16 = vpop.f32.mrf.mxu0 }
 0x148   : > { %v2592_v27 = vpop.eup %2591  ;;  %v1975_v28 = vmul.f32 %v2590_v44, %v3079_v9  ;;  %2615 = vrcp.f32 %v1918_v8  ;;  %v3206_v34 = vadd.f32 %v3035_v53, %v1758_v43  ;;  %v1404_v29 = vadd.f32 %v1349_v57, %v3014_v0  ;;  %v2470_v46 = vpop.f32.mrf.mxu1 }
 0x149   : > { %v2594_v47 = vpop.eup %2593  ;;  %2005 = vst.msk [vmem:[%s3159_s18 + $0x20] sm:$0xff] %vm2000_vm2, %v1972_v61  ;;  %v1916_v24 = vadd.f32 1.0, %v2592_v27  ;;  %2617 = vpow2.f32 %v1884_v2  ;;  %v1880_v56 = vmul.f32 1.442695, %v1828_v5  ;;  %v1831_v4 = vsub.f32 0.0, %v3202_v45  ;;  %v1352_v49 = vpop.f32.mrf.mxu0 }
 0x14a   : > { %v2596_v7 = vpop.eup %2595  ;;  %2008 = vst.msk [vmem:[%s3159_s18 + $0x38] sm:$0xff] %vm2000_vm2, %v1975_v28  ;;  %v1973_v9 = vmul.f32 %v2594_v47, %v3088_v11  ;;  %v1829_v12 = vsub.f32 0.0, %v3206_v34  ;;  %v3217_v0 = vadd.f32 %v3035_v53, %v1763_v1  ;;  %v1761_v15 = vadd.f32 %v1706_v58, %v1404_v29  ;;  %v1709_v31 = vpop.f32.mrf.mxu1 }
 0x14b   : > { %v2598_v26 = vpop.eup %2597  ;;  %2619 = vrcp.f32 %v1916_v24  ;;  %v1919_v32 = vadd.f32 1.0, %v2596_v7  ;;  %v1886_v33 = vmul.f32 1.442695, %v1831_v4  ;;  %v1407_v54 = vadd.f32 %v2436_v16, %v3016_v3  ;;  %v2439_v21 = vpop.f32.mrf.mxu0 }
 0x14c   : > { %v2600_v13 = vpop.eup %2599  ;;  %2006 = vst.msk [vmem:[%s3159_s18 + $0x28] sm:$0xff] %vm2000_vm2, %v1973_v9  ;;  %v1917_v36 = vadd.f32 1.0, %v2598_v26  ;;  %2621 = vpow2.f32 %v1880_v56  ;;  %v1882_v11 = vmul.f32 1.442695, %v1829_v12  ;;  %v1834_v37 = vsub.f32 0.0, %v3217_v0  ;;  %v2473_v38 = vpop.f32.mrf.mxu1  ;;  %v3344_v56 = vld [vmem:[#allocation2_spill] sm:$0xff] }
 0x14d   : > { %v2602_v50 = vpop.eup %2601  ;;  %v1978_v52 = vmul.f32 %v2600_v13, %v3096_v20  ;;  %2623 = vrcp.f32 %v1919_v32  ;;  %v3225_v17 = vadd.f32 %v3035_v53, %v1761_v15  ;;  %v1764_v22 = vadd.f32 %v2470_v46, %v1407_v54  ;;  %v1365_v3 = vpop.f32.mrf.mxu0  ;;  %v3345_v26 = vld [vmem:[#allocation3_spill] sm:$0xff]  ;;  %v3346_v32 = vld [vmem:[#allocation4_spill] sm:$0xff] }
 0x14e   : > { %v2604_v23 = vpop.eup %2603  ;;  %2625 = vrcp.f32 %v1917_v36  ;;  %v1922_v62 = vadd.f32 1.0, %v2602_v50  ;;  %v1892_v39 = vmul.f32 1.442695, %v1834_v37  ;;  %v1405_v55 = vadd.f32 %v1352_v49, %v3018_v6  ;;  %v1722_v2 = vpop.f32.mrf.mxu1 }
 0x14f   : > { %v2606_v57 = vpop.eup %2605  ;;  %2011 = vst.msk [vmem:[%s3159_s18 + $0x50] sm:$0xff] %vm2000_vm2, %v1978_v52  ;;  %v1976_v59 = vmul.f32 %v2604_v23, %v3106_v14  ;;  %2627 = vpow2.f32 %v1886_v33  ;;  %v1832_v20 = vsub.f32 0.0, %v3225_v17  ;;  %v3233_v8 = vadd.f32 %v3035_v53, %v1764_v22  ;;  %v2440_v43 = vpop.f32.mrf.mxu0 }
 0x150   : > { %v2608_v58 = vpop.eup %2607  ;;  %2629 = vrcp.f32 %v1922_v62  ;;  %v1920_v44 = vadd.f32 1.0, %v2606_v57  ;;  %v1762_v61 = vadd.f32 %v1709_v31, %v1405_v55  ;;  %v1410_v6 = vadd.f32 %v2439_v21, %v3020_v51  ;;  %v2474_v49 = vpop.f32.mrf.mxu1 }
 0x151   : > { %v2610_v5 = vpop.eup %2609  ;;  %2009 = vst.msk [vmem:[%s3159_s18 + $0x40] sm:$0xff] %vm2000_vm2, %v1976_v59  ;;  %v1979_v14 = vmul.f32 %v2608_v58, %v3122_v42  ;;  %2631 = vpow2.f32 %v1882_v11  ;;  %v1888_v1 = vmul.f32 1.442695, %v1832_v20  ;;  %v1835_v16 = vsub.f32 0.0, %v3233_v8  ;;  %v1368_v47 = vpop.f32.mrf.mxu0 }
 0x152   : > { %v2612_v27 = vpop.eup %2611  ;;  %2633 = vrcp.f32 %v1920_v44  ;;  %v1923_v28 = vadd.f32 1.0, %v2610_v5  ;;  %v3241_v29 = vadd.f32 %v3035_v53, %v1762_v61  ;;  %v1767_v46 = vadd.f32 %v2473_v38, %v1410_v6  ;;  %v1725_v50 = vpop.f32.mrf.mxu1 }
 0x153   : > { %v2614_v24 = vpop.eup %2613  ;;  %2012 = vst.msk [vmem:[%s3159_s18 + $0x58] sm:$0xff] %vm2000_vm2, %v1979_v14  ;;  %v1977_v51 = vmul.f32 %v2612_v27, %v3126_v63  ;;  %2635 = vpow2.f32 %v1892_v39  ;;  %v1894_v42 = vmul.f32 1.442695, %v1835_v16  ;;  %v1408_v4 = vadd.f32 %v1365_v3, %v3344_v56 }
 0x154   : > { %2637 = vrcp.f32 %v1923_v28  ;;  %v1921_v7 = vadd.f32 1.0, %v2614_v24  ;;  %v1833_v9 = vsub.f32 0.0, %v3241_v29  ;;  %v3249_v12 = vadd.f32 %v3035_v53, %v1767_v46 }
 0x155   : > { %v2616_v15 = vpop.eup %2615  ;;  %2010 = vst.msk [vmem:[%s3159_s18 + $0x48] sm:$0xff] %vm2000_vm2, %v1977_v51  ;;  %2639 = vpow2.f32 %v1888_v1  ;;  %v1765_v31 = vadd.f32 %v1722_v2, %v1408_v4  ;;  %v1411_v63 = vadd.f32 %v2440_v43, %v3345_v26  ;;  %v1409_v33 = vadd.f32 %v1368_v47, %v3346_v32 }
 0x156   : > { %v2618_v54 = vpop.eup %2617  ;;  %v1982_v21 = vmul.f32 %v2616_v15, %v3130_v19  ;;  %2641 = vrcp.f32 %v1921_v7  ;;  %v1890_v13 = vmul.f32 1.442695, %v1833_v9  ;;  %v1838_v36 = vsub.f32 0.0, %v3249_v12 }
 0x157   : > { %v1926_v11 = vadd.f32 1.0, %v2618_v54  ;;  %2643 = vpow2.f32 %v1894_v42  ;;  %v3258_v37 = vadd.f32 %v3035_v53, %v1765_v31  ;;  %v1768_v38 = vadd.f32 %v2474_v49, %v1411_v63 }
 0x158   : > { %v2620_v52 = vpop.eup %2619  ;;  %2015 = vst.msk [vmem:[%s3159_s18 + $0x70] sm:$0xff] %vm2000_vm2, %v1982_v21  ;;  %2645 = vpow2.f32 %v1890_v13  ;;  %v1900_v22 = vmul.f32 1.442695, %v1838_v36  ;;  %v1766_v3 = vadd.f32 %v1725_v50, %v1409_v33 }
 0x159   : > { %v2622_v23 = vpop.eup %2621  ;;  %v1980_v19 = vmul.f32 %v2620_v52, %v3133_v35  ;;  %2647 = vrcp.f32 %v1926_v11  ;;  %v1836_v62 = vsub.f32 0.0, %v3258_v37  ;;  %v3265_v39 = vadd.f32 %v3035_v53, %v1768_v38 }
 0x15a   : > { %v2624_v55 = vpop.eup %2623  ;;  %v1924_v57 = vadd.f32 1.0, %v2622_v23  ;;  %2649 = vpow2.f32 %v1900_v22  ;;  %v3268_v59 = vadd.f32 %v3035_v53, %v1766_v3 }
 0x15b   : > { %v2626_v20 = vpop.eup %2625  ;;  %2013 = vst.msk [vmem:[%s3159_s18 + $0x60] sm:$0xff] %vm2000_vm2, %v1980_v19  ;;  %v1983_v2 = vmul.f32 %v2624_v55, %v3138_v41  ;;  %v1896_v35 = vmul.f32 1.442695, %v1836_v62  ;;  %v1839_v43 = vsub.f32 0.0, %v3265_v39 }
 0x15c   : > { %v2628_v58 = vpop.eup %2627  ;;  %v1981_v44 = vmul.f32 %v2626_v20, %v3146_v60  ;;  %2651 = vrcp.f32 %v1924_v57  ;;  %v1837_v61 = vsub.f32 0.0, %v3268_v59 }
 0x15d   : > { %v2630_v6 = vpop.eup %2629  ;;  %2016 = vst.msk [vmem:[%s3159_s18 + $0x78] sm:$0xff] %vm2000_vm2, %v1983_v2  ;;  %v1927_v53 = vadd.f32 1.0, %v2628_v58  ;;  %2653 = vpow2.f32 %v1896_v35  ;;  %v1902_v5 = vmul.f32 1.442695, %v1839_v43 }
 0x15e   : > { %v2632_v14 = vpop.eup %2631  ;;  %2014 = vst.msk [vmem:[%s3159_s18 + $0x68] sm:$0xff] %vm2000_vm2, %v1981_v44  ;;  %v1986_v41 = vmul.f32 %v2630_v6, %v3150_v48  ;;  %v1898_v1 = vmul.f32 1.442695, %v1837_v61 }
 0x15f   : > { %v2634_v16 = vpop.eup %2633  ;;  %2655 = vrcp.f32 %v1927_v53  ;;  %v1925_v60 = vadd.f32 1.0, %v2632_v14 }
 0x160   : > { %v2636_v27 = vpop.eup %2635  ;;  %2019 = vst.msk [vmem:[%s3159_s18 + $0x90] sm:$0xff] %vm2000_vm2, %v1986_v41  ;;  %v1984_v28 = vmul.f32 %v2634_v16, %v3162_v30  ;;  %2657 = vpow2.f32 %v1902_v5 }
 0x161   : > { %v2638_v46 = vpop.eup %2637  ;;  %2659 = vrcp.f32 %v1925_v60  ;;  %v1930_v47 = vadd.f32 1.0, %v2636_v27 }
 0x162   : > { %v2640_v24 = vpop.eup %2639  ;;  %2017 = vst.msk [vmem:[%s3159_s18 + $0x80] sm:$0xff] %vm2000_vm2, %v1984_v28  ;;  %v1987_v48 = vmul.f32 %v2638_v46, %v3167_v25  ;;  %2661 = vpow2.f32 %v1898_v1 }
 0x163   : > { %v2642_v51 = vpop.eup %2641  ;;  %2663 = vrcp.f32 %v1930_v47  ;;  %v1928_v42 = vadd.f32 1.0, %v2640_v24 }
 0x164   : > { %v2644_v56 = vpop.eup %2643  ;;  %2020 = vst.msk [vmem:[%s3159_s18 + $0x98] sm:$0xff] %vm2000_vm2, %v1987_v48  ;;  %v1985_v30 = vmul.f32 %v2642_v51, %v3173_v10 }
 0x165   : > { %v2646_v4 = vpop.eup %2645  ;;  %2665 = vrcp.f32 %v1928_v42  ;;  %v1931_v49 = vadd.f32 1.0, %v2644_v56 }
 0x166   : > { %v2648_v7 = vpop.eup %2647  ;;  %2018 = vst.msk [vmem:[%s3159_s18 + $0x88] sm:$0xff] %vm2000_vm2, %v1985_v30  ;;  %v1929_v9 = vadd.f32 1.0, %v2646_v4 }
 0x167   : > { %v2650_v15 = vpop.eup %2649  ;;  %v1990_v25 = vmul.f32 %v2648_v7, %v3185_v18  ;;  %2667 = vrcp.f32 %v1931_v49 }
 0x168   : > { %2669 = vrcp.f32 %v1929_v9  ;;  %v1934_v31 = vadd.f32 1.0, %v2650_v15 }
 0x169   : > { %v2652_v26 = vpop.eup %2651  ;;  %2023 = vst.msk [vmem:[%s3159_s18 + $0xb0] sm:$0xff] %vm2000_vm2, %v1990_v25 }
 0x16a   : > { %v2654_v63 = vpop.eup %2653  ;;  %v1988_v10 = vmul.f32 %v2652_v26, %v3195_v40  ;;  %2671 = vrcp.f32 %v1934_v31 }
 0x16b   : > { %v1932_v32 = vadd.f32 1.0, %v2654_v63 }
 0x16c   : > { %v2656_v33 = vpop.eup %2655  ;;  %2021 = vst.msk [vmem:[%s3159_s18 + $0xa0] sm:$0xff] %vm2000_vm2, %v1988_v10 }
 0x16d   : > { %v2658_v54 = vpop.eup %2657  ;;  %v1991_v18 = vmul.f32 %v2656_v33, %v3202_v45  ;;  %2673 = vrcp.f32 %v1932_v32 }
 0x16e   : > { %v2660_v21 = vpop.eup %2659  ;;  %v1935_v13 = vadd.f32 1.0, %v2658_v54 }
 0x16f   : > { %v2662_v36 = vpop.eup %2661  ;;  %2024 = vst.msk [vmem:[%s3159_s18 + $0xb8] sm:$0xff] %vm2000_vm2, %v1991_v18  ;;  %v1989_v11 = vmul.f32 %v2660_v21, %v3206_v34 }
 0x170   : > { %v2664_v40 = vpop.eup %2663  ;;  %2675 = vrcp.f32 %v1935_v13  ;;  %v1933_v38 = vadd.f32 1.0, %v2662_v36 }
 0x171   : > { %2022 = vst.msk [vmem:[%s3159_s18 + $0xa8] sm:$0xff] %vm2000_vm2, %v1989_v11  ;;  %v1994_v50 = vmul.f32 %v2664_v40, %v3217_v0 }
 0x172   : > { %v2666_v45 = vpop.eup %2665  ;;  %2677 = vrcp.f32 %v1933_v38 }
 0x173   : > { %2027 = vst.msk [vmem:[%s3159_s18 + $0xd0] sm:$0xff] %vm2000_vm2, %v1994_v50  ;;  %v1992_v52 = vmul.f32 %v2666_v45, %v3225_v17 }
 0x174   : > { %v2668_v22 = vpop.eup %2667 }
 0x175   : > { %v2670_v34 = vpop.eup %2669  ;;  %2025 = vst.msk [vmem:[%s3159_s18 + $0xc0] sm:$0xff] %vm2000_vm2, %v1992_v52  ;;  %v1995_v3 = vmul.f32 %v2668_v22, %v3233_v8 }
 0x176   : > { %v1993_v23 = vmul.f32 %v2670_v34, %v3241_v29 }
 0x177   : > { %v2672_v19 = vpop.eup %2671  ;;  %2028 = vst.msk [vmem:[%s3159_s18 + $0xd8] sm:$0xff] %vm2000_vm2, %v1995_v3 }
 0x178   : > { %2026 = vst.msk [vmem:[%s3159_s18 + $0xc8] sm:$0xff] %vm2000_vm2, %v1993_v23  ;;  %v1998_v0 = vmul.f32 %v2672_v19, %v3249_v12 }
 0x17a   : > { %v2674_v62 = vpop.eup %2673  ;;  %2031 = vst.msk [vmem:[%s3159_s18 + $0xf0] sm:$0xff] %vm2000_vm2, %v1998_v0 }
 0x17b   : > { %v1996_v17 = vmul.f32 %v2674_v62, %v3258_v37 }
 0x17d   : > { %v2676_v55 = vpop.eup %2675  ;;  %2029 = vst.msk [vmem:[%s3159_s18 + $0xe0] sm:$0xff] %vm2000_vm2, %v1996_v17 }
 0x17e   : > { %v1999_v57 = vmul.f32 %v2676_v55, %v3265_v39 }
 0x17f   : > { %v2678_v8 = vpop.eup %2677 }
 0x180   : > { %2032 = vst.msk [vmem:[%s3159_s18 + $0xf8] sm:$0xff] %vm2000_vm2, %v1999_v57  ;;  %v1997_v29 = vmul.f32 %v2678_v8, %v3268_v59 }
 0x182   : > { %2030 = vst.msk [vmem:[%s3159_s18 + $0xe8] sm:$0xff] %vm2000_vm2, %v1997_v29 }
 0x183 PF: > { %s19_s30 = sadd.s32 1, %s2685_s30  }
 0x184   : > { %p16_p4 = scmp.ge.s32.totalorder %s19_s30, 4  }
 0x186   :  { %18 = sbr.rel (!%p16_p4) target bundleno = 1 (0x1), region = 95 }

// kernel: elan1_forward.9
= control target key start
LH: loop header
LB: loop body
LE: loop exit
PB: predicated region body
PF: predicated region fallthrough
CT: control target
= control target key end

     0   :  { %s4288_s12 = smov 0   ;;  %s5965_s0 = inlined_call_operand.vmem [shape: bf16[2,18,18,2], index: 0, kind: input, shape index: {}]   ;;  %s5966_s1 = inlined_call_operand.vmem [shape: bf16[9,2,2], index: 1, kind: input, shape index: {}]   ;;  %s5967_s2 = inlined_call_operand.vmem [shape: f32[1,2], index: 2, kind: input, shape index: {}]   ;;  %s5968_s3 = inlined_call_operand.vmem [shape: bf16[2,16,16,2], index: 3, kind: output, shape index: {}]  }
   0x1 LB: > { %s3334_s13 = sadd.s32 4294967295, %s4266_s12   ;;  %p3338_p0 = scmp.ge.s32.totalorder %s4266_s12, 1  ;;  %s4266_s12 = sphi %s4288_s12, %s13_s12  }
   0x2   : > { %p137_p1 = scmp.lt.s32.totalorder %s4266_s12, 3 }
   0x4   : > { %p138_p2 = pnand %p3338_p0, %p137_p1 }
   0x6   : > { %141 = sbr.rel (%p138_p2) target bundleno = 603 (0x25b), region = 32 }
   0xb   : > { %v3342_v0 = vld [vmem:[%s5966_s1 + $0x1] sm:$0x1]  ;;  %vm713_vm0 = vcmask 1040384   ;;  %p161_p3 = scmp.lt.s32.totalorder %s3334_s13, 1  ;;  %v226_v2 = vld [vmem:[%s5966_s1] sm:$0x1] }
   0xc   : > { %4096 = vmatprep.subr.msk.bf16.mxu1 %vm713_vm0, %v3342_v0  ;;  %4095 = vmatprep.subr.msk.bf16.mxu0 %vm713_vm0, %v3342_v0  ;;  %v715_v1 = vsel %vm713_vm0, %v3342_v0, 0  ;;  %v3423_v3 = vld [vmem:[%s5966_s1 + $0x2] sm:$0x1]  ;;  %vm227_vm1 = vsmask.f32 3328  ;;  %v4319_v4 = vsel %vm713_vm0, %v226_v2, 0 }
   0xd   : > { %4094 = vmatpush3.bf16.msra.mxu1 %v715_v1  ;;  %3788 = vmatpush3.bf16.msra.mxu0 %v715_v1  ;;  %s6138_s13 = smov (!%p161_p3, %s3334_s13), 1  ;;  %vm228_vm2 = vsmask.f32 7440  ;;  %v4322_v5 = vsel %vm713_vm0, %v3423_v3, 0  ;;  %vm664_vm3 = vcmask 15360   ;;  %v6012_v32 = vmov 0 }
   0xe   : > { %4097 = vmatprep.subr.msk.bf16.mxu1 %vm713_vm0, %v226_v2  ;;  %4098 = vmatprep.subr.msk.bf16.mxu0 %vm713_vm0, %v3423_v3  ;;  %s4105_s20 = smul.u32 216, %s6138_s13  ;;  %vm4361_vm4 = vmor %vm227_vm1, %vm228_vm2  ;;  %vm1186_vm5 = vcmask 1042432   ;;  %vm1187_vm6 = vcmask 1046532   ;;  %vm3246_vm8 = vcmask 11264   ;;  %s3601_s11 = sshll.u32 %s6138_s13, 7 }
   0xf   : > { %v6013_v32 = vsel %vm4361_vm4, 4294967295, %v6012_v32  ;;  %vm4684_vm7 = vmor %vm1186_vm5, %vm1187_vm6  ;;  %s5779_s15 = scalar_lea.vmem %s5968_s3, %s3601_s11 }
  0x10   : > { %s4316_s23 = scalar_lea.vmem %s5965_s0, %s4105_s20  ;;  %6014 = vst [vmem:[#allocation2_spill] sm:$0xff] %v6013_v32 }
  0x11   : > { %v4325_v6 = vld [vmem:[%s4316_s23] sm:$0xf]  ;;  %v4328_v7 = vld [vmem:[%s4316_s23 + $0x4] sm:$0xf]  ;;  %v4331_v8 = vld [vmem:[%s4316_s23 + $0x8] sm:$0x1] }
  0x12   : > { %v231_v9 = vshrl.u32 %v4325_v6, 16  ;;  %v234_v10 = vshll.u32 %v4325_v6, 16  ;;  %v240_v11 = vshll.u32 %v4328_v7, 16  ;;  %v244_v12 = vshrl.u32 %v4328_v7, 16  ;;  %v4338_v13 = vld [vmem:[%s4316_s23 + $0x60] sm:$0xf] }
  0x13   : > { %v250_v14 = vshll.u32 %v4331_v8, 16  ;;  %v4343_v16 = vld [vmem:[%s4316_s23 + $0x64] sm:$0xf]  ;;  %v4346_v17 = vld [vmem:[%s4316_s23 + $0x68] sm:$0x1]  ;;  %v423_v23 = vshrl.u32 %v4338_v13, 16 }
  0x14   : > { %v233_v18 = vrot.slane %v231_v9, 4  ;;  %v236_v19 = vrot.slane %v234_v10, 5  ;;  %v242_v20 = vrot.slane %v240_v11, 5  ;;  %v246_v21 = vrot.slane %v244_v12, 4  ;;  %v4354_v30 = vld [vmem:[%s4316_s23 + $0xc] sm:$0xf] }
  0x15   : > { %v252_v22 = vrot.slane %v250_v14, 5  ;;  %v426_v24 = vshll.u32 %v4338_v13, 16  ;;  %v432_v25 = vshll.u32 %v4343_v16, 16  ;;  %v436_v28 = vshrl.u32 %v4343_v16, 16  ;;  %v4357_v31 = vld [vmem:[%s4316_s23 + $0x10] sm:$0xf] }
  0x16   : > { %v237_v26 = vor.u32 %v236_v19, %v233_v18  ;;  %v247_v27 = vor.u32 %v246_v21, %v242_v20  ;;  %v442_v29 = vshll.u32 %v4346_v17, 16  ;;  %v425_v33 = vrot.slane %v423_v23, 4  ;;  %v4368_v42 = vld [vmem:[%s4316_s23 + $0x14] sm:$0x1]  ;;  %v4379_v54 = vld [vmem:[%s4316_s23 + $0x6c] sm:$0xf] }
  0x17   : > { %v428_v34 = vrot.slane %v426_v24, 5  ;;  %v434_v35 = vrot.slane %v432_v25, 5  ;;  %v438_v39 = vrot.slane %v436_v28, 4  ;;  %v255_v43 = vshrl.u32 %v4354_v30, 16  ;;  %6015 = vst [vmem:[#allocation3_spill] sm:$0xff] %v4379_v54 }
  0x18   : > { %v238_v37 = vrot.slane %v237_v26, 4  ;;  %v248_v38 = vrot.slane %v247_v27, 4  ;;  %v444_v40 = vrot.slane %v442_v29, 5  ;;  %v258_v44 = vshll.u32 %v4354_v30, 16  ;;  %v4383_v59 = vld [vmem:[%s4316_s23 + $0x70] sm:$0xf] }
  0x19   : > { %v429_v41 = vor.u32 %v428_v34, %v425_v33  ;;  %v264_v45 = vshll.u32 %v4357_v31, 16  ;;  %v439_v48 = vor.u32 %v438_v39, %v434_v35  ;;  %v268_v49 = vshrl.u32 %v4357_v31, 16  ;;  %v4391_v0 = vld [vmem:[%s4316_s23 + $0x74] sm:$0x1]  ;;  %v4397_v10 = vld [vmem:[%s4316_s23 + $0x18] sm:$0xf] }
  0x1a   : > { %v243_v46 = vsel %vm4361_vm4, %v238_v37, %v242_v20  ;;  %v253_v47 = vsel %vm4361_vm4, %v248_v38, %v252_v22  ;;  %v257_v52 = vrot.slane %v255_v43, 4  ;;  %v260_v53 = vrot.slane %v258_v44, 5  ;;  %6016 = vst [vmem:[#allocation4_spill] sm:$0xff] %v4391_v0  ;;  %v4406_v23 = vld [vmem:[%s4316_s23 + $0x1c] sm:$0xf] }
  0x1b   : > { %v3343_v50 = vcombine.low %v243_v46, %v253_v47  ;;  %v430_v51 = vrot.slane %v429_v41, 4  ;;  %v440_v55 = vrot.slane %v439_v48, 4  ;;  %v266_v56 = vrot.slane %v264_v45, 5  ;;  %v4413_v27 = vld [vmem:[%s4316_s23 + $0x20] sm:$0x1] }
  0x1c   : > { %v270_v57 = vrot.slane %v268_v49, 4  ;;  %v274_v58 = vshll.u32 %v4368_v42, 16  ;;  %v261_v61 = vor.u32 %v260_v53, %v257_v52  ;;  %v447_v9 = vshrl.u32 %v4379_v54, 16  ;;  %v4420_v37 = vld [vmem:[%s4316_s23 + $0x78] sm:$0xf] }
  0x1d   : > { %3789 = vmatprep.mubr.msk.bf16.mxu0 %vm664_vm3, %v3343_v50  ;;  %v435_v60 = vsel %vm4361_vm4, %v430_v51, %v434_v35  ;;  %v445_v1 = vsel %vm4361_vm4, %v440_v55, %v444_v40  ;;  %v450_v14 = vshll.u32 %v4379_v54, 16  ;;  %v456_v18 = vshll.u32 %v4383_v59, 16  ;;  %6018 = vst [vmem:[#allocation6_spill] sm:$0xff] %v4420_v37  ;;  %v4428_v43 = vld [vmem:[%s5966_s1 + $0x4] sm:$0x1] }
  0x1e   : > { %v271_v2 = vor.u32 %v270_v57, %v266_v56  ;;  %v276_v3 = vrot.slane %v274_v58, 5  ;;  %v4399_v11 = vcombine.low %v435_v60, %v445_v1  ;;  %v262_v12 = vrot.slane %v261_v61, 4  ;;  %v4433_v48 = vld [vmem:[%s4316_s23 + $0x7c] sm:$0xf]  ;;  %v4441_v58 = vld [vmem:[%s4316_s23 + $0x80] sm:$0x1] }
  0x1f   : > { %v449_v20 = vrot.slane %v447_v9, 4  ;;  %v460_v21 = vshrl.u32 %v4383_v59, 16  ;;  %v466_v22 = vshll.u32 %v4391_v0, 16  ;;  %v452_v25 = vrot.slane %v450_v14, 5  ;;  %6020 = vst [vmem:[#allocation8_spill] sm:$0xff] %v4433_v48  ;;  %6021 = vst [vmem:[#allocation9_spill] sm:$0xff] %v4441_v58 }
  0x20   : > { %6017 = vst [vmem:[#allocation5_spill] sm:$0xff] %v4399_v11  ;;  %v272_v19 = vrot.slane %v271_v2, 4  ;;  %3805 = vmatprep.mubr.msk.bf16.mxu1 %vm664_vm3, %v4399_v11  ;;  %v267_v24 = vsel %vm4361_vm4, %v262_v12, %v266_v56  ;;  %v458_v26 = vrot.slane %v456_v18, 5  ;;  %v279_v28 = vshrl.u32 %v4397_v10, 16  ;;  %v4455_v18 = vld [vmem:[%s4316_s23 + $0x28] sm:$0xf] }
  0x21   : > { %v462_v33 = vrot.slane %v460_v21, 4  ;;  %v468_v34 = vrot.slane %v466_v22, 5  ;;  %v282_v35 = vshll.u32 %v4397_v10, 16  ;;  %v453_v39 = vor.u32 %v452_v25, %v449_v20 }
  0x22   : > { %v277_v29 = vsel %vm4361_vm4, %v272_v19, %v276_v3  ;;  %v281_v40 = vrot.slane %v279_v28, 4  ;;  %v288_v41 = vshll.u32 %v4406_v23, 16  ;;  %v292_v46 = vshrl.u32 %v4406_v23, 16  ;;  %v4447_v3 = vld [vmem:[%s4316_s23 + $0x24] sm:$0xf] }
  0x23   : > { %v4422_v38 = vcombine.low %v267_v24, %v277_v29  ;;  %v463_v44 = vor.u32 %v462_v33, %v458_v26  ;;  %v284_v45 = vrot.slane %v282_v35, 5  ;;  %v298_v47 = vshll.u32 %v4413_v27, 16  ;;  %v4463_v24 = vld [vmem:[%s5966_s1 + $0x3] sm:$0x1]  ;;  %v4468_v29 = vld [vmem:[%s4316_s23 + $0x2c] sm:$0x1] }
  0x24   : > { %v454_v49 = vrot.slane %v453_v39, 4  ;;  %v290_v50 = vrot.slane %v288_v41, 5  ;;  %v471_v51 = vshrl.u32 %v4420_v37, 16  ;;  %v474_v52 = vshll.u32 %v4420_v37, 16  ;;  %v4476_v41 = vld [vmem:[%s4316_s23 + $0x84] sm:$0xf] }
  0x25   : > { %6019 = vst [vmem:[#allocation7_spill] sm:$0xff] %v4422_v38  ;;  %3790 = vmatmul.mubr.msk.bf16.vlgmr.msra.gmra.mxu0 %vm664_vm3, %v4422_v38  ;;  %v464_v53 = vrot.slane %v463_v44, 4  ;;  %v285_v55 = vor.u32 %v284_v45, %v281_v40  ;;  %v294_v56 = vrot.slane %v292_v46, 4  ;;  %v300_v57 = vrot.slane %v298_v47, 5  ;;  %v4623_v38 = vld [vmem:[%s4316_s23 + $0xb0] sm:$0x1] }
  0x26   : > { %3856 = vmatpush3.bf16.msra.mxu0 %v4322_v5  ;;  %v459_v60 = vsel %vm4361_vm4, %v454_v49, %v458_v26  ;;  %v473_v61 = vrot.slane %v471_v51, 4  ;;  %v476_v1 = vrot.slane %v474_v52, 5  ;;  %v480_v2 = vshll.u32 %v4433_v48, 16  ;;  %v4483_v49 = vld [vmem:[%s4316_s23 + $0x88] sm:$0xf]  ;;  %6033 = vst [vmem:[#allocation21_spill] sm:$0xff] %v4623_v38 }
  0x27   : > { %4100 = vmatprep.subr.msk.bf16.mxu0 %vm713_vm0, %v4428_v43  ;;  %v469_v5 = vsel %vm4361_vm4, %v464_v53, %v468_v34  ;;  %v286_v9 = vrot.slane %v285_v55, 4  ;;  %v295_v12 = vor.u32 %v294_v56, %v290_v50  ;;  %v484_v14 = vshrl.u32 %v4433_v48, 16  ;;  %v4645_v48 = vld [vmem:[%s4316_s23 + $0x5c] sm:$0x1] }
  0x28   : > { %v4457_v19 = vcombine.low %v459_v60, %v469_v5  ;;  %v477_v20 = vor.u32 %v476_v1, %v473_v61  ;;  %v482_v21 = vrot.slane %v480_v2, 5  ;;  %v490_v22 = vshll.u32 %v4441_v58, 16 }
  0x29   : > { %v291_v25 = vsel %vm4361_vm4, %v286_v9, %v290_v50  ;;  %v296_v26 = vrot.slane %v295_v12, 4  ;;  %v486_v28 = vrot.slane %v484_v14, 4  ;;  %v303_v33 = vshrl.u32 %v4447_v3, 16  ;;  %v4502_v9 = vld [vmem:[%s4316_s23 + $0x30] sm:$0xf] }
  0x2a   : > { %6022 = vst [vmem:[#allocation10_spill] sm:$0xff] %v4457_v19  ;;  %3806 = vmatmul.mubr.msk.bf16.vlgmr.msra.gmra.mxu1 %vm664_vm3, %v4457_v19  ;;  %v478_v34 = vrot.slane %v477_v20, 4  ;;  %v492_v35 = vrot.slane %v490_v22, 5  ;;  %v306_v39 = vshll.u32 %v4447_v3, 16  ;;  %v312_v40 = vshll.u32 %v4455_v18, 16 }
  0x2b   : > { %3822 = vmatpush3.bf16.msra.mxu1 %v4319_v4  ;;  %v301_v44 = vsel %vm4361_vm4, %v296_v26, %v300_v57  ;;  %v487_v45 = vor.u32 %v486_v28, %v482_v21  ;;  %v305_v46 = vrot.slane %v303_v33, 4  ;;  %v316_v47 = vshrl.u32 %v4455_v18, 16  ;;  %v4493_v57 = vld [vmem:[%s4316_s23 + $0x8c] sm:$0x1]  ;;  %v4507_v22 = vld [vmem:[%s4316_s23 + $0x34] sm:$0xf] }
  0x2c   : > { %v4485_v50 = vcombine.low %v291_v25, %v301_v44  ;;  %v483_v51 = vsel %vm4361_vm4, %v478_v34, %v482_v21  ;;  %v308_v52 = vrot.slane %v306_v39, 5  ;;  %v314_v53 = vrot.slane %v312_v40, 5  ;;  %4099 = vmatprep.subr.msk.bf16.mxu1 %vm713_vm0, %v4463_v24 }
  0x2d   : > { %v488_v4 = vrot.slane %v487_v45, 4  ;;  %v318_v55 = vrot.slane %v316_v47, 4  ;;  %v322_v56 = vshll.u32 %v4468_v29, 16  ;;  %v495_v60 = vshrl.u32 %v4476_v41, 16 }
  0x2e   : > { %6023 = vst [vmem:[#allocation11_spill] sm:$0xff] %v4485_v50  ;;  %3793 = vmatprep.mubr.msk.bf16.mxu0 %vm664_vm3, %v4485_v50  ;;  %v309_v61 = vor.u32 %v308_v52, %v305_v46  ;;  %v498_v1 = vshll.u32 %v4476_v41, 16  ;;  %v504_v2 = vshll.u32 %v4483_v49, 16  ;;  %v508_v5 = vshrl.u32 %v4483_v49, 16  ;;  %v4518_v46 = vld [vmem:[%s4316_s23 + $0x38] sm:$0x1] }
  0x2f   : > { %v493_v12 = vsel %vm4361_vm4, %v488_v4, %v492_v35  ;;  %v319_v14 = vor.u32 %v318_v55, %v314_v53  ;;  %v324_v20 = vrot.slane %v322_v56, 5  ;;  %v497_v21 = vrot.slane %v495_v60, 4  ;;  %v4523_v52 = vld [vmem:[%s4316_s23 + $0x90] sm:$0xf] }
  0x30   : > { %v4509_v25 = vcombine.low %v483_v51, %v493_v12  ;;  %v310_v26 = vrot.slane %v309_v61, 4  ;;  %v500_v28 = vrot.slane %v498_v1, 5  ;;  %v506_v33 = vrot.slane %v504_v2, 5  ;;  %v4528_v61 = vld [vmem:[%s4316_s23 + $0x94] sm:$0xf] }
  0x31   : > { %v320_v34 = vrot.slane %v319_v14, 4  ;;  %v510_v39 = vrot.slane %v508_v5, 4  ;;  %v514_v40 = vshll.u32 %v4493_v57, 16  ;;  %v327_v44 = vshrl.u32 %v4502_v9, 16 }
  0x32   : > { %6024 = vst [vmem:[#allocation12_spill] sm:$0xff] %v4509_v25  ;;  %3809 = vmatprep.mubr.msk.bf16.mxu1 %vm664_vm3, %v4509_v25  ;;  %v315_v35 = vsel %vm4361_vm4, %v310_v26, %v314_v53  ;;  %v501_v45 = vor.u32 %v500_v28, %v497_v21  ;;  %v330_v47 = vshll.u32 %v4502_v9, 16  ;;  %v336_v51 = vshll.u32 %v4507_v22, 16  ;;  %v4574_v25 = vld [vmem:[%s4316_s23 + $0xa0] sm:$0xf] }
  0x33   : > { %v325_v4 = vsel %vm4361_vm4, %v320_v34, %v324_v20  ;;  %v511_v55 = vor.u32 %v510_v39, %v506_v33  ;;  %v516_v56 = vrot.slane %v514_v40, 5  ;;  %v329_v60 = vrot.slane %v327_v44, 4  ;;  %v4540_v34 = vld [vmem:[%s4316_s23 + $0x98] sm:$0x1]  ;;  %v4545_v44 = vld [vmem:[%s4316_s23 + $0x3c] sm:$0xf] }
  0x34   : > { %v4530_v53 = vcombine.low %v315_v35, %v325_v4  ;;  %v502_v1 = vrot.slane %v501_v45, 4  ;;  %v332_v2 = vrot.slane %v330_v47, 5  ;;  %v338_v5 = vrot.slane %v336_v51, 5  ;;  %v4550_v4 = vld [vmem:[%s4316_s23 + $0x40] sm:$0xf] }
  0x35   : > { %v512_v12 = vrot.slane %v511_v55, 4  ;;  %v340_v14 = vshrl.u32 %v4507_v22, 16  ;;  %v346_v21 = vshll.u32 %v4518_v46, 16  ;;  %v519_v20 = vshrl.u32 %v4523_v52, 16 }
  0x36   : > { %6025 = vst [vmem:[#allocation13_spill] sm:$0xff] %v4530_v53  ;;  %3794 = vmatmul.mubr.msk.bf16.gmra.mxu0 %vm664_vm3, %v4530_v53  ;;  %v507_v26 = vsel %vm4361_vm4, %v502_v1, %v506_v33  ;;  %v333_v28 = vor.u32 %v332_v2, %v329_v60  ;;  %v522_v39 = vshll.u32 %v4523_v52, 16  ;;  %v528_v40 = vshll.u32 %v4528_v61, 16 }
  0x37   : > { %v517_v35 = vsel %vm4361_vm4, %v512_v12, %v516_v56  ;;  %v342_v45 = vrot.slane %v340_v14, 4  ;;  %v348_v47 = vrot.slane %v346_v21, 5  ;;  %v521_v51 = vrot.slane %v519_v20, 4  ;;  %v4562_v14 = vld [vmem:[%s4316_s23 + $0x44] sm:$0x1] }
  0x38   : > { %v4552_v33 = vcombine.low %v507_v26, %v517_v35  ;;  %v334_v55 = vrot.slane %v333_v28, 4  ;;  %v524_v60 = vrot.slane %v522_v39, 5  ;;  %v530_v1 = vrot.slane %v528_v40, 5  ;;  %v4567_v26 = vld [vmem:[%s4316_s23 + $0x9c] sm:$0xf] }
  0x39   : > { %v343_v2 = vor.u32 %v342_v45, %v338_v5  ;;  %v532_v36 = vshrl.u32 %v4528_v61, 16  ;;  %v538_v63 = vshll.u32 %v4540_v34, 16  ;;  %v351_v15 = vshrl.u32 %v4545_v44, 16 }
  0x3a   : > { %6026 = vst [vmem:[#allocation14_spill] sm:$0xff] %v4552_v33  ;;  %3810 = vmatmul.mubr.msk.bf16.gmra.mxu1 %vm664_vm3, %v4552_v33  ;;  %v339_v56 = vsel %vm4361_vm4, %v334_v55, %v338_v5  ;;  %v525_v12 = vor.u32 %v524_v60, %v521_v51  ;;  %v354_v21 = vshll.u32 %v4545_v44, 16  ;;  %v360_v20 = vshll.u32 %v4550_v4, 16 }
  0x3b   : > { %v344_v28 = vrot.slane %v343_v2, 4  ;;  %v534_v39 = vrot.slane %v532_v36, 4  ;;  %v540_v40 = vrot.slane %v538_v63, 5  ;;  %v353_v35 = vrot.slane %v351_v15, 4 }
  0x3c   : > { %v526_v45 = vrot.slane %v525_v12, 4  ;;  %v356_v62 = vrot.slane %v354_v21, 5  ;;  %v362_v33 = vrot.slane %v360_v20, 5  ;;  %v364_v5 = vshrl.u32 %v4550_v4, 16  ;;  %v4582_v21 = vld [vmem:[%s4316_s23 + $0xa4] sm:$0x1] }
  0x3d   : > { %v349_v51 = vsel %vm4361_vm4, %v344_v28, %v348_v47  ;;  %v535_v55 = vor.u32 %v534_v39, %v530_v1  ;;  %v370_v60 = vshll.u32 %v4562_v14, 16  ;;  %v543_v2 = vshrl.u32 %v4567_v26, 16  ;;  %6028 = vst [vmem:[#allocation16_spill] sm:$0xff] %v4582_v21  ;;  %v4585_v20 = vld [vmem:[%s4316_s23 + $0x48] sm:$0xf] }
  0x3e   : > { %v4577_v36 = vcombine.low %v339_v56, %v349_v51  ;;  %v531_v15 = vsel %vm4361_vm4, %v526_v45, %v530_v1  ;;  %v357_v63 = vor.u32 %v356_v62, %v353_v35  ;;  %v366_v12 = vrot.slane %v364_v5, 4 }
  0x3f   : > { %v536_v47 = vrot.slane %v535_v55, 4  ;;  %v372_v28 = vrot.slane %v370_v60, 5  ;;  %v545_v39 = vrot.slane %v543_v2, 4  ;;  %v546_v19 = vshll.u32 %v4567_v26, 16  ;;  %v4596_v55 = vld [vmem:[%s4316_s23 + $0x4c] sm:$0xf] }
  0x40   : > { %6027 = vst [vmem:[#allocation15_spill] sm:$0xff] %v4577_v36  ;;  %3797 = vmatprep.mubr.msk.bf16.mxu0 %vm664_vm3, %v4577_v36  ;;  %v358_v56 = vrot.slane %v357_v63, 4  ;;  %v367_v51 = vor.u32 %v366_v12, %v362_v33  ;;  %v552_v1 = vshll.u32 %v4574_v25, 16  ;;  %v556_v62 = vshrl.u32 %v4574_v25, 16  ;;  %v4604_v36 = vld [vmem:[%s4316_s23 + $0x50] sm:$0x1] }
  0x41   : > { %v541_v35 = vsel %vm4361_vm4, %v536_v47, %v540_v40  ;;  %v548_v45 = vrot.slane %v546_v19, 5  ;;  %v562_v5 = vshll.u32 %v4582_v21, 16  ;;  %v375_v60 = vshrl.u32 %v4585_v20, 16  ;;  %v4607_v47 = vld [vmem:[%s4316_s23 + $0xa8] sm:$0xf] }
  0x42   : > { %v4599_v2 = vcombine.low %v531_v15, %v541_v35  ;;  %v363_v63 = vsel %vm4361_vm4, %v358_v56, %v362_v33  ;;  %v368_v12 = vrot.slane %v367_v51, 4  ;;  %v554_v11 = vrot.slane %v552_v1, 5  ;;  %6030 = vst [vmem:[#allocation18_spill] sm:$0xff] %v4607_v47 }
  0x43   : > { %v549_v53 = vor.u32 %v548_v45, %v545_v39  ;;  %v558_v50 = vrot.slane %v556_v62, 4  ;;  %v564_v40 = vrot.slane %v562_v5, 5  ;;  %v377_v19 = vrot.slane %v375_v60, 4  ;;  %v4620_v45 = vld [vmem:[%s4316_s23 + $0xac] sm:$0xf] }
  0x44   : > { %6029 = vst [vmem:[#allocation17_spill] sm:$0xff] %v4599_v2  ;;  %3813 = vmatprep.mubr.msk.bf16.mxu1 %vm664_vm3, %v4599_v2  ;;  %v373_v15 = vsel %vm4361_vm4, %v368_v12, %v372_v28  ;;  %v378_v33 = vshll.u32 %v4585_v20, 16  ;;  %v384_v56 = vshll.u32 %v4596_v55, 16  ;;  %v388_v51 = vshrl.u32 %v4596_v55, 16  ;;  %6032 = vst [vmem:[#allocation20_spill] sm:$0xff] %v4620_v45 }
  0x45   : > { %v4616_v1 = vcombine.low %v363_v63, %v373_v15  ;;  %v550_v39 = vrot.slane %v549_v53, 4  ;;  %v559_v62 = vor.u32 %v558_v50, %v554_v11  ;;  %v394_v35 = vshll.u32 %v4604_v36, 16 }
  0x46   : > { %v380_v5 = vrot.slane %v378_v33, 5  ;;  %v386_v60 = vrot.slane %v384_v56, 5  ;;  %v390_v2 = vrot.slane %v388_v51, 4  ;;  %v567_v28 = vshrl.u32 %v4607_v47, 16  ;;  %v4633_v51 = vld [vmem:[%s4316_s23 + $0x54] sm:$0xf] }
  0x47   : > { %6031 = vst [vmem:[#allocation19_spill] sm:$0xff] %v4616_v1  ;;  %3798 = vmatmul.mubr.msk.bf16.gmra.mxu0 %vm664_vm3, %v4616_v1  ;;  %v555_v53 = vsel %vm4361_vm4, %v550_v39, %v554_v11  ;;  %v560_v50 = vrot.slane %v559_v62, 4  ;;  %v396_v63 = vrot.slane %v394_v35, 5  ;;  %v570_v12 = vshll.u32 %v4607_v47, 16  ;;  %v4640_v62 = vld [vmem:[%s4316_s23 + $0x58] sm:$0xf] }
  0x48   : > { %v381_v15 = vor.u32 %v380_v5, %v377_v19  ;;  %v391_v58 = vor.u32 %v390_v2, %v386_v60  ;;  %v569_v33 = vrot.slane %v567_v28, 4  ;;  %v576_v56 = vshll.u32 %v4620_v45, 16 }
  0x49   : > { %v565_v1 = vsel %vm4361_vm4, %v560_v50, %v564_v40  ;;  %v572_v37 = vrot.slane %v570_v12, 5  ;;  %v580_v11 = vshrl.u32 %v4620_v45, 16  ;;  %v586_v39 = vshll.u32 %v4623_v38, 16 }
  0x4a   : > { %v4642_v2 = vcombine.low %v555_v53, %v565_v1  ;;  %v382_v19 = vrot.slane %v381_v15, 4  ;;  %v392_v35 = vrot.slane %v391_v58, 4  ;;  %v578_v5 = vrot.slane %v576_v56, 5 }
  0x4b   : > { %v573_v28 = vor.u32 %v572_v37, %v569_v33  ;;  %v582_v0 = vrot.slane %v580_v11, 4  ;;  %v588_v54 = vrot.slane %v586_v39, 5  ;;  %v399_v40 = vshrl.u32 %v4633_v51, 16  ;;  %v4657_v37 = vld [vmem:[%s4316_s23 + $0xb4] sm:$0xf] }
  0x4c   : > { %6034 = vst [vmem:[#allocation22_spill] sm:$0xff] %v4642_v2  ;;  %3814 = vmatmul.mubr.msk.bf16.gmra.mxu1 %vm664_vm3, %v4642_v2  ;;  %v387_v50 = vsel %vm4361_vm4, %v382_v19, %v386_v60  ;;  %v397_v1 = vsel %vm4361_vm4, %v392_v35, %v396_v63  ;;  %v402_v58 = vshll.u32 %v4633_v51, 16  ;;  %v408_v53 = vshll.u32 %v4640_v62, 16  ;;  %6035 = vst [vmem:[#allocation23_spill] sm:$0xff] %v4657_v37  ;;  %v4662_v11 = vld [vmem:[%s4316_s23 + $0xb8] sm:$0xf] }
  0x4d   : > { %v4659_v12 = vcombine.low %v387_v50, %v397_v1  ;;  %v574_v15 = vrot.slane %v573_v28, 4  ;;  %v583_v33 = vor.u32 %v582_v0, %v578_v5  ;;  %v401_v56 = vrot.slane %v399_v40, 4 }
  0x4e   : > { %v404_v39 = vrot.slane %v402_v58, 5  ;;  %v410_v2 = vrot.slane %v408_v53, 5  ;;  %v412_v60 = vshrl.u32 %v4640_v62, 16  ;;  %v418_v63 = vshll.u32 %v4645_v48, 16  ;;  %v4673_v58 = vld [vmem:[%s4316_s23 + $0xbc] sm:$0x1] }
  0x4f   : > { %6036 = vst [vmem:[#allocation24_spill] sm:$0xff] %v4659_v12  ;;  %3801 = vmatprep.mubr.msk.bf16.mxu0 %vm664_vm3, %v4659_v12  ;;  %v579_v19 = vsel %vm4361_vm4, %v574_v15, %v578_v5  ;;  %v584_v35 = vrot.slane %v583_v33, 4  ;;  %v591_v28 = vshrl.u32 %v4657_v37, 16  ;;  %v594_v0 = vshll.u32 %v4657_v37, 16 }
  0x50   : > { %v405_v40 = vor.u32 %v404_v39, %v401_v56  ;;  %v414_v50 = vrot.slane %v412_v60, 4  ;;  %v420_v1 = vrot.slane %v418_v63, 5  ;;  %v600_v53 = vshll.u32 %v4662_v11, 16 }
  0x51   : > { %v589_v38 = vsel %vm4361_vm4, %v584_v35, %v588_v54  ;;  %v593_v47 = vrot.slane %v591_v28, 4  ;;  %v596_v12 = vrot.slane %v594_v0, 5  ;;  %v604_v45 = vshrl.u32 %v4662_v11, 16 }
  0x52   : > { %v4679_v5 = vcombine.low %v579_v19, %v589_v38  ;;  %v406_v15 = vrot.slane %v405_v40, 4  ;;  %v415_v33 = vor.u32 %v414_v50, %v410_v2  ;;  %v602_v21 = vrot.slane %v600_v53, 5 }
  0x53   : > { %v597_v37 = vor.u32 %v596_v12, %v593_v47  ;;  %v606_v56 = vrot.slane %v604_v45, 4  ;;  %v610_v39 = vshll.u32 %v4673_v58, 16  ;;  %v3407_v54 = vrot.slane %v4325_v6, 9 }
  0x54   : > { %3817 = vmatprep.mubr.msk.bf16.mxu1 %vm664_vm3, %v4679_v5  ;;  %v411_v38 = vsel %vm4361_vm4, %v406_v15, %v410_v2  ;;  %v416_v63 = vrot.slane %v415_v33, 4  ;;  %v1191_v47 = vrot.slane %v4328_v7, 5  ;;  %v4696_v45 = vcombine.low %v4354_v30, %v4357_v31 }
  0x55   : > { %v598_v12 = vrot.slane %v597_v37, 4  ;;  %v607_v19 = vor.u32 %v606_v56, %v602_v21  ;;  %v612_v35 = vrot.slane %v610_v39, 5  ;;  %v3408_v28 = vrot.slane %v4354_v30, 9 }
  0x56   : > { %v421_v0 = vsel %vm4361_vm4, %v416_v63, %v420_v1  ;;  %v1192_v40 = vsel %vm4684_vm7, %v3407_v54, %v1191_v47  ;;  %v1193_v50 = vrot.slane %v1191_v47, 4  ;;  %v6039_v2 = vrot.slane %v4357_v31, 5 }
  0x57   : > { %v4705_v15 = vcombine.low %v411_v38, %v421_v0  ;;  %v603_v33 = vsel %vm4361_vm4, %v598_v12, %v602_v21  ;;  %v608_v37 = vrot.slane %v607_v19, 4  ;;  %v6041_v1 = vrot.slane %v4331_v8, 5 }
  0x58   : > { %v1200_v53 = vrot.slane %v6039_v2, 4  ;;  %v6040_v56 = vmov %v6039_v2  ;;  %v6042_v54 = vrot.slane %v4368_v42, 5  ;;  %v4723_v63 = vcombine.low %v4397_v10, %v4406_v23 }
  0x59   : > { %v1199_v30 = vsel %vm4684_vm7, %v3408_v28, %v6040_v56  ;;  %v1195_v39 = vsel %vm4684_vm7, %v1193_v50, %v6041_v1  ;;  %v3409_v21 = vrot.slane %v4397_v10, 9  ;;  %3802 = vmatmul.mubr.msk.bf16.gmra.mxu0 %vm664_vm3, %v4705_v15  ;;  %v613_v8 = vsel %vm4361_vm4, %v608_v37, %v612_v35 }
  0x5a   : > { %v1202_v38 = vsel %vm4684_vm7, %v1200_v53, %v6042_v54  ;;  %v3424_v31 = vcombine.low %v1192_v40, %v1195_v39  ;;  %v1205_v42 = vrot.slane %v4406_v23, 5  ;;  %v4733_v12 = vcombine.low %v603_v33, %v613_v8 }
  0x5b   : > { %v4730_v47 = vcombine.low %v1199_v30, %v1202_v38  ;;  %v1208_v19 = vrot.slane %v4413_v27, 5  ;;  %v1212_v0 = vrot.slane %v4455_v18, 5  ;;  %v3410_v35 = vrot.slane %v4447_v3, 9 }
  0x5c   : > { %6043 = vst [vmem:[#allocation25_spill] sm:$0xff] %v4733_v12  ;;  %3857 = vmatprep.mubr.msk.bf16.mxu0 %vm664_vm3, %v3424_v31  ;;  %v1206_v10 = vsel %vm4684_vm7, %v3409_v21, %v1205_v42  ;;  %v1207_v28 = vrot.slane %v1205_v42, 4  ;;  %3818 = vmatmul.mubr.msk.bf16.gmra.mxu1 %vm664_vm3, %v4733_v12  ;;  %v3411_v40 = vrot.slane %v4502_v9, 9  ;;  %v1219_v23 = vrot.slane %v4507_v22, 5 }
  0x5d   : > { %v6044_v27 = vcombine.low %v4325_v6, %v4328_v7  ;;  %v1214_v2 = vrot.slane %v1212_v0, 4  ;;  %v1215_v53 = vrot.slane %v4468_v29, 5  ;;  %v1222_v33 = vrot.slane %v4518_v46, 5  ;;  %v4768_v46 = vld [vmem:[%s5966_s1 + $0x6] sm:$0x1] }
  0x5e   : > { %v1209_v50 = vsel %vm4684_vm7, %v1207_v28, %v1208_v19  ;;  %v1221_v56 = vrot.slane %v1219_v23, 4  ;;  %v1834_v30 = vsel %vm713_vm0, %v4428_v43, 0  ;;  %v1226_v1 = vrot.slane %v4550_v4, 5  ;;  %v4785_v19 = vld [vmem:[%s5966_s1 + $0x5] sm:$0x1] }
  0x5f   : > { %3823 = vmatprep.mubr.msk.bf16.mxu1 %vm664_vm3, %v6044_v27  ;;  %v4753_v37 = vcombine.low %v1206_v10, %v1209_v50  ;;  %v1606_v6 = vsel %vm713_vm0, %v4463_v24, 0  ;;  %v1213_v7 = vsel %vm4684_vm7, %v3410_v35, %v1212_v0  ;;  %v1220_v39 = vsel %vm4684_vm7, %v3411_v40, %v1219_v23 }
  0x60   : > { %v1233_v29 = vrot.slane %v4596_v55, 5  ;;  %v1216_v43 = vsel %vm4684_vm7, %v1214_v2, %v1215_v53  ;;  %v1223_v24 = vsel %vm4684_vm7, %v1221_v56, %v1222_v33  ;;  %v3412_v54 = vrot.slane %v4545_v44, 9 }
  0x61   : > { %3858 = vmatmul.mubr.msk.bf16.vlgmr.msra.gmra.mxu0 %vm664_vm3, %v4730_v47  ;;  %v1229_v38 = vrot.slane %v4562_v14, 5  ;;  %v1228_v21 = vrot.slane %v1226_v1, 4  ;;  %v3413_v8 = vrot.slane %v4585_v20, 9  ;;  %v1236_v42 = vrot.slane %v4604_v36, 5 }
  0x62   : > { %3924 = vmatpush3.bf16.msra.mxu0 %v1834_v30  ;;  %3861 = vmatprep.mubr.msk.bf16.mxu0 %vm664_vm3, %v4753_v37  ;;  %v1235_v31 = vrot.slane %v1233_v29, 4  ;;  %v4793_v14 = vcombine.low %v1213_v7, %v1216_v43  ;;  %v4795_v10 = vcombine.low %v1220_v39, %v1223_v24  ;;  %v1227_v36 = vsel %vm4684_vm7, %v3412_v54, %v1226_v1 }
  0x63   : > { %4102 = vmatprep.subr.msk.bf16.mxu0 %vm713_vm0, %v4768_v46  ;;  %v1230_v28 = vsel %vm4684_vm7, %v1228_v21, %v1229_v38  ;;  %v1234_v0 = vsel %vm4684_vm7, %v3413_v8, %v1233_v29  ;;  %v1240_v40 = vrot.slane %v4640_v62, 5  ;;  %v1250_v23 = vrot.slane %v4346_v17, 5  ;;  %v6045_v8 = vld [vmem:[#allocation16_spill] sm:$0xff] }
  0x64   : > { %3824 = vmatmul.mubr.msk.bf16.vlgmr.msra.gmra.mxu1 %vm664_vm3, %v4696_v45  ;;  %v1237_v35 = vsel %vm4684_vm7, %v1235_v31, %v1236_v42  ;;  %v3414_v27 = vrot.slane %v4633_v51, 9  ;;  %v3415_v50 = vrot.slane %v4338_v13, 9  ;;  %v1247_v2 = vrot.slane %v4343_v16, 5  ;;  %v6046_v42 = vld [vmem:[#allocation20_spill] sm:$0xff] }
  0x65   : > { %3890 = vmatpush3.bf16.msra.mxu1 %v1606_v6  ;;  %3827 = vmatprep.mubr.msk.bf16.mxu1 %vm664_vm3, %v4723_v63  ;;  %v4814_v53 = vcombine.low %v4447_v3, %v4455_v18  ;;  %v4818_v33 = vcombine.low %v4502_v9, %v4507_v22  ;;  %v4822_v56 = vcombine.low %v4545_v44, %v4550_v4  ;;  %v1243_v3 = vrot.slane %v4645_v48, 5 }
  0x66   : > { %4101 = vmatprep.subr.msk.bf16.mxu1 %vm713_vm0, %v4785_v19  ;;  %v4826_v17 = vcombine.low %v4585_v20, %v4596_v55  ;;  %v4830_v30 = vcombine.low %v1227_v36, %v1230_v28  ;;  %v4832_v1 = vcombine.low %v1234_v0, %v1237_v35  ;;  %v4837_v18 = vcombine.low %v4476_v41, %v4483_v49  ;;  %v6047_v36 = vld [vmem:[#allocation18_spill] sm:$0xff] }
  0x67   : > { %v1242_v9 = vrot.slane %v1240_v40, 4  ;;  %v3418_v22 = vrot.slane %v4476_v41, 9  ;;  %v1268_v44 = vrot.slane %v4483_v49, 5  ;;  %v1271_v4 = vrot.slane %v4493_v57, 5 }
  0x68   : > { %v1241_v20 = vsel %vm4684_vm7, %v3414_v27, %v1240_v40  ;;  %v1248_v48 = vsel %vm4684_vm7, %v3415_v50, %v1247_v2  ;;  %v1249_v55 = vrot.slane %v1247_v2, 4  ;;  %v4850_v6 = vcombine.low %v4523_v52, %v4528_v61  ;;  %v6048_v40 = vld [vmem:[#allocation21_spill] sm:$0xff] }
  0x69   : > { %3862 = vmatmul.mubr.msk.bf16.gmra.mxu0 %vm664_vm3, %v4793_v14  ;;  %v1269_v41 = vsel %vm4684_vm7, %v3418_v22, %v1268_v44  ;;  %v1270_v49 = vrot.slane %v1268_v44, 4  ;;  %v3419_v57 = vrot.slane %v4523_v52, 9  ;;  %v1275_v7 = vrot.slane %v4528_v61, 5 }
  0x6a   : > { %3865 = vmatprep.mubr.msk.bf16.mxu0 %vm664_vm3, %v4795_v10  ;;  %v1254_v39 = vrot.slane %v4383_v59, 5  ;;  %v1278_v29 = vrot.slane %v4540_v34, 5  ;;  %v4864_v43 = vcombine.low %v4567_v26, %v4574_v25  ;;  %v3420_v24 = vrot.slane %v4567_v26, 9 }
  0x6b   : > { %v1244_v54 = vsel %vm4684_vm7, %v1242_v9, %v1243_v3  ;;  %v1272_v52 = vsel %vm4684_vm7, %v1270_v49, %v1271_v4  ;;  %v1276_v61 = vsel %vm4684_vm7, %v3419_v57, %v1275_v7  ;;  %v1277_v38 = vrot.slane %v1275_v7, 4  ;;  %v6049_v3 = vld [vmem:[#allocation23_spill] sm:$0xff]  ;;  %v6050_v57 = vld [vmem:[#allocation8_spill] sm:$0xff] }
  0x6c   : > { %3828 = vmatmul.mubr.msk.bf16.gmra.mxu1 %vm664_vm3, %v4814_v53  ;;  %v4873_v21 = vcombine.low %v1269_v41, %v1272_v52  ;;  %v1282_v34 = vrot.slane %v4574_v25, 5  ;;  %v1285_v31 = vrot.slane %v6045_v8, 5  ;;  %v4879_v28 = vcombine.low %v6047_v36, %v6046_v42 }
  0x6d   : > { %3831 = vmatprep.mubr.msk.bf16.mxu1 %vm664_vm3, %v4818_v33  ;;  %v1279_v26 = vsel %vm4684_vm7, %v1277_v38, %v1278_v29  ;;  %v3421_v0 = vrot.slane %v6047_v36, 9  ;;  %v1289_v35 = vrot.slane %v6046_v42, 5  ;;  %v1292_v27 = vrot.slane %v6048_v40, 5  ;;  %v6052_v42 = vld [vmem:[#allocation4_spill] sm:$0xff] }
  0x6e   : > { %v4888_v50 = vcombine.low %v1276_v61, %v1279_v26  ;;  %v1283_v25 = vsel %vm4684_vm7, %v3420_v24, %v1282_v34  ;;  %v1284_v2 = vrot.slane %v1282_v34, 4  ;;  %v4894_v9 = vcombine.low %v6049_v3, %v4662_v11 }
  0x6f   : > { %v1290_v22 = vsel %vm4684_vm7, %v3421_v0, %v1289_v35  ;;  %v1291_v44 = vrot.slane %v1289_v35, 4  ;;  %v3422_v4 = vrot.slane %v6049_v3, 9  ;;  %v1296_v41 = vrot.slane %v4662_v11, 5  ;;  %v6053_v0 = vld [vmem:[#allocation6_spill] sm:$0xff] }
  0x70   : > { %v1251_v49 = vsel %vm4684_vm7, %v1249_v55, %v1250_v23  ;;  %v1261_v7 = vrot.slane %v6050_v57, 5  ;;  %v1286_v29 = vsel %vm4684_vm7, %v1284_v2, %v1285_v31  ;;  %v1299_v24 = vrot.slane %v4673_v58, 5  ;;  %v6051_v55 = vld [vmem:[#allocation3_spill] sm:$0xff] }
  0x71   : > { %3866 = vmatmul.mubr.msk.bf16.gmra.mxu0 %vm664_vm3, %v4830_v30  ;;  %v4910_v52 = vcombine.low %v1283_v25, %v1286_v29  ;;  %v1293_v61 = vsel %vm4684_vm7, %v1291_v44, %v1292_v27  ;;  %v1297_v11 = vsel %vm4684_vm7, %v3422_v4, %v1296_v41  ;;  %v1298_v38 = vrot.slane %v1296_v41, 4  ;;  %v6054_v27 = vld [vmem:[#allocation9_spill] sm:$0xff]  ;;  %v4997_v4 = vld [vmem:[%s4316_s23 + $0xc0] sm:$0xf]  ;;  %v222_v41 = vld [vmem:[%s4316_s23 + $0xc8] sm:$0x1] }
  0x72   : > { %3869 = vmatprep.mubr.msk.bf16.mxu0 %vm664_vm3, %v4832_v1  ;;  %v4918_v23 = vcombine.low %v1241_v20, %v1244_v54  ;;  %v3416_v34 = vrot.slane %v6051_v55, 9  ;;  %v4921_v58 = vcombine.low %v1290_v22, %v1293_v61  ;;  %v4923_v8 = vcombine.low %v1248_v48, %v1251_v49  ;;  %v6055_v61 = vld [vmem:[#allocation7_spill] sm:$0xff] }
  0x73   : > { %v1256_v31 = vrot.slane %v1254_v39, 4  ;;  %v1257_v36 = vrot.slane %v6052_v42, 5  ;;  %v1300_v26 = vsel %vm4684_vm7, %v1298_v38, %v1299_v24  ;;  %v3417_v35 = vrot.slane %v6053_v0, 9  ;;  %v6057_v42 = vld [vmem:[#allocation13_spill] sm:$0xff] }
  0x74   : > { %3832 = vmatmul.mubr.msk.bf16.gmra.mxu1 %vm664_vm3, %v4822_v56  ;;  %v1263_v40 = vrot.slane %v1261_v7, 4  ;;  %v1264_v25 = vrot.slane %v6054_v27, 5  ;;  %v4930_v2 = vcombine.low %v1297_v11, %v1300_v26  ;;  %v4934_v20 = vcombine.low %v4633_v51, %v4640_v62  ;;  %v6061_v26 = vld [vmem:[#allocation5_spill] sm:$0xff] }
  0x75   : > { %3835 = vmatprep.mubr.msk.bf16.mxu1 %vm664_vm3, %v4826_v17  ;;  %v4940_v48 = vcombine.low %v4338_v13, %v4343_v16  ;;  %v1255_v54 = vsel %vm4684_vm7, %v3416_v34, %v1254_v39  ;;  %v1258_v3 = vsel %vm4684_vm7, %v1256_v31, %v1257_v36  ;;  %v1262_v51 = vsel %vm4684_vm7, %v3417_v35, %v1261_v7  ;;  %v6056_v34 = vld [vmem:[#allocation11_spill] sm:$0xff]  ;;  %v6060_v36 = vld [vmem:[#allocation24_spill] sm:$0xff] }
  0x76   : > { %v1265_v62 = vsel %vm4684_vm7, %v1263_v40, %v1264_v25  ;;  %v4956_v13 = vcombine.low %v1255_v54, %v1258_v3  ;;  %v4962_v39 = vcombine.low %v6051_v55, %v4383_v59  ;;  %v4968_v22 = vcombine.low %v6053_v0, %v6050_v57  ;;  %v4991_v59 = vld [vmem:[%s4316_s23 + $0xc4] sm:$0xf]  ;;  %v3548_v55 = vld [vmem:[%s5966_s1 + $0x8] sm:$0x1]  ;;  %v6063_v35 = vld [vmem:[#allocation12_spill] sm:$0xff] }
  0x77   : > { %v4958_v16 = vcombine.low %v1262_v51, %v1265_v62  ;;  %v2032_v44 = vrot.slane %v4991_v59, 5  ;;  %v3492_v49 = vrot.slane %v4997_v4, 9  ;;  %v2035_v7 = vrot.slane %v222_v41, 5  ;;  %v6062_v0 = vld [vmem:[#allocation10_spill] sm:$0xff] }
  0x78   : > { %v2252_v38 = vsel %vm713_vm0, %v4768_v46, 0  ;;  %v2046_v31 = vsel %vm713_vm0, %v4785_v19, 0  ;;  %v6058_v46 = vld [vmem:[#allocation15_spill] sm:$0xff]  ;;  %v6064_v40 = vld [vmem:[#allocation14_spill] sm:$0xff]  ;;  %v1802_v27 = vshrl.u32 %v4997_v4, 16  ;;  %v1805_v25 = vshll.u32 %v4997_v4, 16 }
  0x79   : > { %3870 = vmatmul.mubr.msk.bf16.gmra.mxu0 %vm664_vm3, %v4918_v23  ;;  %v2034_v57 = vrot.slane %v2032_v44, 4  ;;  %v2033_v29 = vsel %vm4684_vm7, %v3492_v49, %v2032_v44  ;;  %v6059_v19 = vld [vmem:[#allocation19_spill] sm:$0xff]  ;;  %v1815_v54 = vshrl.u32 %v4991_v59, 16  ;;  %v1811_v3 = vshll.u32 %v4991_v59, 16 }
  0x7a   : > { %3873 = vmatprep.mubr.msk.bf16.mxu0 %vm664_vm3, %v4923_v8  ;;  %v1804_v51 = vrot.slane %v1802_v27, 4  ;;  %v1807_v62 = vrot.slane %v1805_v25, 5 }
  0x7b   : > { %v2036_v24 = vsel %vm4684_vm7, %v2034_v57, %v2035_v7  ;;  %v1813_v44 = vrot.slane %v1811_v3, 5  ;;  %v1817_v49 = vrot.slane %v1815_v54, 4  ;;  %v6065_v57 = vld [vmem:[#allocation17_spill] sm:$0xff]  ;;  %v6066_v7 = vld [vmem:[#allocation22_spill] sm:$0xff]  ;;  %v3457_v3 = vcombine.low %v4997_v4, %v4991_v59 }
  0x7c   : > { %3836 = vmatmul.mubr.msk.bf16.gmra.mxu1 %vm664_vm3, %v4934_v20  ;;  %v5009_v11 = vcombine.low %v2033_v29, %v2036_v24  ;;  %v1808_v29 = vor.u32 %v1807_v62, %v1804_v51  ;;  %v2692_v51 = vsel %vm713_vm0, %v3548_v55, 0 }
  0x7d   : > { %3839 = vmatprep.mubr.msk.bf16.mxu1 %vm664_vm3, %v4940_v48  ;;  %v1818_v24 = vor.u32 %v1817_v49, %v1813_v44 }
  0x81   : > { %3874 = vmatmul.mubr.msk.bf16.gmra.mxu0 %vm664_vm3, %v4956_v13 }
  0x82   : > { %3877 = vmatprep.mubr.msk.bf16.mxu0 %vm664_vm3, %v4958_v16 }
  0x84   : > { %3840 = vmatmul.mubr.msk.bf16.gmra.mxu1 %vm664_vm3, %v4962_v39 }
  0x85   : > { %3843 = vmatprep.mubr.msk.bf16.mxu1 %vm664_vm3, %v4968_v22 }
  0x89   : > { %3878 = vmatmul.mubr.msk.bf16.gmra.mxu0 %vm664_vm3, %v4873_v21 }
  0x8a   : > { %3881 = vmatprep.mubr.msk.bf16.mxu0 %vm664_vm3, %v4888_v50 }
  0x8c   : > { %3844 = vmatmul.mubr.msk.bf16.gmra.mxu1 %vm664_vm3, %v4837_v18 }
  0x8d   : > { %3847 = vmatprep.mubr.msk.bf16.mxu1 %vm664_vm3, %v4850_v6 }
  0x91   : > { %3882 = vmatmul.mubr.msk.bf16.gmra.mxu0 %vm664_vm3, %v4910_v52 }
  0x92   : > { %3885 = vmatprep.mubr.msk.bf16.mxu0 %vm664_vm3, %v4921_v58 }
  0x94   : > { %3848 = vmatmul.mubr.msk.bf16.gmra.mxu1 %vm664_vm3, %v4864_v43 }
  0x95   : > { %3851 = vmatprep.mubr.msk.bf16.mxu1 %vm664_vm3, %v4879_v28 }
  0x99   : > { %3886 = vmatmul.mubr.msk.bf16.gmra.mxu0 %vm664_vm3, %v4930_v2 }
  0x9a   : > { %3925 = vmatprep.mubr.msk.bf16.mxu0 %vm664_vm3, %v6055_v61  ;;  %v1821_v61 = vshll.u32 %v222_v41, 16 }
  0x9c   : > { %3852 = vmatmul.mubr.msk.bf16.gmra.mxu1 %vm664_vm3, %v4894_v9  ;;  %v1823_v27 = vrot.slane %v1821_v61, 5  ;;  %v5201_v61 = vld [vmem:[%s4316_s23 + $0xd0] sm:$0xf] }
  0x9d   : > { %3891 = vmatprep.mubr.msk.bf16.mxu1 %vm664_vm3, %v4696_v45  ;;  %v3529_v45 = vld [vmem:[%s5966_s1 + $0x7] sm:$0x1] }
  0x9e   : > { %v2480_v62 = vsel %vm713_vm0, %v3529_v45, 0 }
  0xa1   : > { %3926 = vmatmul.mubr.msk.bf16.vlgmr.msra.gmra.mxu0 %vm664_vm3, %v6056_v34 }
  0xa2   : > { %3992 = vmatpush3.bf16.msra.mxu0 %v2252_v38  ;;  %3929 = vmatprep.mubr.msk.bf16.mxu0 %vm664_vm3, %v6057_v42  ;;  %v1809_v38 = vrot.slane %v1808_v29, 4 }
  0xa3   : > { %4104 = vmatprep.subr.msk.bf16.mxu0 %vm713_vm0, %v3548_v55 }
  0xa4   : > { %3892 = vmatmul.mubr.msk.bf16.vlgmr.msra.gmra.mxu1 %vm664_vm3, %v4723_v63  ;;  %v1814_v25 = vsel %vm4361_vm4, %v1809_v38, %v1813_v44 }
  0xa5   : > { %3958 = vmatpush3.bf16.msra.mxu1 %v2046_v31  ;;  %3895 = vmatprep.mubr.msk.bf16.mxu1 %vm664_vm3, %v4814_v53  ;;  %v1819_v31 = vrot.slane %v1818_v24, 4 }
  0xa6   : > { %4103 = vmatprep.subr.msk.bf16.mxu1 %vm713_vm0, %v3529_v45 }
  0xa7   : > { %v1824_v41 = vsel %vm4361_vm4, %v1819_v31, %v1823_v27 }
  0xa8   : > { %v5091_v54 = vcombine.low %v1814_v25, %v1824_v41 }
  0xa9   : > { %3930 = vmatmul.mubr.msk.bf16.gmra.mxu0 %vm664_vm3, %v6058_v46 }
  0xaa   : > { %3933 = vmatprep.mubr.msk.bf16.mxu0 %vm664_vm3, %v6059_v19  ;;  %6067 = vst [vmem:[#allocation16_spill] sm:$0xff] %v5091_v54 }
  0xac   : > { %3896 = vmatmul.mubr.msk.bf16.gmra.mxu1 %vm664_vm3, %v4818_v33 }
  0xad   : > { %3899 = vmatprep.mubr.msk.bf16.mxu1 %vm664_vm3, %v4822_v56 }
  0xb1   : > { %3934 = vmatmul.mubr.msk.bf16.gmra.mxu0 %vm664_vm3, %v6060_v36 }
  0xb2   : > { %3937 = vmatprep.mubr.msk.bf16.mxu0 %vm664_vm3, %v4705_v15 }
  0xb4   : > { %3900 = vmatmul.mubr.msk.bf16.gmra.mxu1 %vm664_vm3, %v4826_v17 }
  0xb5   : > { %3903 = vmatprep.mubr.msk.bf16.mxu1 %vm664_vm3, %v4934_v20 }
  0xb9   : > { %3938 = vmatmul.mubr.msk.bf16.gmra.mxu0 %vm664_vm3, %v6061_v26 }
  0xba   : > { %3941 = vmatprep.mubr.msk.bf16.mxu0 %vm664_vm3, %v6062_v0 }
  0xbc   : > { %3904 = vmatmul.mubr.msk.bf16.gmra.mxu1 %vm664_vm3, %v4940_v48 }
  0xbd   : > { %3907 = vmatprep.mubr.msk.bf16.mxu1 %vm664_vm3, %v4962_v39 }
  0xc1   : > { %3942 = vmatmul.mubr.msk.bf16.gmra.mxu0 %vm664_vm3, %v6063_v35 }
  0xc2   : > { %3945 = vmatprep.mubr.msk.bf16.mxu0 %vm664_vm3, %v6064_v40 }
  0xc4   : > { %3908 = vmatmul.mubr.msk.bf16.gmra.mxu1 %vm664_vm3, %v4968_v22 }
  0xc5   : > { %3911 = vmatprep.mubr.msk.bf16.mxu1 %vm664_vm3, %v4837_v18 }
  0xc9   : > { %3946 = vmatmul.mubr.msk.bf16.gmra.mxu0 %vm664_vm3, %v6065_v57 }
  0xca   : > { %3949 = vmatprep.mubr.msk.bf16.mxu0 %vm664_vm3, %v6066_v7 }
  0xcc   : > { %3912 = vmatmul.mubr.msk.bf16.gmra.mxu1 %vm664_vm3, %v4850_v6 }
  0xcd   : > { %3915 = vmatprep.mubr.msk.bf16.mxu1 %vm664_vm3, %v4864_v43 }
  0xd1   : > { %3950 = vmatmul.mubr.msk.bf16.gmra.mxu0 %vm664_vm3, %v4679_v5 }
  0xd2   : > { %3953 = vmatprep.mubr.msk.bf16.mxu0 %vm664_vm3, %v4733_v12 }
  0xd4   : > { %3916 = vmatmul.mubr.msk.bf16.gmra.mxu1 %vm664_vm3, %v4879_v28 }
  0xd5   : > { %3919 = vmatprep.mubr.msk.bf16.mxu1 %vm664_vm3, %v4894_v9 }
  0xd9   : > { %3954 = vmatmul.mubr.msk.bf16.gmra.mxu0 %vm664_vm3, %v5091_v54 }
  0xda   : > { %3993 = vmatprep.mubr.msk.bf16.mxu0 %vm664_vm3, %v4723_v63 }
  0xdc   : > { %3920 = vmatmul.mubr.msk.bf16.gmra.mxu1 %vm664_vm3, %v3457_v3 }
  0xdd   : > { %3959 = vmatprep.mubr.msk.bf16.mxu1 %vm664_vm3, %v4730_v47 }
  0xe1   : > { %3994 = vmatmul.mubr.msk.bf16.vlgmr.msra.gmra.mxu0 %vm664_vm3, %v4814_v53 }
  0xe2   : > { %4060 = vmatpush3.bf16.msra.mxu0 %v2692_v51  ;;  %3997 = vmatprep.mubr.msk.bf16.mxu0 %vm664_vm3, %v4818_v33 }
  0xe4   : > { %3960 = vmatmul.mubr.msk.bf16.vlgmr.msra.gmra.mxu1 %vm664_vm3, %v4753_v37 }
  0xe5   : > { %4026 = vmatpush3.bf16.msra.mxu1 %v2480_v62  ;;  %3963 = vmatprep.mubr.msk.bf16.mxu1 %vm664_vm3, %v4793_v14  ;;  %v5114_v63 = vpop.f32.mrf.mxu0 }
  0xe7   : > { %v5124_v53 = vpop.f32.mrf.mxu0 }
  0xe9   : > { %3998 = vmatmul.mubr.msk.bf16.gmra.mxu0 %vm664_vm3, %v4822_v56  ;;  %v5130_v56 = vpop.f32.mrf.mxu0 }
  0xea   : > { %4001 = vmatprep.mubr.msk.bf16.mxu0 %vm664_vm3, %v4826_v17  ;;  %v5120_v47 = vpop.f32.mrf.mxu1 }
  0xeb   : > { %v5140_v59 = vpop.f32.mrf.mxu0 }
  0xec   : > { %3964 = vmatmul.mubr.msk.bf16.gmra.mxu1 %vm664_vm3, %v4795_v10  ;;  %v5126_v33 = vpop.f32.mrf.mxu1 }
  0xed   : > { %3967 = vmatprep.mubr.msk.bf16.mxu1 %vm664_vm3, %v4830_v30 }
  0xee   : > { %v5136_v17 = vpop.f32.mrf.mxu1 }
  0xf0   : > { %v5142_v4 = vpop.f32.mrf.mxu1 }
  0xf1   : > { %4002 = vmatmul.mubr.msk.bf16.gmra.mxu0 %vm664_vm3, %v4934_v20 }
  0xf2   : > { %4005 = vmatprep.mubr.msk.bf16.mxu0 %vm664_vm3, %v4940_v48 }
  0xf4   : > { %3968 = vmatmul.mubr.msk.bf16.gmra.mxu1 %vm664_vm3, %v4832_v1 }
  0xf5   : > { %3971 = vmatprep.mubr.msk.bf16.mxu1 %vm664_vm3, %v4918_v23 }
  0xf6   : > { %v5146_v20 = vpop.f32.mrf.mxu0 }
  0xf8   : > { %v5156_v55 = vpop.f32.mrf.mxu0 }
  0xf9   : > { %4006 = vmatmul.mubr.msk.bf16.gmra.mxu0 %vm664_vm3, %v4962_v39 }
  0xfa   : > { %4009 = vmatprep.mubr.msk.bf16.mxu0 %vm664_vm3, %v4968_v22  ;;  %v5152_v48 = vpop.f32.mrf.mxu1  ;;  %v5162_v39 = vpop.f32.mrf.mxu0 }
  0xfc   : > { %3972 = vmatmul.mubr.msk.bf16.gmra.mxu1 %vm664_vm3, %v4923_v8  ;;  %v5158_v45 = vpop.f32.mrf.mxu1  ;;  %v5172_v44 = vpop.f32.mrf.mxu0 }
  0xfd   : > { %3975 = vmatprep.mubr.msk.bf16.mxu1 %vm664_vm3, %v4956_v13 }
  0xfe   : > { %v5168_v22 = vpop.f32.mrf.mxu1 }
 0x100   : > { %v5174_v49 = vpop.f32.mrf.mxu1 }
 0x101   : > { %4010 = vmatmul.mubr.msk.bf16.gmra.mxu0 %vm664_vm3, %v4837_v18 }
 0x102   : > { %4013 = vmatprep.mubr.msk.bf16.mxu0 %vm664_vm3, %v4850_v6 }
 0x104   : > { %3976 = vmatmul.mubr.msk.bf16.gmra.mxu1 %vm664_vm3, %v4958_v16 }
 0x105   : > { %3979 = vmatprep.mubr.msk.bf16.mxu1 %vm664_vm3, %v4873_v21 }
 0x107   : > { %v5178_v18 = vpop.f32.mrf.mxu0 }
 0x109   : > { %4014 = vmatmul.mubr.msk.bf16.gmra.mxu0 %vm664_vm3, %v4864_v43  ;;  %v5188_v29 = vpop.f32.mrf.mxu0 }
 0x10a   : > { %4017 = vmatprep.mubr.msk.bf16.mxu0 %vm664_vm3, %v4879_v28  ;;  %v5198_v28 = vld [vmem:[%s4316_s23 + $0xcc] sm:$0xf] }
 0x10b   : > { %v5194_v43 = vpop.f32.mrf.mxu0 }
 0x10c   : > { %3980 = vmatmul.mubr.msk.bf16.gmra.mxu1 %vm664_vm3, %v4888_v50  ;;  %v5184_v6 = vpop.f32.mrf.mxu1 }
 0x10d   : > { %6068 = vst [vmem:[#allocation20_spill] sm:$0xff] %v5184_v6  ;;  %3983 = vmatprep.mubr.msk.bf16.mxu1 %vm664_vm3, %v4910_v52  ;;  %v5207_v31 = vpop.f32.mrf.mxu0 }
 0x10e   : > { %v5190_v24 = vpop.f32.mrf.mxu1 }
 0x10f   : > { %6069 = vst [vmem:[#allocation18_spill] sm:$0xff] %v5190_v24 }
 0x110   : > { %v5205_v38 = vpop.f32.mrf.mxu1 }
 0x111   : > { %4018 = vmatmul.mubr.msk.bf16.gmra.mxu0 %vm664_vm3, %v4894_v9  ;;  %6070 = vst [vmem:[#allocation21_spill] sm:$0xff] %v5205_v38  ;;  %v3512_v9 = vcombine.low %v5198_v28, %v5201_v61 }
 0x112   : > { %4021 = vmatprep.mubr.msk.bf16.mxu0 %vm664_vm3, %v3457_v3  ;;  %v5213_v27 = vpop.f32.mrf.mxu1 }
 0x113   : > { %6071 = vst [vmem:[#allocation23_spill] sm:$0xff] %v5213_v27 }
 0x114   : > { %3984 = vmatmul.mubr.msk.bf16.gmra.mxu1 %vm664_vm3, %v4921_v58 }
 0x115   : > { %3987 = vmatprep.mubr.msk.bf16.mxu1 %vm664_vm3, %v4930_v2 }
 0x119   : > { %v5215_v25 = vpop.f32.mrf.mxu0  ;;  %4022 = vmatmul.mubr.msk.bf16.gmra.mxu0 %vm664_vm3, %v3512_v9 }
 0x11a   : > { %4061 = vmatprep.mubr.msk.bf16.mxu0 %vm664_vm3, %v4753_v37 }
 0x11b   : > { %v5220_v41 = vpop.f32.mrf.mxu0 }
 0x11c   : > { %v5222_v3 = vpop.f32.mrf.mxu1  ;;  %3988 = vmatmul.mubr.msk.bf16.gmra.mxu1 %vm664_vm3, %v5009_v11 }
 0x11d   : > { %6072 = vst [vmem:[#allocation8_spill] sm:$0xff] %v5222_v3  ;;  %v5226_v51 = vpop.f32.mrf.mxu0  ;;  %4027 = vmatprep.mubr.msk.bf16.mxu1 %vm664_vm3, %v6056_v34 }
 0x11e   : > { %v5230_v62 = vpop.f32.mrf.mxu1 }
 0x11f   : > { %6073 = vst [vmem:[#allocation3_spill] sm:$0xff] %v5230_v62  ;;  %v5232_v27 = vpop.f32.mrf.mxu0 }
 0x120   : > { %v5234_v9 = vpop.f32.mrf.mxu1 }
 0x121   : > { %6074 = vst [vmem:[#allocation4_spill] sm:$0xff] %v5234_v9  ;;  %v3859_v38 = vpop.f32.mrf.mxu0  ;;  %4062 = vmatmul.mubr.msk.bf16.vlgmr.msra.gmra.mxu0 %vm664_vm3, %v4793_v14 }
 0x122   : > { %v5238_v37 = vpop.f32.mrf.mxu1  ;;  %4065 = vmatprep.mubr.msk.bf16.mxu0 %vm664_vm3, %v4795_v10 }
 0x123   : > { %6075 = vst [vmem:[#allocation6_spill] sm:$0xff] %v5238_v37  ;;  %v1436_v3 = vpop.f32.mrf.mxu0 }
 0x124   : > { %v3825_v24 = vpop.f32.mrf.mxu1  ;;  %4028 = vmatmul.mubr.msk.bf16.vlgmr.msra.gmra.mxu1 %vm664_vm3, %v6057_v42 }
 0x125   : > { %v1052_v34 = vadd.f32 %v3825_v24, %v5114_v63  ;;  %v3860_v62 = vpop.f32.mrf.mxu0  ;;  %4031 = vmatprep.mubr.msk.bf16.mxu1 %vm664_vm3, %v6058_v46 }
 0x126   : > { %v1043_v9 = vpop.f32.mrf.mxu1 }
 0x127   : > { %v5247_v54 = vadd.f32 %v3859_v38, %v1052_v34  ;;  %v1044_v14 = vadd.f32 %v1043_v9, %v5124_v53  ;;  %v1439_v37 = vpop.f32.mrf.mxu0 }
 0x128   : > { %v3826_v6 = vpop.f32.mrf.mxu1 }
 0x129   : > { %v5250_v32 = vadd.f32 %v1436_v3, %v1044_v14  ;;  %v1055_v10 = vadd.f32 %v3826_v6, %v5130_v56  ;;  %v3863_v12 = vpop.f32.mrf.mxu0  ;;  %4066 = vmatmul.mubr.msk.bf16.gmra.mxu0 %vm664_vm3, %v4830_v30 }
 0x12a   : > { %v1046_v42 = vpop.f32.mrf.mxu1  ;;  %4069 = vmatprep.mubr.msk.bf16.mxu0 %vm664_vm3, %v4832_v1 }
 0x12b   : > { %v5257_v46 = vadd.f32 %v3860_v62, %v1055_v10  ;;  %v1047_v63 = vadd.f32 %v1046_v42, %v5140_v59  ;;  %v1452_v24 = vpop.f32.mrf.mxu0 }
 0x12c   : > { %v3829_v53 = vpop.f32.mrf.mxu1  ;;  %4032 = vmatmul.mubr.msk.bf16.gmra.mxu1 %vm664_vm3, %v6059_v19 }
 0x12d   : > { %v5262_v38 = vadd.f32 %v1439_v37, %v1047_v63  ;;  %v1068_v56 = vadd.f32 %v3829_v53, %v5146_v20  ;;  %v3864_v6 = vpop.f32.mrf.mxu0  ;;  %4035 = vmatprep.mubr.msk.bf16.mxu1 %vm664_vm3, %v6060_v36 }
 0x12e   : > { %v1059_v30 = vpop.f32.mrf.mxu1 }
 0x12f   : > { %v5267_v3 = vadd.f32 %v3863_v12, %v1068_v56  ;;  %v1060_v1 = vadd.f32 %v1059_v30, %v5156_v55  ;;  %v1455_v62 = vpop.f32.mrf.mxu0 }
 0x130   : > { %v3830_v59 = vpop.f32.mrf.mxu1 }
 0x131   : > { %v5270_v9 = vadd.f32 %v1452_v24, %v1060_v1  ;;  %v1071_v34 = vadd.f32 %v3830_v59, %v5162_v39  ;;  %v3867_v19 = vpop.f32.mrf.mxu0  ;;  %4070 = vmatmul.mubr.msk.bf16.gmra.mxu0 %vm664_vm3, %v4918_v23 }
 0x132   : > { %v1062_v20 = vpop.f32.mrf.mxu1  ;;  %4073 = vmatprep.mubr.msk.bf16.mxu0 %vm664_vm3, %v4923_v8 }
 0x133   : > { %v5277_v36 = vadd.f32 %v3864_v6, %v1071_v34  ;;  %v1063_v12 = vadd.f32 %v1062_v20, %v5172_v44  ;;  %v1468_v37 = vpop.f32.mrf.mxu0 }
 0x134   : > { %v3833_v55 = vpop.f32.mrf.mxu1  ;;  %4036 = vmatmul.mubr.msk.bf16.gmra.mxu1 %vm664_vm3, %v4705_v15 }
 0x135   : > { %v5282_v14 = vadd.f32 %v1455_v62, %v1063_v12  ;;  %v1084_v39 = vadd.f32 %v3833_v55, %v5178_v18  ;;  %v3868_v10 = vpop.f32.mrf.mxu0  ;;  %4039 = vmatprep.mubr.msk.bf16.mxu1 %vm664_vm3, %v6061_v26 }
 0x136   : > { %v1075_v23 = vpop.f32.mrf.mxu1 }
 0x137   : > { %v5287_v42 = vadd.f32 %v3867_v19, %v1084_v39  ;;  %v1076_v8 = vadd.f32 %v1075_v23, %v5188_v29  ;;  %v1471_v63 = vpop.f32.mrf.mxu0 }
 0x138   : > { %v3834_v44 = vpop.f32.mrf.mxu1 }
 0x139   : > { %v5290_v24 = vadd.f32 %v1468_v37, %v1076_v8  ;;  %v1087_v53 = vadd.f32 %v3834_v44, %v5194_v43  ;;  %v3871_v15 = vpop.f32.mrf.mxu0  ;;  %4074 = vmatmul.mubr.msk.bf16.gmra.mxu0 %vm664_vm3, %v4956_v13  ;;  %v2451_v37 = vshll.u32 %v5198_v28, 16 }
 0x13a   : > { %v1078_v18 = vpop.f32.mrf.mxu1  ;;  %4077 = vmatprep.mubr.msk.bf16.mxu0 %vm664_vm3, %v4958_v16 }
 0x13b   : > { %v5297_v26 = vadd.f32 %v3868_v10, %v1087_v53  ;;  %v1079_v56 = vadd.f32 %v1078_v18, %v5207_v31  ;;  %v1484_v6 = vpop.f32.mrf.mxu0  ;;  %v2453_v44 = vrot.slane %v2451_v37, 5 }
 0x13c   : > { %v3837_v29 = vpop.f32.mrf.mxu1  ;;  %4040 = vmatmul.mubr.msk.bf16.gmra.mxu1 %vm664_vm3, %v6062_v0 }
 0x13d   : > { %v5302_v30 = vadd.f32 %v1471_v63, %v1079_v56  ;;  %v1100_v43 = vadd.f32 %v3837_v29, %v5215_v25  ;;  %v3872_v1 = vpop.f32.mrf.mxu0  ;;  %4043 = vmatprep.mubr.msk.bf16.mxu1 %vm664_vm3, %v6063_v35 }
 0x13e   : > { %v1091_v13 = vpop.f32.mrf.mxu1 }
 0x13f   : > { %v5307_v62 = vadd.f32 %v3871_v15, %v1100_v43  ;;  %v1092_v16 = vadd.f32 %v1091_v13, %v5220_v41  ;;  %v1487_v59 = vpop.f32.mrf.mxu0  ;;  %v2448_v41 = vshrl.u32 %v5198_v28, 16 }
 0x140   : > { %v3838_v31 = vpop.f32.mrf.mxu1 }
 0x141   : > { %v5310_v34 = vadd.f32 %v1484_v6, %v1092_v16  ;;  %v1103_v19 = vadd.f32 %v3838_v31, %v5226_v51  ;;  %v3875_v0 = vpop.f32.mrf.mxu0  ;;  %4078 = vmatmul.mubr.msk.bf16.gmra.mxu0 %vm664_vm3, %v4873_v21  ;;  %v2457_v51 = vshll.u32 %v5201_v61, 16  ;;  %v2461_v21 = vshrl.u32 %v5201_v61, 16 }
 0x142   : > { %v1094_v25 = vpop.f32.mrf.mxu1  ;;  %4081 = vmatprep.mubr.msk.bf16.mxu0 %vm664_vm3, %v4888_v50 }
 0x143   : > { %v5317_v35 = vadd.f32 %v3872_v1, %v1103_v19  ;;  %v1095_v20 = vadd.f32 %v1094_v25, %v5232_v27  ;;  %v1500_v12 = vpop.f32.mrf.mxu0  ;;  %v2459_v15 = vrot.slane %v2457_v51, 5  ;;  %v2463_v18 = vrot.slane %v2461_v21, 4 }
 0x144   : > { %v3841_v55 = vpop.f32.mrf.mxu1  ;;  %4044 = vmatmul.mubr.msk.bf16.gmra.mxu1 %vm664_vm3, %v6064_v40  ;;  %v2450_v40 = vrot.slane %v2448_v41, 4  ;;  %v3547_v19 = vrot.slane %v5198_v28, 9 }
 0x145   : > { %v5326_v39 = vadd.f32 %v1487_v59, %v1095_v20  ;;  %v1116_v50 = vadd.f32 %v3841_v55, %v5120_v47  ;;  %v3876_v10 = vpop.f32.mrf.mxu0  ;;  %4047 = vmatprep.mubr.msk.bf16.mxu1 %vm664_vm3, %v6065_v57  ;;  %v2678_v57 = vrot.slane %v5201_v61, 5 }
 0x146   : > { %v1107_v27 = vpop.f32.mrf.mxu1 }
 0x147   : > { %v5331_v23 = vadd.f32 %v3875_v0, %v1116_v50  ;;  %v1108_v8 = vadd.f32 %v1107_v27, %v5126_v33  ;;  %v1503_v63 = vpop.f32.mrf.mxu0  ;;  %v225_v33 = vld [vmem:[%s4316_s23 + $0xd4] sm:$0x1] }
 0x148   : > { %v3842_v53 = vpop.f32.mrf.mxu1  ;;  %v2467_v31 = vshll.u32 %v225_v33, 16  ;;  %v2681_v25 = vrot.slane %v225_v33, 5 }
 0x149   : > { %v5334_v56 = vadd.f32 %v1500_v12, %v1108_v8  ;;  %v1119_v47 = vadd.f32 %v3842_v53, %v5136_v17  ;;  %v3879_v6 = vpop.f32.mrf.mxu0  ;;  %4082 = vmatmul.mubr.msk.bf16.gmra.mxu0 %vm664_vm3, %v4910_v52  ;;  %v2454_v17 = vor.u32 %v2453_v44, %v2450_v40 }
 0x14a   : > { %v1110_v29 = vpop.f32.mrf.mxu1  ;;  %4085 = vmatprep.mubr.msk.bf16.mxu0 %vm664_vm3, %v4921_v58  ;;  %v2464_v58 = vor.u32 %v2463_v18, %v2459_v15  ;;  %v2469_v28 = vrot.slane %v2467_v31, 5 }
 0x14b   : > { %v5343_v43 = vadd.f32 %v3876_v10, %v1119_v47  ;;  %v1111_v1 = vadd.f32 %v1110_v29, %v5142_v4  ;;  %v1516_v13 = vpop.f32.mrf.mxu0  ;;  %v2680_v4 = vrot.slane %v2678_v57, 4  ;;  %v2455_v37 = vrot.slane %v2454_v17, 4  ;;  %v6079_v47 = vld [vmem:[#allocation16_spill] sm:$0xff]  ;;  %v6080_v29 = vld [vmem:[#allocation18_spill] sm:$0xff]  ;;  %v6081_v17 = vld [vmem:[#allocation21_spill] sm:$0xff] }
 0x14c   : > { %v3845_v16 = vpop.f32.mrf.mxu1  ;;  %4048 = vmatmul.mubr.msk.bf16.gmra.mxu1 %vm664_vm3, %v6066_v7 }
 0x14d   : > { %v5348_v59 = vadd.f32 %v1503_v63, %v1111_v1  ;;  %v1132_v52 = vadd.f32 %v3845_v16, %v5152_v48  ;;  %v3880_v61 = vpop.f32.mrf.mxu0  ;;  %4051 = vmatprep.mubr.msk.bf16.mxu1 %vm664_vm3, %v4679_v5  ;;  %v2465_v5 = vrot.slane %v2464_v58, 4  ;;  %v2682_v50 = vsel %vm4684_vm7, %v2680_v4, %v2681_v25  ;;  %v6076_v63 = vld [vmem:[#allocation25_spill] sm:$0xff] }
 0x14e   : > { %v1123_v0 = vpop.f32.mrf.mxu1  ;;  %v2460_v40 = vsel %vm4361_vm4, %v2455_v37, %v2459_v15 }
 0x14f   : > { %v5354_v20 = vadd.f32 %v3879_v6, %v1132_v52  ;;  %v1124_v7 = vadd.f32 %v1123_v0, %v5158_v45  ;;  %v1519_v12 = vpop.f32.mrf.mxu0  ;;  %v2679_v45 = vsel %vm4684_vm7, %v3547_v19, %v2678_v57  ;;  %v2470_v60 = vsel %vm4361_vm4, %v2465_v5, %v2469_v28  ;;  %v6082_v19 = vld [vmem:[#allocation23_spill] sm:$0xff] }
 0x150   : > { %v3846_v41 = vpop.f32.mrf.mxu1  ;;  %v3530_v15 = vcombine.low %v2460_v40, %v2470_v60  ;;  %v6084_v5 = vld [vmem:[#allocation3_spill] sm:$0xff]  ;;  %v6086_v40 = vld [vmem:[#allocation6_spill] sm:$0xff] }
 0x151   : > { %v5357_v55 = vadd.f32 %v1516_v13, %v1124_v7  ;;  %v1135_v48 = vadd.f32 %v3846_v41, %v5168_v22  ;;  %v3883_v51 = vpop.f32.mrf.mxu0  ;;  %4086 = vmatmul.mubr.msk.bf16.gmra.mxu0 %vm664_vm3, %v4930_v2 }
 0x152   : > { %v1126_v21 = vpop.f32.mrf.mxu1  ;;  %4089 = vmatprep.mubr.msk.bf16.mxu0 %vm664_vm3, %v5009_v11  ;;  %v6078_v11 = vld [vmem:[#allocation20_spill] sm:$0xff] }
 0x153   : > { %v5368_v10 = vadd.f32 %v3880_v61, %v1135_v48  ;;  %v1127_v22 = vadd.f32 %v1126_v21, %v5174_v49  ;;  %v1532_v27 = vpop.f32.mrf.mxu0  ;;  %v3549_v49 = vcombine.low %v2679_v45, %v2682_v50 }
 0x154   : > { %v3849_v8 = vpop.f32.mrf.mxu1  ;;  %4052 = vmatmul.mubr.msk.bf16.gmra.mxu1 %vm664_vm3, %v6076_v63 }
 0x155   : > { %v5375_v44 = vadd.f32 %v1519_v12, %v1127_v22  ;;  %v1148_v53 = vadd.f32 %v3849_v8, %v6078_v11  ;;  %v3884_v18 = vpop.f32.mrf.mxu0  ;;  %4055 = vmatprep.mubr.msk.bf16.mxu1 %vm664_vm3, %v6079_v47  ;;  %v6083_v12 = vld [vmem:[#allocation8_spill] sm:$0xff] }
 0x156   : > { %v1139_v6 = vpop.f32.mrf.mxu1  ;;  %v6085_v22 = vld [vmem:[#allocation4_spill] sm:$0xff] }
 0x157   : > { %v5382_v57 = vadd.f32 %v3883_v51, %v1148_v53  ;;  %v1140_v33 = vadd.f32 %v1139_v6, %v6080_v29  ;;  %v1535_v1 = vpop.f32.mrf.mxu0 }
 0x158   : > { %v3850_v13 = vpop.f32.mrf.mxu1 }
 0x159   : > { %v5385_v16 = vadd.f32 %v1532_v27, %v1140_v33  ;;  %v1151_v52 = vadd.f32 %v3850_v13, %v6081_v17  ;;  %v3887_v61 = vpop.f32.mrf.mxu0  ;;  %4090 = vmatmul.mubr.msk.bf16.gmra.mxu0 %vm664_vm3, %v3549_v49 }
 0x15a   : > { %v1142_v58 = vpop.f32.mrf.mxu1 }
 0x15b   : > { %v5389_v31 = vadd.f32 %v3884_v18, %v1151_v52  ;;  %v1143_v0 = vadd.f32 %v1142_v58, %v6082_v19  ;;  %v1548_v4 = vpop.f32.mrf.mxu0 }
 0x15c   : > { %v3853_v25 = vpop.f32.mrf.mxu1  ;;  %4056 = vmatmul.mubr.msk.bf16.gmra.mxu1 %vm664_vm3, %v3530_v15 }
 0x15d   : > { %v5393_v7 = vadd.f32 %v1535_v1, %v1143_v0  ;;  %v1164_v41 = vadd.f32 %v3853_v25, %v6083_v12  ;;  %v3888_v37 = vpop.f32.mrf.mxu0 }
 0x15e   : > { %v1155_v48 = vpop.f32.mrf.mxu1 }
 0x15f   : > { %v5396_v51 = vadd.f32 %v3887_v61, %v1164_v41  ;;  %v1156_v28 = vadd.f32 %v1155_v48, %v6084_v5  ;;  %v1551_v21 = vpop.f32.mrf.mxu0 }
 0x160   : > { %v3854_v45 = vpop.f32.mrf.mxu1 }
 0x161   : > { %v5399_v50 = vadd.f32 %v1548_v4, %v1156_v28  ;;  %v1167_v27 = vadd.f32 %v3854_v45, %v6085_v22  ;;  %v3927_v8 = vpop.f32.mrf.mxu0 }
 0x162   : > { %v1158_v63 = vpop.f32.mrf.mxu1 }
 0x163   : > { %v5402_v2 = vadd.f32 %v3888_v37, %v1167_v27  ;;  %v1159_v11 = vadd.f32 %v1158_v63, %v6086_v40  ;;  %v1870_v53 = vpop.f32.mrf.mxu0 }
 0x164   : > { %v3893_v18 = vpop.f32.mrf.mxu1 }
 0x165   : > { %v5405_v47 = vadd.f32 %v1551_v21, %v1159_v11  ;;  %v1771_v60 = vadd.f32 %v3893_v18, %v5247_v54  ;;  %v3928_v49 = vpop.f32.mrf.mxu0 }
 0x166   : > { %v1642_v6 = vpop.f32.mrf.mxu1 }
 0x167   : > { %v5408_v29 = vadd.f32 %v3927_v8, %v1771_v60  ;;  %v1769_v33 = vadd.f32 %v1642_v6, %v5250_v32  ;;  %v1873_v1 = vpop.f32.mrf.mxu0 }
 0x168   : > { %v3894_v13 = vpop.f32.mrf.mxu1 }
 0x169   : > { %v5411_v15 = vadd.f32 %v1870_v53, %v1769_v33  ;;  %v1772_v17 = vadd.f32 %v3894_v13, %v5257_v46  ;;  %v3931_v52 = vpop.f32.mrf.mxu0 }
 0x16a   : > { %v1645_v61 = vpop.f32.mrf.mxu1 }
 0x16b   : > { %v5414_v58 = vadd.f32 %v3928_v49, %v1772_v17  ;;  %v1770_v19 = vadd.f32 %v1645_v61, %v5262_v38  ;;  %v1886_v0 = vpop.f32.mrf.mxu0 }
 0x16c   : > { %v3897_v54 = vpop.f32.mrf.mxu1 }
 0x16d   : > { %v5417_v4 = vadd.f32 %v1873_v1, %v1770_v19  ;;  %v1775_v25 = vadd.f32 %v3897_v54, %v5267_v3  ;;  %v3932_v12 = vpop.f32.mrf.mxu0 }
 0x16e   : > { %v1658_v32 = vpop.f32.mrf.mxu1 }
 0x16f   : > { %v5420_v41 = vadd.f32 %v3931_v52, %v1775_v25  ;;  %v1773_v37 = vadd.f32 %v1658_v32, %v5270_v9  ;;  %v1889_v48 = vpop.f32.mrf.mxu0 }
 0x170   : > { %v3898_v46 = vpop.f32.mrf.mxu1 }
 0x171   : > { %v5423_v5 = vadd.f32 %v1886_v0, %v1773_v37  ;;  %v1776_v28 = vadd.f32 %v3898_v46, %v5277_v36  ;;  %v3935_v21 = vpop.f32.mrf.mxu0 }
 0x172   : > { %v1661_v38 = vpop.f32.mrf.mxu1 }
 0x173   : > { %v5426_v45 = vadd.f32 %v3932_v12, %v1776_v28  ;;  %v1774_v22 = vadd.f32 %v1661_v38, %v5282_v14  ;;  %v1902_v27 = vpop.f32.mrf.mxu0 }
 0x174   : > { %v3901_v3 = vpop.f32.mrf.mxu1 }
 0x175   : > { %v5429_v8 = vadd.f32 %v1889_v48, %v1774_v22  ;;  %v1779_v63 = vadd.f32 %v3901_v3, %v5287_v42  ;;  %v3936_v40 = vpop.f32.mrf.mxu0 }
 0x176   : > { %v1674_v9 = vpop.f32.mrf.mxu1 }
 0x177   : > { %v5432_v11 = vadd.f32 %v3935_v21, %v1779_v63  ;;  %v1777_v53 = vadd.f32 %v1674_v9, %v5290_v24  ;;  %v1905_v18 = vpop.f32.mrf.mxu0 }
 0x178   : > { %v3902_v36 = vpop.f32.mrf.mxu1 }
 0x179   : > { %v5435_v60 = vadd.f32 %v1902_v27, %v1777_v53  ;;  %v1780_v49 = vadd.f32 %v3902_v36, %v5297_v26  ;;  %v3939_v6 = vpop.f32.mrf.mxu0 }
 0x17a   : > { %v1677_v14 = vpop.f32.mrf.mxu1 }
 0x17b   : > { %v5438_v33 = vadd.f32 %v3936_v40, %v1780_v49  ;;  %v1778_v1 = vadd.f32 %v1677_v14, %v5302_v30  ;;  %v1918_v13 = vpop.f32.mrf.mxu0 }
 0x17c   : > { %v3905_v42 = vpop.f32.mrf.mxu1 }
 0x17d   : > { %v5441_v17 = vadd.f32 %v1905_v18, %v1778_v1  ;;  %v1783_v52 = vadd.f32 %v3905_v42, %v5307_v62  ;;  %v3940_v61 = vpop.f32.mrf.mxu0 }
 0x17e   : > { %v1690_v24 = vpop.f32.mrf.mxu1 }
 0x17f   : > { %v5444_v19 = vadd.f32 %v3939_v6, %v1783_v52  ;;  %v1781_v0 = vadd.f32 %v1690_v24, %v5310_v34  ;;  %v1921_v54 = vpop.f32.mrf.mxu0 }
 0x180   : > { %v3906_v26 = vpop.f32.mrf.mxu1 }
 0x181   : > { %6087 = vst [vmem:[#allocation9_spill] sm:$0xff] %v5444_v19  ;;  %v5447_v25 = vadd.f32 %v1918_v13, %v1781_v0  ;;  %v1784_v12 = vadd.f32 %v3906_v26, %v5317_v35  ;;  %v3943_v32 = vpop.f32.mrf.mxu0 }
 0x182   : > { %v1693_v30 = vpop.f32.mrf.mxu1 }
 0x183   : > { %6088 = vst [vmem:[#allocation7_spill] sm:$0xff] %v5447_v25  ;;  %v5450_v37 = vadd.f32 %v3940_v61, %v1784_v12  ;;  %v1782_v48 = vadd.f32 %v1693_v30, %v5326_v39  ;;  %v1934_v46 = vpop.f32.mrf.mxu0 }
 0x184   : > { %v3909_v62 = vpop.f32.mrf.mxu1 }
 0x185   : > { %6089 = vst [vmem:[#allocation11_spill] sm:$0xff] %v5450_v37  ;;  %v5453_v28 = vadd.f32 %v1921_v54, %v1782_v48  ;;  %v1787_v21 = vadd.f32 %v3909_v62, %v5331_v23  ;;  %v3944_v38 = vpop.f32.mrf.mxu0 }
 0x186   : > { %v1706_v34 = vpop.f32.mrf.mxu1 }
 0x187   : > { %6090 = vst [vmem:[#allocation13_spill] sm:$0xff] %v5453_v28  ;;  %v5456_v22 = vadd.f32 %v3943_v32, %v1787_v21  ;;  %v1785_v27 = vadd.f32 %v1706_v34, %v5334_v56  ;;  %v1937_v3 = vpop.f32.mrf.mxu0 }
 0x188   : > { %v3910_v35 = vpop.f32.mrf.mxu1 }
 0x189   : > { %6091 = vst [vmem:[#allocation15_spill] sm:$0xff] %v5456_v22  ;;  %v5459_v63 = vadd.f32 %v1934_v46, %v1785_v27  ;;  %v1788_v40 = vadd.f32 %v3910_v35, %v5343_v43  ;;  %v3947_v9 = vpop.f32.mrf.mxu0 }
 0x18a   : > { %v1709_v39 = vpop.f32.mrf.mxu1 }
 0x18b   : > { %6092 = vst [vmem:[#allocation19_spill] sm:$0xff] %v5459_v63  ;;  %v5462_v53 = vadd.f32 %v3944_v38, %v1788_v40  ;;  %v1786_v18 = vadd.f32 %v1709_v39, %v5348_v59  ;;  %v1950_v36 = vpop.f32.mrf.mxu0 }
 0x18c   : > { %v3913_v23 = vpop.f32.mrf.mxu1 }
 0x18d   : > { %6093 = vst [vmem:[#allocation24_spill] sm:$0xff] %v5462_v53  ;;  %v5465_v49 = vadd.f32 %v1937_v3, %v1786_v18  ;;  %v1791_v6 = vadd.f32 %v3913_v23, %v5354_v20  ;;  %v3948_v14 = vpop.f32.mrf.mxu0 }
 0x18e   : > { %v1722_v56 = vpop.f32.mrf.mxu1 }
 0x18f   : > { %6094 = vst [vmem:[#allocation5_spill] sm:$0xff] %v5465_v49  ;;  %v5468_v1 = vadd.f32 %v3947_v9, %v1791_v6  ;;  %v1789_v13 = vadd.f32 %v1722_v56, %v5357_v55  ;;  %v1953_v42 = vpop.f32.mrf.mxu0 }
 0x190   : > { %v3914_v43 = vpop.f32.mrf.mxu1 }
 0x191   : > { %v5471_v52 = vadd.f32 %v1950_v36, %v1789_v13  ;;  %v1792_v61 = vadd.f32 %v3914_v43, %v5368_v10  ;;  %v3951_v24 = vpop.f32.mrf.mxu0 }
 0x192   : > { %v1725_v59 = vpop.f32.mrf.mxu1 }
 0x193   : > { %v5474_v0 = vadd.f32 %v3948_v14, %v1792_v61  ;;  %v1790_v54 = vadd.f32 %v1725_v59, %v5375_v44  ;;  %v1966_v26 = vpop.f32.mrf.mxu0 }
 0x194   : > { %v3917_v20 = vpop.f32.mrf.mxu1 }
 0x195   : > { %v5477_v12 = vadd.f32 %v1953_v42, %v1790_v54  ;;  %v1795_v32 = vadd.f32 %v3917_v20, %v5382_v57  ;;  %v3952_v30 = vpop.f32.mrf.mxu0 }
 0x196   : > { %v1738_v55 = vpop.f32.mrf.mxu1 }
 0x197   : > { %v5480_v48 = vadd.f32 %v3951_v24, %v1795_v32  ;;  %v1793_v46 = vadd.f32 %v1738_v55, %v5385_v16  ;;  %v1969_v62 = vpop.f32.mrf.mxu0 }
 0x198   : > { %v3918_v10 = vpop.f32.mrf.mxu1 }
 0x199   : > { %v5483_v21 = vadd.f32 %v1966_v26, %v1793_v46  ;;  %v1796_v38 = vadd.f32 %v3918_v10, %v5389_v31  ;;  %v3955_v34 = vpop.f32.mrf.mxu0 }
 0x19a   : > { %v1741_v44 = vpop.f32.mrf.mxu1 }
 0x19b   : > { %v5486_v27 = vadd.f32 %v3952_v30, %v1796_v38  ;;  %v1794_v3 = vadd.f32 %v1741_v44, %v5393_v7  ;;  %v1982_v35 = vpop.f32.mrf.mxu0 }
 0x19c   : > { %v3921_v57 = vpop.f32.mrf.mxu1 }
 0x19d   : > { %v5489_v40 = vadd.f32 %v1969_v62, %v1794_v3  ;;  %v1799_v9 = vadd.f32 %v3921_v57, %v5396_v51  ;;  %v3956_v39 = vpop.f32.mrf.mxu0 }
 0x19e   : > { %v1754_v16 = vpop.f32.mrf.mxu1 }
 0x19f   : > { %v5492_v18 = vadd.f32 %v3955_v34, %v1799_v9  ;;  %v1797_v36 = vadd.f32 %v1754_v16, %v5399_v50  ;;  %v1985_v23 = vpop.f32.mrf.mxu0 }
 0x1a0   : > { %v3922_v31 = vpop.f32.mrf.mxu1 }
 0x1a1   : > { %v5495_v6 = vadd.f32 %v1982_v35, %v1797_v36  ;;  %v1800_v14 = vadd.f32 %v3922_v31, %v5402_v2  ;;  %v5498_v56 = vpop.f32.mrf.mxu0 }
 0x1a2   : > { %v1757_v7 = vpop.f32.mrf.mxu1 }
 0x1a3   : > { %v5500_v13 = vadd.f32 %v3956_v39, %v1800_v14  ;;  %v1798_v42 = vadd.f32 %v1757_v7, %v5405_v47  ;;  %v5503_v51 = vpop.f32.mrf.mxu0 }
 0x1a4   : > { %v5505_v43 = vpop.f32.mrf.mxu1 }
 0x1a5   : > { %v5507_v61 = vadd.f32 %v1985_v23, %v1798_v42  ;;  %v5509_v50 = vpop.f32.mrf.mxu0 }
 0x1a6   : > { %v5511_v24 = vpop.f32.mrf.mxu1 }
 0x1a7   : > { %v5513_v59 = vpop.f32.mrf.mxu0 }
 0x1a8   : > { %v5515_v2 = vpop.f32.mrf.mxu1 }
 0x1a9   : > { %v5517_v54 = vpop.f32.mrf.mxu0 }
 0x1aa   : > { %v5519_v26 = vpop.f32.mrf.mxu1 }
 0x1ab   : > { %v5521_v20 = vpop.f32.mrf.mxu0 }
 0x1ac   : > { %v5523_v47 = vpop.f32.mrf.mxu1 }
 0x1ad   : > { %v5525_v32 = vpop.f32.mrf.mxu0 }
 0x1ae   : > { %v5527_v30 = vpop.f32.mrf.mxu1 }
 0x1af   : > { %v5529_v55 = vpop.f32.mrf.mxu0 }
 0x1b0   : > { %v5531_v46 = vpop.f32.mrf.mxu1 }
 0x1b1   : > { %v5533_v62 = vpop.f32.mrf.mxu0 }
 0x1b2   : > { %v5535_v10 = vpop.f32.mrf.mxu1 }
 0x1b3   : > { %v5537_v38 = vpop.f32.mrf.mxu0 }
 0x1b4   : > { %v5539_v34 = vpop.f32.mrf.mxu1 }
 0x1b5   : > { %v5541_v44 = vpop.f32.mrf.mxu0 }
 0x1b6   : > { %v5543_v3 = vpop.f32.mrf.mxu1 }
 0x1b7   : > { %v5545_v35 = vpop.f32.mrf.mxu0 }
 0x1b8   : > { %6095 = vst [vmem:[#allocation10_spill] sm:$0xff] %v5545_v35  ;;  %v5547_v57 = vpop.f32.mrf.mxu1 }
 0x1b9   : > { %v5549_v9 = vpop.f32.mrf.mxu0 }
 0x1ba   : > { %6096 = vst [vmem:[#allocation12_spill] sm:$0xff] %v5549_v9  ;;  %v5551_v39 = vpop.f32.mrf.mxu1 }
 0x1bb   : > { %v5553_v16 = vpop.f32.mrf.mxu0 }
 0x1bc   : > { %6097 = vst [vmem:[#allocation14_spill] sm:$0xff] %v5553_v16  ;;  %v5555_v36 = vpop.f32.mrf.mxu1 }
 0x1bd   : > { %6098 = vst [vmem:[#allocation17_spill] sm:$0xff] %v5555_v36  ;;  %v5557_v23 = vpop.f32.mrf.mxu0 }
 0x1be   : > { %6099 = vst [vmem:[#allocation22_spill] sm:$0xff] %v5557_v23  ;;  %v5559_v31 = vpop.f32.mrf.mxu1 }
 0x1bf   : > { %6100 = vst [vmem:[#allocation25_spill] sm:$0xff] %v5559_v31  ;;  %v5561_v14 = vpop.f32.mrf.mxu0 }
 0x1c0   : > { %6101 = vst [vmem:[#allocation2_spill] sm:$0xff] %v5561_v14  ;;  %v5563_v7 = vpop.f32.mrf.mxu1 }
 0x1c1   : > { %6102 = vst [vmem:[#allocation20_spill] sm:$0xff] %v5563_v7  ;;  %v5565_v42 = vpop.f32.mrf.mxu0 }
 0x1c2   : > { %6103 = vst [vmem:[#allocation16_spill] sm:$0xff] %v5565_v42  ;;  %v5567_v49 = vpop.f32.mrf.mxu1 }
 0x1c3   : > { %6104 = vst [vmem:[#allocation18_spill] sm:$0xff] %v5567_v49  ;;  %v5569_v53 = vpop.f32.mrf.mxu0 }
 0x1c4   : > { %6105 = vst [vmem:[#allocation21_spill] sm:$0xff] %v5569_v53  ;;  %v5571_v63 = vpop.f32.mrf.mxu1 }
 0x1c5   : > { %6106 = vst [vmem:[#allocation23_spill] sm:$0xff] %v5571_v63  ;;  %v5573_v22 = vpop.f32.mrf.mxu0 }
 0x1c6   : > { %6107 = vst [vmem:[#allocation8_spill] sm:$0xff] %v5573_v22  ;;  %v5575_v28 = vpop.f32.mrf.mxu1 }
 0x1c7   : > { %6108 = vst [vmem:[#allocation3_spill] sm:$0xff] %v5575_v28  ;;  %v5577_v16 = vpop.f32.mrf.mxu0 }
 0x1c8   : > { %6109 = vst [vmem:[#allocation4_spill] sm:$0xff] %v5577_v16  ;;  %v5579_v23 = vpop.f32.mrf.mxu1 }
 0x1c9   : > { %6110 = vst [vmem:[#allocation6_spill] sm:$0xff] %v5579_v23  ;;  %v4015_v9 = vpop.f32.mrf.mxu0 }
 0x1ca   : > { %v5581_v14 = vpop.f32.mrf.mxu1 }
 0x1cb   : > { %6111 = vst [vmem:[#allocation26_spill] sm:$0xff] %v5581_v14  ;;  %v2368_v35 = vpop.f32.mrf.mxu0 }
 0x1cc   : > { %v3981_v7 = vpop.f32.mrf.mxu1 }
 0x1cd   : > { %v2231_v42 = vadd.f32 %v3981_v7, %v5468_v1  ;;  %v4016_v49 = vpop.f32.mrf.mxu0 }
 0x1ce   : > { %v2162_v37 = vpop.f32.mrf.mxu1 }
 0x1cf   : > { %v5584_v53 = vadd.f32 %v4015_v9, %v2231_v42  ;;  %v2229_v63 = vadd.f32 %v2162_v37, %v5471_v52  ;;  %v2371_v22 = vpop.f32.mrf.mxu0 }
 0x1d0   : > { %v3982_v31 = vpop.f32.mrf.mxu1 }
 0x1d1   : > { %v5587_v28 = vadd.f32 %v2368_v35, %v2229_v63  ;;  %v2232_v16 = vadd.f32 %v3982_v31, %v5474_v0  ;;  %v4019_v23 = vpop.f32.mrf.mxu0 }
 0x1d2   : > { %v2165_v25 = vpop.f32.mrf.mxu1 }
 0x1d3   : > { %v5590_v36 = vadd.f32 %v4016_v49, %v2232_v16  ;;  %v2230_v14 = vadd.f32 %v2165_v25, %v5477_v12  ;;  %v2384_v19 = vpop.f32.mrf.mxu0 }
 0x1d4   : > { %v3985_v1 = vpop.f32.mrf.mxu1 }
 0x1d5   : > { %v5593_v7 = vadd.f32 %v2371_v22, %v2230_v14  ;;  %v2235_v9 = vadd.f32 %v3985_v1, %v5480_v48  ;;  %v4020_v42 = vpop.f32.mrf.mxu0 }
 0x1d6   : > { %v2178_v37 = vpop.f32.mrf.mxu1 }
 0x1d7   : > { %v5596_v52 = vadd.f32 %v4019_v23, %v2235_v9  ;;  %v2233_v63 = vadd.f32 %v2178_v37, %v5483_v21  ;;  %v2387_v35 = vpop.f32.mrf.mxu0 }
 0x1d8   : > { %v3986_v0 = vpop.f32.mrf.mxu1 }
 0x1d9   : > { %v5599_v31 = vadd.f32 %v2384_v19, %v2233_v63  ;;  %v2236_v49 = vadd.f32 %v3986_v0, %v5486_v27  ;;  %v4023_v16 = vpop.f32.mrf.mxu0  ;;  %v2211_v19 = vadd.f32 %v5505_v43, %v5408_v29  ;;  %v2212_v29 = vadd.f32 %v5515_v2, %v5414_v58 }
 0x1da   : > { %v2181_v25 = vpop.f32.mrf.mxu1  ;;  %v2213_v58 = vadd.f32 %v5527_v30, %v5423_v5  ;;  %v2219_v5 = vadd.f32 %v5539_v34, %v5432_v11 }
 0x1db   : > { %v5602_v12 = vadd.f32 %v4020_v42, %v2236_v49  ;;  %v2234_v22 = vadd.f32 %v2181_v25, %v5489_v40  ;;  %v2400_v14 = vpop.f32.mrf.mxu0  ;;  %v2209_v40 = vadd.f32 %v5511_v24, %v5411_v15  ;;  %v2417_v25 = vadd.f32 %v5498_v56, %v2211_v19 }
 0x1dc   : > { %v3989_v48 = vpop.f32.mrf.mxu1  ;;  %v2210_v15 = vadd.f32 %v5519_v26, %v5417_v4  ;;  %v2215_v56 = vadd.f32 %v5523_v47, %v5420_v41  ;;  %v2214_v41 = vadd.f32 %v5535_v10, %v5429_v8  ;;  %v2217_v47 = vadd.f32 %v5543_v3, %v5435_v60 }
 0x1dd   : > { %v5605_v1 = vadd.f32 %v2387_v35, %v2234_v22  ;;  %v2239_v23 = vadd.f32 %v3989_v48, %v5492_v18  ;;  %v4024_v9 = vpop.f32.mrf.mxu0  ;;  %v2415_v48 = vadd.f32 %v5503_v51, %v2209_v40  ;;  %v2418_v51 = vadd.f32 %v5509_v50, %v2212_v29 }
 0x1de   : > { %v2194_v21 = vpop.f32.mrf.mxu1  ;;  %v2220_v8 = vadd.f32 %v5547_v57, %v5438_v33  ;;  %v2420_v40 = vadd.f32 %v5529_v55, %v2214_v41  ;;  %v6112_v55 = vld [vmem:[#allocation9_spill] sm:$0xff] }
 0x1df   : > { %v5610_v37 = vadd.f32 %v4023_v16, %v2239_v23  ;;  %v2237_v27 = vadd.f32 %v2194_v21, %v5495_v6  ;;  %v2403_v63 = vpop.f32.mrf.mxu0  ;;  %v2416_v21 = vadd.f32 %v5513_v59, %v2210_v15 }
 0x1e0   : > { %v3990_v42 = vpop.f32.mrf.mxu1  ;;  %v5668_v29 = vadd.f32 %v5541_v44, %v2220_v8 }
 0x1e1   : > { %v5615_v0 = vadd.f32 %v2400_v14, %v2237_v27  ;;  %v2240_v35 = vadd.f32 %v3990_v42, %v5500_v13  ;;  %v4063_v49 = vpop.f32.mrf.mxu0 }
 0x1e2   : > { %v2197_v18 = vpop.f32.mrf.mxu1 }
 0x1e3   : > { %v5621_v43 = vadd.f32 %v4024_v9, %v2240_v35  ;;  %v2238_v6 = vadd.f32 %v2197_v18, %v5507_v61  ;;  %v2728_v16 = vpop.f32.mrf.mxu0  ;;  %v5636_v61 = vld [vmem:[%s5967_s2] ss:$0 sm:$0xff]  ;;  %v2216_v9 = vadd.f32 %v5531_v46, %v5426_v45  ;;  %v2421_v45 = vadd.f32 %v5517_v54, %v2215_v56  ;;  %v6115_v56 = vld [vmem:[#allocation25_spill] sm:$0xff] }
 0x1e4   : > { %v4029_v22 = vpop.f32.mrf.mxu1  ;;  %v2419_v46 = vadd.f32 %v5521_v20, %v2213_v58  ;;  %v2425_v54 = vadd.f32 %v5533_v62, %v2219_v5  ;;  %v2423_v20 = vadd.f32 %v5537_v38, %v2217_v47  ;;  %v6116_v58 = vld [vmem:[#allocation11_spill] sm:$0xff]  ;;  %v6118_v5 = vld [vmem:[#allocation10_spill] sm:$0xff] }
 0x1e5   : > { %v5627_v24 = vadd.f32 %v2403_v63, %v2238_v6  ;;  %v2645_v13 = vadd.f32 %v4029_v22, %v2417_v25  ;;  %v4064_v14 = vpop.f32.mrf.mxu0  ;;  %v2422_v42 = vadd.f32 %v5525_v32, %v2216_v9  ;;  %v2218_v32 = vadd.f32 %v5551_v39, %v5441_v17  ;;  %v6113_v6 = vld [vmem:[#allocation17_spill] sm:$0xff] }
 0x1e6   : > { %v2516_v2 = vpop.f32.mrf.mxu1  ;;  %v2223_v62 = vadd.f32 %v6113_v6, %v6112_v55  ;;  %v6123_v55 = vld [vmem:[#allocation18_spill] sm:$0xff] }
 0x1e7   : > { %v2857_v23 = vadd.f32 %v4063_v49, %v2645_v13  ;;  %v2643_v4 = vadd.f32 %v2516_v2, %v2415_v48  ;;  %v2731_v26 = vpop.f32.mrf.mxu0  ;;  %v6117_v2 = vld [vmem:[#allocation20_spill] sm:$0xff]  ;;  %v2424_v47 = vadd.f32 %v6118_v5, %v2218_v32 }
 0x1e8   : > { %v4030_v30 = vpop.f32.mrf.mxu1 }
 0x1e9   : > { %v5649_v50 = vadd.f32 %v5636_v61, %v2857_v23  ;;  %v2855_v19 = vadd.f32 %v2728_v16, %v2643_v4  ;;  %v2646_v27 = vadd.f32 %v4030_v30, %v2418_v51  ;;  %v4067_v63 = vpop.f32.mrf.mxu0  ;;  %v2224_v51 = vadd.f32 %v6117_v2, %v6116_v58  ;;  %v6119_v30 = vld [vmem:[#allocation12_spill] sm:$0xff] }
 0x1ea   : > { %v2519_v11 = vpop.f32.mrf.mxu1 }
 0x1eb   : > { %v2928_v10 = vsub.f32 0.0, %v5649_v50  ;;  %v5657_v60 = vadd.f32 %v5636_v61, %v2855_v19  ;;  %v2858_v59 = vadd.f32 %v4064_v14, %v2646_v27  ;;  %v2644_v34 = vadd.f32 %v2519_v11, %v2416_v21  ;;  %v2744_v3 = vpop.f32.mrf.mxu0  ;;  %v6114_v14 = vld [vmem:[#allocation7_spill] sm:$0xff] }
 0x1ec   : > { %v4033_v35 = vpop.f32.mrf.mxu1  ;;  %v2221_v44 = vadd.f32 %v6115_v56, %v6114_v14  ;;  %v5685_v21 = vadd.f32 %v6119_v30, %v2223_v62  ;;  %v6124_v62 = vld [vmem:[#allocation15_spill] sm:$0xff] }
 0x1ed   : > { %v2962_v49 = vmul.f32 1.442695, %v2928_v10  ;;  %v2926_v33 = vsub.f32 0.0, %v5657_v60  ;;  %v5665_v57 = vadd.f32 %v5636_v61, %v2858_v59  ;;  %v2856_v18 = vadd.f32 %v2731_v26, %v2644_v34  ;;  %v4068_v25 = vpop.f32.mrf.mxu0  ;;  %v6120_v10 = vld [vmem:[#allocation14_spill] sm:$0xff] }
 0x1ee   : > { %v2649_v16 = vadd.f32 %v4033_v35, %v2421_v45  ;;  %v2532_v38 = vpop.f32.mrf.mxu1  ;;  %v2427_v59 = vadd.f32 %v6120_v10, %v2221_v44  ;;  %v6121_v34 = vld [vmem:[#allocation22_spill] sm:$0xff] }
 0x1ef   : > { %4132 = vpow2.f32 %v2962_v49  ;;  %v2958_v22 = vmul.f32 1.442695, %v2926_v33  ;;  %v2929_v48 = vsub.f32 0.0, %v5665_v57  ;;  %v5676_v15 = vadd.f32 %v5636_v61, %v2856_v18  ;;  %v2747_v13 = vpop.f32.mrf.mxu0 }
 0x1f0   : > { %v2861_v17 = vadd.f32 %v4067_v63, %v2649_v16  ;;  %v2647_v39 = vadd.f32 %v2532_v38, %v2419_v46  ;;  %v4034_v23 = vpop.f32.mrf.mxu1  ;;  %v6125_v16 = vld [vmem:[#allocation23_spill] sm:$0xff] }
 0x1f1   : > { %4134 = vpow2.f32 %v2958_v22  ;;  %v2964_v4 = vmul.f32 1.442695, %v2929_v48  ;;  %v2927_v26 = vsub.f32 0.0, %v5676_v15  ;;  %v2650_v9 = vadd.f32 %v4034_v23, %v2422_v42  ;;  %v4071_v41 = vpop.f32.mrf.mxu0  ;;  %v6129_v23 = vld [vmem:[#allocation6_spill] sm:$0xff] }
 0x1f2   : > { %v5688_v19 = vadd.f32 %v5636_v61, %v2861_v17  ;;  %v2859_v27 = vadd.f32 %v2744_v3, %v2647_v39  ;;  %v2535_v45 = vpop.f32.mrf.mxu1  ;;  %v5692_v42 = vadd.f32 %v6121_v34, %v2224_v51  ;;  %v2227_v38 = vadd.f32 %v6125_v16, %v6124_v62  ;;  %v6127_v51 = vld [vmem:[#allocation3_spill] sm:$0xff]  ;;  %v6128_v39 = vld [vmem:[#allocation24_spill] sm:$0xff] }
 0x1f3   : > { %4136 = vpow2.f32 %v2964_v4  ;;  %v2960_v63 = vmul.f32 1.442695, %v2927_v26  ;;  %v2862_v46 = vadd.f32 %v4068_v25, %v2650_v9  ;;  %v2648_v8 = vadd.f32 %v2535_v45, %v2420_v40  ;;  %v2760_v11 = vpop.f32.mrf.mxu0  ;;  %v6122_v40 = vld [vmem:[#allocation13_spill] sm:$0xff]  ;;  %v6133_v62 = vld [vmem:[#allocation8_spill] sm:$0xff] }
 0x1f4   : > { %v2932_v35 = vsub.f32 0.0, %v5688_v19  ;;  %v5696_v49 = vadd.f32 %v5636_v61, %v2859_v27  ;;  %v4037_v33 = vpop.f32.mrf.mxu1  ;;  %v2222_v6 = vadd.f32 %v6123_v55, %v6122_v40  ;;  %v2228_v4 = vadd.f32 %v6129_v23, %v6128_v39  ;;  %v6132_v55 = vld [vmem:[#allocation21_spill] sm:$0xff] }
 0x1f5   : > { %4138 = vpow2.f32 %v2960_v63  ;;  %v5699_v3 = vadd.f32 %v5636_v61, %v2862_v46  ;;  %v2860_v18 = vadd.f32 %v2747_v13, %v2648_v8  ;;  %v2653_v32 = vadd.f32 %v4037_v33, %v2425_v54  ;;  %v4072_v25 = vpop.f32.mrf.mxu0  ;;  %v6126_v54 = vld [vmem:[#allocation19_spill] sm:$0xff]  ;;  %v6131_v46 = vld [vmem:[#allocation16_spill] sm:$0xff] }
 0x1f6   : > { %v2970_v22 = vmul.f32 1.442695, %v2932_v35  ;;  %v2930_v48 = vsub.f32 0.0, %v5696_v49  ;;  %v2548_v14 = vpop.f32.mrf.mxu1  ;;  %v2225_v17 = vadd.f32 %v6127_v51, %v6126_v54  ;;  %v2433_v8 = vadd.f32 %v6131_v46, %v2227_v38  ;;  %v6135_v54 = vld [vmem:[#allocation26_spill] sm:$0xff] }
 0x1f7   : > { %v2933_v56 = vsub.f32 0.0, %v5699_v3  ;;  %v5708_v44 = vadd.f32 %v5636_v61, %v2860_v18  ;;  %v2865_v58 = vadd.f32 %v4071_v41, %v2653_v32  ;;  %v2651_v2 = vadd.f32 %v2548_v14, %v2423_v20  ;;  %v2763_v13 = vpop.f32.mrf.mxu0  ;;  %v6130_v41 = vld [vmem:[#allocation2_spill] sm:$0xff] }
 0x1f8   : > { %4140 = vpow2.f32 %v2970_v22  ;;  %v2966_v26 = vmul.f32 1.442695, %v2930_v48  ;;  %v4038_v9 = vpop.f32.mrf.mxu1  ;;  %v2428_v20 = vadd.f32 %v6130_v41, %v2222_v6  ;;  %v5729_v6 = vadd.f32 %v6133_v62, %v2228_v4 }
 0x1f9   : > { %v2972_v5 = vmul.f32 1.442695, %v2933_v56  ;;  %v2931_v30 = vsub.f32 0.0, %v5708_v44  ;;  %v5716_v27 = vadd.f32 %v5636_v61, %v2865_v58  ;;  %v2863_v45 = vadd.f32 %v2760_v11, %v2651_v2  ;;  %v4075_v63 = vpop.f32.mrf.mxu0  ;;  %v6134_v2 = vld [vmem:[#allocation5_spill] sm:$0xff] }
 0x1fa   : > { %4142 = vpow2.f32 %v2966_v26  ;;  %v2654_v10 = vadd.f32 %v4038_v9, %v5668_v29  ;;  %v2551_v34 = vpop.f32.mrf.mxu1  ;;  %v5726_v11 = vadd.f32 %v6132_v55, %v2225_v17  ;;  %v2226_v51 = vadd.f32 %v6135_v54, %v6134_v2 }
 0x1fb   : > { %4144 = vpow2.f32 %v2972_v5  ;;  %v2968_v35 = vmul.f32 1.442695, %v2931_v30  ;;  %v2936_v33 = vsub.f32 0.0, %v5716_v27  ;;  %v5723_v18 = vadd.f32 %v5636_v61, %v2863_v45  ;;  %v2776_v32 = vpop.f32.mrf.mxu0 }
 0x1fc   : > { %v4133_v40 = vpop.eup %4132  ;;  %v2866_v16 = vadd.f32 %v4072_v25, %v2654_v10  ;;  %v2652_v38 = vadd.f32 %v2551_v34, %v2424_v47  ;;  %v4041_v22 = vpop.f32.mrf.mxu1 }
 0x1fd   : > { %v3024_v29 = vadd.f32 1.0, %v4133_v40  ;;  %4146 = vpow2.f32 %v2968_v35  ;;  %v2978_v48 = vmul.f32 1.442695, %v2936_v33  ;;  %v2934_v14 = vsub.f32 0.0, %v5723_v18  ;;  %v4076_v56 = vpop.f32.mrf.mxu0 }
 0x1fe   : > { %v4135_v58 = vpop.eup %4134  ;;  %v5735_v39 = vadd.f32 %v5636_v61, %v2866_v16  ;;  %v2864_v17 = vadd.f32 %v2763_v13, %v2652_v38  ;;  %v2657_v23 = vadd.f32 %v4041_v22, %v5685_v21  ;;  %v2564_v4 = vpop.f32.mrf.mxu1 }
 0x1ff   : > { %4148 = vrcp.f32 %v3024_v29  ;;  %v3022_v47 = vadd.f32 1.0, %v4135_v58  ;;  %v2974_v25 = vmul.f32 1.442695, %v2934_v14  ;;  %v2655_v26 = vadd.f32 %v2564_v4, %v2427_v59  ;;  %v2779_v9 = vpop.f32.mrf.mxu0 }
 0x200   : > { %v4137_v5 = vpop.eup %4136  ;;  %4150 = vpow2.f32 %v2978_v48  ;;  %v2937_v30 = vsub.f32 0.0, %v5735_v39  ;;  %v5740_v45 = vadd.f32 %v5636_v61, %v2864_v17  ;;  %v2869_v41 = vadd.f32 %v4075_v63, %v2657_v23  ;;  %v4042_v46 = vpop.f32.mrf.mxu1 }
 0x201   : > { %4152 = vrcp.f32 %v3022_v47  ;;  %v3025_v10 = vadd.f32 1.0, %v4137_v5  ;;  %v2867_v13 = vadd.f32 %v2776_v32, %v2655_v26  ;;  %v2658_v21 = vadd.f32 %v4042_v46, %v5692_v42  ;;  %v4079_v34 = vpop.f32.mrf.mxu0 }
 0x202   : > { %v4139_v35 = vpop.eup %4138  ;;  %4154 = vpow2.f32 %v2974_v25  ;;  %v2980_v33 = vmul.f32 1.442695, %v2937_v30  ;;  %v2935_v59 = vsub.f32 0.0, %v5740_v45  ;;  %v5745_v40 = vadd.f32 %v5636_v61, %v2869_v41  ;;  %v2567_v55 = vpop.f32.mrf.mxu1  ;;  %v6136_v25 = vld [vmem:[#allocation4_spill] sm:$0xff] }
 0x203   : > { %4156 = vrcp.f32 %v3025_v10  ;;  %v3023_v62 = vadd.f32 1.0, %v4139_v35  ;;  %v5748_v63 = vadd.f32 %v5636_v61, %v2867_v13  ;;  %v2870_v16 = vadd.f32 %v4076_v56, %v2658_v21  ;;  %v2792_v38 = vpop.f32.mrf.mxu0 }
 0x204   : > { %4158 = vpow2.f32 %v2980_v33  ;;  %v2976_v32 = vmul.f32 1.442695, %v2935_v59  ;;  %v2940_v42 = vsub.f32 0.0, %v5745_v40  ;;  %v2656_v22 = vadd.f32 %v2567_v55, %v2428_v20  ;;  %v4045_v29 = vpop.f32.mrf.mxu1 }
 0x205   : > { %v4141_v48 = vpop.eup %4140  ;;  %4160 = vrcp.f32 %v3023_v62  ;;  %v2938_v14 = vsub.f32 0.0, %v5748_v63  ;;  %v5753_v58 = vadd.f32 %v5636_v61, %v2870_v16  ;;  %v2661_v2 = vadd.f32 %v4045_v29, %v2433_v8  ;;  %v4080_v54 = vpop.f32.mrf.mxu0 }
 0x206   : > { %v3028_v17 = vadd.f32 1.0, %v4141_v48  ;;  %4162 = vpow2.f32 %v2976_v32  ;;  %v2986_v56 = vmul.f32 1.442695, %v2940_v42  ;;  %v2868_v23 = vadd.f32 %v2779_v9, %v2656_v22  ;;  %v2580_v4 = vpop.f32.mrf.mxu1 }
 0x207   : > { %v4143_v47 = vpop.eup %4142  ;;  %v2432_v26 = vadd.f32 %v6136_v25, %v2226_v51  ;;  %v2941_v20 = vsub.f32 0.0, %v5753_v58  ;;  %v2873_v5 = vadd.f32 %v4079_v34, %v2661_v2  ;;  %v2659_v30 = vadd.f32 %v2580_v4, %v5726_v11  ;;  %v2795_v41 = vpop.f32.mrf.mxu0 }
 0x208   : > { %v4145_v46 = vpop.eup %4144  ;;  %4164 = vrcp.f32 %v3028_v17  ;;  %v3026_v8 = vadd.f32 1.0, %v4143_v47  ;;  %v2982_v10 = vmul.f32 1.442695, %v2938_v14  ;;  %v5759_v13 = vadd.f32 %v5636_v61, %v2868_v23  ;;  %v4046_v21 = vpop.f32.mrf.mxu1 }
 0x209   : > { %v3029_v9 = vadd.f32 1.0, %v4145_v46  ;;  %4166 = vpow2.f32 %v2986_v56  ;;  %v2988_v35 = vmul.f32 1.442695, %v2941_v20  ;;  %v5762_v51 = vadd.f32 %v5636_v61, %v2873_v5  ;;  %v5764_v33 = vpop.f32.mrf.mxu0 }
 0x20a   : > { %v4147_v34 = vpop.eup %4146  ;;  %4168 = vrcp.f32 %v3026_v8  ;;  %v2939_v11 = vsub.f32 0.0, %v5759_v13  ;;  %v2871_v59 = vadd.f32 %v2792_v38, %v2659_v30  ;;  %v2662_v55 = vadd.f32 %v4046_v21, %v5729_v6  ;;  %v2583_v62 = vpop.f32.mrf.mxu1 }
 0x20b   : > { %4170 = vrcp.f32 %v3029_v9  ;;  %v3027_v16 = vadd.f32 1.0, %v4147_v34  ;;  %v2944_v32 = vsub.f32 0.0, %v5762_v51  ;;  %v2660_v42 = vadd.f32 %v2583_v62, %v2432_v26  ;;  %v5770_v22 = vpop.f32.mrf.mxu0 }
 0x20c   : > { %v4149_v29 = vpop.eup %4148  ;;  %4172 = vpow2.f32 %v2982_v10  ;;  %v2984_v48 = vmul.f32 1.442695, %v2939_v11  ;;  %v5773_v14 = vadd.f32 %v5636_v61, %v2871_v59  ;;  %v2874_v2 = vadd.f32 %v4080_v54, %v2662_v55  ;;  %v4049_v17 = vpop.f32.mrf.mxu1 }
 0x20d   : > { %v4151_v38 = vpop.eup %4150  ;;  %v3088_v6 = vmul.f32 %v4149_v29, %v5649_v50  ;;  %4174 = vrcp.f32 %v3027_v16  ;;  %v2994_v56 = vmul.f32 1.442695, %v2944_v32  ;;  %v2872_v23 = vadd.f32 %v2795_v41, %v2660_v42  ;;  %v4084_v4 = vpop.f32.mrf.mxu0 }
 0x20e   : > { %v4153_v47 = vpop.eup %4152  ;;  %v3032_v25 = vadd.f32 1.0, %v4151_v38  ;;  %4176 = vpow2.f32 %v2988_v35  ;;  %v2942_v26 = vsub.f32 0.0, %v5773_v14  ;;  %v5783_v54 = vadd.f32 %v5636_v61, %v2874_v2  ;;  %v2596_v20 = vpop.f32.mrf.mxu1 }
 0x20f   : > { %v4155_v50 = vpop.eup %4154  ;;  %v3604_v5 = vpack.c.bf16 %v3088_v6, %v3088_v6  ;;  %v3086_v30 = vmul.f32 %v4153_v47, %v5657_v60  ;;  %4178 = vpow2.f32 %v2984_v48  ;;  %v5787_v41 = vadd.f32 %v5636_v61, %v2872_v23  ;;  %v2811_v46 = vpop.f32.mrf.mxu0 }
 0x210   : > { %v4157_v8 = vpop.eup %4156  ;;  %4180 = vrcp.f32 %v3032_v25  ;;  %v3030_v10 = vadd.f32 1.0, %v4155_v50  ;;  %v2990_v21 = vmul.f32 1.442695, %v2942_v26  ;;  %v2945_v9 = vsub.f32 0.0, %v5783_v54  ;;  %v4050_v35 = vpop.f32.mrf.mxu1 }
 0x211   : > { %v4159_v34 = vpop.eup %4158  ;;  %3249 = vst.msk [vmem:[%s5779_s15 + $0x8] sm:$0xf] %vm3246_vm8, %v3604_v5  ;;  %v3602_v11 = vpack.c.bf16 %v3086_v30, %v3086_v30  ;;  %v3089_v59 = vmul.f32 %v4157_v8, %v5665_v57  ;;  %4182 = vpow2.f32 %v2994_v56  ;;  %v2943_v60 = vsub.f32 0.0, %v5787_v41  ;;  %v5794_v55 = vpop.f32.mrf.mxu0 }
 0x212   : > { %v4161_v62 = vpop.eup %4160  ;;  %4184 = vrcp.f32 %v3030_v10  ;;  %v3033_v16 = vadd.f32 1.0, %v4159_v34  ;;  %v2996_v32 = vmul.f32 1.442695, %v2945_v9  ;;  %v2665_v42 = vadd.f32 %v4049_v17, %v5584_v53  ;;  %v2599_v29 = vpop.f32.mrf.mxu1 }
 0x213   : > { %v4163_v48 = vpop.eup %4162  ;;  %3247 = vst.msk [vmem:[%s5779_s15] sm:$0xf] %vm3246_vm8, %v3602_v11  ;;  %v3605_v2 = vpack.c.bf16 %v3089_v59, %v3089_v59  ;;  %v3087_v38 = vmul.f32 %v4161_v62, %v5676_v15  ;;  %4186 = vpow2.f32 %v2990_v21  ;;  %v2992_v57 = vmul.f32 1.442695, %v2943_v60  ;;  %v5800_v6 = vpop.f32.mrf.mxu0 }
 0x214   : > { %4188 = vrcp.f32 %v3033_v16  ;;  %v3031_v56 = vadd.f32 1.0, %v4163_v48  ;;  %v2877_v23 = vadd.f32 %v5764_v33, %v2665_v42  ;;  %v2663_v47 = vadd.f32 %v2596_v20, %v5587_v28  ;;  %v4053_v25 = vpop.f32.mrf.mxu1 }
 0x215   : > { %v4165_v53 = vpop.eup %4164  ;;  %3250 = vst.msk [vmem:[%s5779_s15 + $0xc] sm:$0xf] %vm3246_vm8, %v3605_v2  ;;  %v3603_v17 = vpack.c.bf16 %v3087_v38, %v3087_v38  ;;  %4190 = vpow2.f32 %v2996_v32  ;;  %v2666_v26 = vadd.f32 %v4050_v35, %v5590_v36  ;;  %v2664_v15 = vadd.f32 %v2599_v29, %v5593_v7  ;;  %v5813_v20 = vpop.f32.mrf.mxu0 }
 0x216   : > { %v4167_v50 = vpop.eup %4166  ;;  %v3092_v5 = vmul.f32 %v4165_v53, %v5688_v19  ;;  %4192 = vrcp.f32 %v3031_v56  ;;  %v5810_v30 = vadd.f32 %v5636_v61, %v2877_v23  ;;  %v2875_v28 = vadd.f32 %v5770_v22, %v2663_v47  ;;  %v2612_v33 = vpop.f32.mrf.mxu1 }
 0x217   : > { %v4169_v8 = vpop.eup %4168  ;;  %3248 = vst.msk [vmem:[%s5779_s15 + $0x4] sm:$0xf] %vm3246_vm8, %v3603_v17  ;;  %v3036_v10 = vadd.f32 1.0, %v4167_v50  ;;  %4194 = vpow2.f32 %v2992_v57  ;;  %v2878_v36 = vadd.f32 %v4084_v4, %v2666_v26  ;;  %v2876_v7 = vadd.f32 %v2811_v46, %v2664_v15 }
 0x218   : > { %v4171_v21 = vpop.eup %4170  ;;  %v3608_v9 = vpack.c.bf16 %v3092_v5, %v3092_v5  ;;  %v3090_v19 = vmul.f32 %v4169_v8, %v5696_v49  ;;  %v2948_v35 = vsub.f32 0.0, %v5810_v30  ;;  %v5820_v34 = vadd.f32 %v5636_v61, %v2875_v28  ;;  %v4054_v22 = vpop.f32.mrf.mxu1 }
 0x219   : > { %v4173_v11 = vpop.eup %4172  ;;  %v3093_v59 = vmul.f32 %v4171_v21, %v5699_v3  ;;  %4196 = vrcp.f32 %v3036_v10  ;;  %v5824_v60 = vadd.f32 %v5636_v61, %v2878_v36  ;;  %v5827_v4 = vadd.f32 %v5636_v61, %v2876_v7  ;;  %v5834_v3 = vpop.f32.mrf.mxu0 }
 0x21a   : > { %v4175_v46 = vpop.eup %4174  ;;  %3253 = vst.msk [vmem:[%s5779_s15 + $0x18] sm:$0xf] %vm3246_vm8, %v3608_v9  ;;  %v3606_v49 = vpack.c.bf16 %v3090_v19, %v3090_v19  ;;  %v3034_v62 = vadd.f32 1.0, %v4173_v11  ;;  %v3002_v16 = vmul.f32 1.442695, %v2948_v35  ;;  %v2946_v32 = vsub.f32 0.0, %v5820_v34  ;;  %v5832_v42 = vpop.f32.mrf.mxu1 }
 0x21b   : > { %v4177_v29 = vpop.eup %4176  ;;  %v3609_v48 = vpack.c.bf16 %v3093_v59, %v3093_v59  ;;  %v3091_v2 = vmul.f32 %v4175_v46, %v5708_v44  ;;  %v2949_v38 = vsub.f32 0.0, %v5824_v60  ;;  %v2947_v57 = vsub.f32 0.0, %v5827_v4  ;;  %v4091_v36 = vpop.f32.mrf.mxu0 }
 0x21c   : > { %v4179_v56 = vpop.eup %4178  ;;  %3251 = vst.msk [vmem:[%s5779_s15 + $0x10] sm:$0xf] %vm3246_vm8, %v3606_v49  ;;  %4198 = vrcp.f32 %v3034_v62  ;;  %v3037_v23 = vadd.f32 1.0, %v4177_v29  ;;  %v2998_v47 = vmul.f32 1.442695, %v2946_v32  ;;  %v2669_v53 = vadd.f32 %v4053_v25, %v5596_v52  ;;  %v4057_v17 = vpop.f32.mrf.mxu1 }
 0x21d   : > { %v4181_v26 = vpop.eup %4180  ;;  %3254 = vst.msk [vmem:[%s5779_s15 + $0x1c] sm:$0xf] %vm3246_vm8, %v3609_v48  ;;  %v3607_v15 = vpack.c.bf16 %v3091_v2, %v3091_v2  ;;  %v3035_v50 = vadd.f32 1.0, %v4179_v56  ;;  %4200 = vpow2.f32 %v3002_v16  ;;  %v3004_v44 = vmul.f32 1.442695, %v2949_v38 }
 0x21e   : > { %v4183_v5 = vpop.eup %4182  ;;  %v3096_v28 = vmul.f32 %v4181_v26, %v5716_v27  ;;  %4202 = vrcp.f32 %v3037_v23  ;;  %v3000_v8 = vmul.f32 1.442695, %v2947_v57  ;;  %v2881_v10 = vadd.f32 %v5794_v55, %v2669_v53  ;;  %v2628_v7 = vpop.f32.mrf.mxu1 }
 0x21f   : > { %v4185_v21 = vpop.eup %4184  ;;  %3252 = vst.msk [vmem:[%s5779_s15 + $0x14] sm:$0xf] %vm3246_vm8, %v3607_v15  ;;  %4204 = vrcp.f32 %v3035_v50  ;;  %v3040_v52 = vadd.f32 1.0, %v4183_v5  ;;  %v2667_v25 = vadd.f32 %v2612_v33, %v5599_v31  ;;  %v2670_v9 = vadd.f32 %v4054_v22, %v5602_v12  ;;  %v2840_v33 = vpop.f32.mrf.mxu0 }
 0x220   : > { %v4187_v19 = vpop.eup %4186  ;;  %v3612_v35 = vpack.c.bf16 %v3096_v28, %v3096_v28  ;;  %v3094_v27 = vmul.f32 %v4185_v21, %v5723_v18  ;;  %4206 = vpow2.f32 %v2998_v47  ;;  %v5852_v11 = vadd.f32 %v5636_v61, %v2881_v10  ;;  %v4058_v22 = vpop.f32.mrf.mxu1 }
 0x221   : > { %v4189_v55 = vpop.eup %4188  ;;  %4208 = vrcp.f32 %v3040_v52  ;;  %v3038_v59 = vadd.f32 1.0, %v4187_v19  ;;  %v2879_v46 = vadd.f32 %v5800_v6, %v2667_v25  ;;  %v2882_v49 = vadd.f32 %v5813_v20, %v2670_v9 }
 0x222   : > { %v4191_v62 = vpop.eup %4190  ;;  %3257 = vst.msk [vmem:[%s5779_s15 + $0x28] sm:$0xf] %vm3246_vm8, %v3612_v35  ;;  %v3610_v31 = vpack.c.bf16 %v3094_v27, %v3094_v27  ;;  %v3097_v12 = vmul.f32 %v4189_v55, %v5735_v39  ;;  %4210 = vpow2.f32 %v3004_v44  ;;  %v2952_v18 = vsub.f32 0.0, %v5852_v11  ;;  %v2631_v15 = vpop.f32.mrf.mxu1 }
 0x223   : > { %v4193_v16 = vpop.eup %4192  ;;  %4212 = vrcp.f32 %v3038_v59  ;;  %v3041_v32 = vadd.f32 1.0, %v4191_v62  ;;  %v5861_v6 = vadd.f32 %v5636_v61, %v2879_v46  ;;  %v5864_v20 = vadd.f32 %v5636_v61, %v2882_v49 }
 0x224   : > { %v4195_v29 = vpop.eup %4194  ;;  %3255 = vst.msk [vmem:[%s5779_s15 + $0x20] sm:$0xf] %vm3246_vm8, %v3610_v31  ;;  %v3613_v48 = vpack.c.bf16 %v3097_v12, %v3097_v12  ;;  %v3095_v39 = vmul.f32 %v4193_v16, %v5740_v45  ;;  %4214 = vpow2.f32 %v3000_v8  ;;  %v3010_v2 = vmul.f32 1.442695, %v2952_v18  ;;  %v4092_v45 = vpop.f32.mrf.mxu0 }
 0x225   : > { %4216 = vrcp.f32 %v3041_v32  ;;  %v3039_v38 = vadd.f32 1.0, %v4195_v29  ;;  %v2950_v57 = vsub.f32 0.0, %v5861_v6  ;;  %v2953_v56 = vsub.f32 0.0, %v5864_v20 }
 0x226   : > { %v4197_v23 = vpop.eup %4196  ;;  %3258 = vst.msk [vmem:[%s5779_s15 + $0x2c] sm:$0xf] %vm3246_vm8, %v3613_v48  ;;  %v3611_v47 = vpack.c.bf16 %v3095_v39, %v3095_v39  ;;  %4218 = vpow2.f32 %v3010_v2  ;;  %v2668_v53 = vadd.f32 %v5832_v42, %v5605_v1  ;;  %v2673_v26 = vadd.f32 %v4057_v17, %v5610_v37 }
 0x227   : > { %v3100_v50 = vmul.f32 %v4197_v23, %v5745_v40  ;;  %4220 = vrcp.f32 %v3039_v38  ;;  %v3006_v44 = vmul.f32 1.442695, %v2950_v57  ;;  %v3012_v5 = vmul.f32 1.442695, %v2953_v56 }
 0x228   : > { %3256 = vst.msk [vmem:[%s5779_s15 + $0x24] sm:$0xf] %vm3246_vm8, %v3611_v47  ;;  %v2880_v28 = vadd.f32 %v5834_v3, %v2668_v53  ;;  %v2885_v8 = vadd.f32 %v4091_v36, %v2673_v26  ;;  %v2671_v10 = vadd.f32 %v2628_v7, %v5615_v0  ;;  %v2674_v21 = vadd.f32 %v4058_v22, %v5621_v43  ;;  %v2843_v3 = vpop.f32.mrf.mxu0 }
 0x229   : > { %v4199_v1 = vpop.eup %4198  ;;  %v3616_v42 = vpack.c.bf16 %v3100_v50, %v3100_v50  ;;  %4222 = vpow2.f32 %v3006_v44  ;;  %v2672_v37 = vadd.f32 %v2631_v15, %v5627_v24 }
 0x22a   : > { %v4201_v17 = vpop.eup %4200  ;;  %v3098_v40 = vmul.f32 %v4199_v1, %v5748_v63  ;;  %4224 = vpow2.f32 %v3012_v5  ;;  %v5885_v52 = vadd.f32 %v5636_v61, %v2880_v28  ;;  %v5888_v25 = vadd.f32 %v5636_v61, %v2885_v8 }
 0x22b   : > { %v4203_v36 = vpop.eup %4202  ;;  %3261 = vst.msk [vmem:[%s5779_s15 + $0x38] sm:$0xf] %vm3246_vm8, %v3616_v42  ;;  %v3044_v0 = vadd.f32 1.0, %v4201_v17  ;;  %v2883_v43 = vadd.f32 %v2840_v33, %v2671_v10  ;;  %v2886_v7 = vadd.f32 %v4092_v45, %v2674_v21  ;;  %v2884_v9 = vadd.f32 %v2843_v3, %v2672_v37 }
 0x22c   : > { %v4205_v24 = vpop.eup %4204  ;;  %v3614_v19 = vpack.c.bf16 %v3098_v40, %v3098_v40  ;;  %v3101_v63 = vmul.f32 %v4203_v36, %v5753_v58  ;;  %v2951_v35 = vsub.f32 0.0, %v5885_v52  ;;  %v2956_v27 = vsub.f32 0.0, %v5888_v25 }
 0x22d   : > { %v4207_v55 = vpop.eup %4206  ;;  %v3099_v59 = vmul.f32 %v4205_v24, %v5759_v13  ;;  %4226 = vrcp.f32 %v3044_v0  ;;  %v5897_v46 = vadd.f32 %v5636_v61, %v2883_v43  ;;  %v5900_v49 = vadd.f32 %v5636_v61, %v2886_v7 }
 0x22e   : > { %v4209_v62 = vpop.eup %4208  ;;  %3259 = vst.msk [vmem:[%s5779_s15 + $0x30] sm:$0xf] %vm3246_vm8, %v3614_v19  ;;  %v3617_v58 = vpack.c.bf16 %v3101_v63, %v3101_v63  ;;  %v3042_v31 = vadd.f32 1.0, %v4207_v55  ;;  %v3008_v12 = vmul.f32 1.442695, %v2951_v35  ;;  %v5910_v39 = vadd.f32 %v5636_v61, %v2884_v9 }
 0x22f   : > { %v3018_v18 = vmul.f32 1.442695, %v2956_v27  ;;  %v4211_v33 = vpop.eup %4210  ;;  %v3615_v22 = vpack.c.bf16 %v3099_v59, %v3099_v59  ;;  %v3104_v13 = vmul.f32 %v4209_v62, %v5762_v51  ;;  %v2954_v16 = vsub.f32 0.0, %v5897_v46 }
 0x230   : > { %v2957_v32 = vsub.f32 0.0, %v5900_v49  ;;  %v4213_v29 = vpop.eup %4212  ;;  %3262 = vst.msk [vmem:[%s5779_s15 + $0x3c] sm:$0xf] %vm3246_vm8, %v3617_v58  ;;  %4228 = vrcp.f32 %v3042_v31  ;;  %v3045_v48 = vadd.f32 1.0, %v4211_v33  ;;  %v2955_v47 = vsub.f32 0.0, %v5910_v39 }
 0x231   : > { %v4215_v2 = vpop.eup %4214  ;;  %3260 = vst.msk [vmem:[%s5779_s15 + $0x34] sm:$0xf] %vm3246_vm8, %v3615_v22  ;;  %v3620_v38 = vpack.c.bf16 %v3104_v13, %v3104_v13  ;;  %v3102_v57 = vmul.f32 %v4213_v29, %v5773_v14  ;;  %4230 = vpow2.f32 %v3008_v12  ;;  %v3014_v51 = vmul.f32 1.442695, %v2954_v16 }
 0x232   : > { %v4217_v56 = vpop.eup %4216  ;;  %4232 = vrcp.f32 %v3045_v48  ;;  %v3043_v23 = vadd.f32 1.0, %v4215_v2  ;;  %v3020_v45 = vmul.f32 1.442695, %v2957_v32  ;;  %v3016_v50 = vmul.f32 1.442695, %v2955_v47 }
 0x233   : > { %v4219_v53 = vpop.eup %4218  ;;  %3265 = vst.msk [vmem:[%s5779_s15 + $0x48] sm:$0xf] %vm3246_vm8, %v3620_v38  ;;  %v3618_v61 = vpack.c.bf16 %v3102_v57, %v3102_v57  ;;  %v3105_v26 = vmul.f32 %v4217_v56, %v5783_v54  ;;  %4234 = vpow2.f32 %v3018_v18 }
 0x234   : > { %v4221_v15 = vpop.eup %4220  ;;  %4236 = vrcp.f32 %v3043_v23  ;;  %v3048_v14 = vadd.f32 1.0, %v4219_v53 }
 0x235   : > { %3263 = vst.msk [vmem:[%s5779_s15 + $0x40] sm:$0xf] %vm3246_vm8, %v3618_v61  ;;  %v3621_v44 = vpack.c.bf16 %v3105_v26, %v3105_v26  ;;  %v3103_v5 = vmul.f32 %v4221_v15, %v5787_v41  ;;  %4238 = vpow2.f32 %v3014_v51 }
 0x236   : > { %v4223_v28 = vpop.eup %4222  ;;  %4240 = vrcp.f32 %v3048_v14 }
 0x237   : > { %v4225_v8 = vpop.eup %4224  ;;  %3266 = vst.msk [vmem:[%s5779_s15 + $0x4c] sm:$0xf] %vm3246_vm8, %v3621_v44  ;;  %v3619_v54 = vpack.c.bf16 %v3103_v5, %v3103_v5  ;;  %v3046_v10 = vadd.f32 1.0, %v4223_v28  ;;  %4242 = vpow2.f32 %v3020_v45 }
 0x238   : > { %v3049_v21 = vadd.f32 1.0, %v4225_v8  ;;  %4244 = vpow2.f32 %v3016_v50 }
 0x239   : > { %3264 = vst.msk [vmem:[%s5779_s15 + $0x44] sm:$0xf] %vm3246_vm8, %v3619_v54  ;;  %4246 = vrcp.f32 %v3046_v10 }
 0x23a   : > { %v4227_v1 = vpop.eup %4226  ;;  %4248 = vrcp.f32 %v3049_v21 }
 0x23b   : > { %v3108_v41 = vmul.f32 %v4227_v1, %v5810_v30 }
 0x23d   : > { %v4229_v42 = vpop.eup %4228  ;;  %v3624_v37 = vpack.c.bf16 %v3108_v41, %v3108_v41 }
 0x23e   : > { %v4231_v17 = vpop.eup %4230  ;;  %v3106_v40 = vmul.f32 %v4229_v42, %v5820_v34 }
 0x23f   : > { %v4233_v3 = vpop.eup %4232  ;;  %3269 = vst.msk [vmem:[%s5779_s15 + $0x58] sm:$0xf] %vm3246_vm8, %v3624_v37  ;;  %v3047_v36 = vadd.f32 1.0, %v4231_v17 }
 0x240   : > { %v4235_v0 = vpop.eup %4234  ;;  %v3622_v43 = vpack.c.bf16 %v3106_v40, %v3106_v40  ;;  %v3109_v7 = vmul.f32 %v4233_v3, %v5824_v60 }
 0x241   : > { %v4237_v9 = vpop.eup %4236  ;;  %4250 = vrcp.f32 %v3047_v36  ;;  %v3052_v24 = vadd.f32 1.0, %v4235_v0 }
 0x242   : > { %v4239_v19 = vpop.eup %4238  ;;  %3267 = vst.msk [vmem:[%s5779_s15 + $0x50] sm:$0xf] %vm3246_vm8, %v3622_v43  ;;  %v3625_v30 = vpack.c.bf16 %v3109_v7, %v3109_v7  ;;  %v3107_v63 = vmul.f32 %v4237_v9, %v5827_v4 }
 0x243   : > { %v4241_v34 = vpop.eup %4240  ;;  %4252 = vrcp.f32 %v3052_v24  ;;  %v3050_v35 = vadd.f32 1.0, %v4239_v19 }
 0x244   : > { %v4243_v27 = vpop.eup %4242  ;;  %3270 = vst.msk [vmem:[%s5779_s15 + $0x5c] sm:$0xf] %vm3246_vm8, %v3625_v30  ;;  %v3623_v55 = vpack.c.bf16 %v3107_v63, %v3107_v63  ;;  %v3112_v60 = vmul.f32 %v4241_v34, %v5852_v11 }
 0x245   : > { %v4245_v59 = vpop.eup %4244  ;;  %4254 = vrcp.f32 %v3050_v35  ;;  %v3053_v62 = vadd.f32 1.0, %v4243_v27 }
 0x246   : > { %v4247_v58 = vpop.eup %4246  ;;  %3268 = vst.msk [vmem:[%s5779_s15 + $0x54] sm:$0xf] %vm3246_vm8, %v3623_v55  ;;  %v3628_v31 = vpack.c.bf16 %v3112_v60, %v3112_v60  ;;  %v3051_v4 = vadd.f32 1.0, %v4245_v59 }
 0x247   : > { %v4249_v12 = vpop.eup %4248  ;;  %v3110_v18 = vmul.f32 %v4247_v58, %v5861_v6  ;;  %4256 = vrcp.f32 %v3053_v62 }
 0x248   : > { %3273 = vst.msk [vmem:[%s5779_s15 + $0x68] sm:$0xf] %vm3246_vm8, %v3628_v31  ;;  %v3113_v33 = vmul.f32 %v4249_v12, %v5864_v20  ;;  %4258 = vrcp.f32 %v3051_v4 }
 0x249   : > { %v3626_v11 = vpack.c.bf16 %v3110_v18, %v3110_v18 }
 0x24a   : > { %v3629_v22 = vpack.c.bf16 %v3113_v33, %v3113_v33 }
 0x24b   : > { %3271 = vst.msk [vmem:[%s5779_s15 + $0x60] sm:$0xf] %vm3246_vm8, %v3626_v11 }
 0x24c   : > { %3274 = vst.msk [vmem:[%s5779_s15 + $0x6c] sm:$0xf] %vm3246_vm8, %v3629_v22 }
 0x24e   : > { %v4251_v13 = vpop.eup %4250 }
 0x24f   : > { %v3111_v16 = vmul.f32 %v4251_v13, %v5885_v52 }
 0x250   : > { %v4253_v32 = vpop.eup %4252 }
 0x251   : > { %v3627_v6 = vpack.c.bf16 %v3111_v16, %v3111_v16  ;;  %v3116_v29 = vmul.f32 %v4253_v32, %v5888_v25 }
 0x252   : > { %v4255_v48 = vpop.eup %4254 }
 0x253   : > { %3272 = vst.msk [vmem:[%s5779_s15 + $0x64] sm:$0xf] %vm3246_vm8, %v3627_v6  ;;  %v3632_v20 = vpack.c.bf16 %v3116_v29, %v3116_v29  ;;  %v3114_v2 = vmul.f32 %v4255_v48, %v5897_v46 }
 0x254   : > { %v4257_v38 = vpop.eup %4256 }
 0x255   : > { %v4259_v57 = vpop.eup %4258  ;;  %3277 = vst.msk [vmem:[%s5779_s15 + $0x78] sm:$0xf] %vm3246_vm8, %v3632_v20  ;;  %v3630_v51 = vpack.c.bf16 %v3114_v2, %v3114_v2  ;;  %v3117_v56 = vmul.f32 %v4257_v38, %v5900_v49 }
 0x256   : > { %v3115_v52 = vmul.f32 %v4259_v57, %v5910_v39 }
 0x257   : > { %3275 = vst.msk [vmem:[%s5779_s15 + $0x70] sm:$0xf] %vm3246_vm8, %v3630_v51  ;;  %v3633_v23 = vpack.c.bf16 %v3117_v56, %v3117_v56 }
 0x258   : > { %v3631_v47 = vpack.c.bf16 %v3115_v52, %v3115_v52 }
 0x259   : > { %3278 = vst.msk [vmem:[%s5779_s15 + $0x7c] sm:$0xf] %vm3246_vm8, %v3633_v23 }
 0x25a   : > { %3276 = vst.msk [vmem:[%s5779_s15 + $0x74] sm:$0xf] %vm3246_vm8, %v3631_v47 }
 0x25b PF: > { %s13_s12 = sadd.s32 1, %s4266_s12  }
 0x25c   : > { %p10_p4 = scmp.ge.s32.totalorder %s13_s12, 4  }
 0x25e   :  { %12 = sbr.rel (!%p10_p4) target bundleno = 1 (0x1), region = 70 }

</bundles_post_ra>
